<compile_context>
chip_gen: v7x
topology: tpu7x:2x2x1
jax: 0.10.0
libtpu: 0.0.40
codegen_flags: <defaults>
</compile_context>

<pallas_src>
import functools

import jax
import jax.numpy as jnp
from jax import lax
from jax.experimental import pallas as pl
from jax.experimental.pallas import tpu as pltpu

_BN_EPS = 1e-5
_HALO = 128          # lane halo for the fused 3x3 conv; must exceed W + 1


# --------------------------------------------------------------------------------------
# Kernel
# --------------------------------------------------------------------------------------
def _attn_conv_kernel(px_ref, pxs_ref, wq_ref, wkv_ref, wo_ref, bo_ref,
                      wk_ref, bk_ref, mask_ref, y_ref, out_sc, zpad_ref,
                      *, heads, H, W):
    """Fused to_q/to_kv projections + multi-head attention + to_out + 3x3 conv.

    Layout: channels on sublanes, flattened spatial (H*W) on the lane axis.
      px_ref  : (1, Kp, HW)   im2col of x, stride 1, + ones row (bias) + zero pad rows
      pxs_ref : (1, Kp, HWs)  im2col of x, stride kv_stride, + ones row + pad rows
      wq_ref  : (inner, Kp)   folded depthwise*BN*1x1 (+ bias column, * attn scale)
      wkv_ref : (2*inner, Kp) folded depthwise*BN*1x1 (+ bias column)
      wo_ref  : (dim, inner)  folded to_out 1x1 + BN
      bo_ref  : (dim, 1)
      wk_ref  : (9, dim, dim) per-tap 3x3 conv weights (tap s = kh*3 + kw)
      bk_ref  : (dim, 1)
      mask_ref: (9, 1, HW)    image-border validity mask per tap
      y_ref   : (1, dim, HW)  output, lane-dense
      out_sc  : (inner, HW)   VMEM scratch for per-head attention outputs
      zpad_ref: (dim, 2*HALO+HW) VMEM lane-halo scratch for the fused 3x3 conv
    """
    C = y_ref.shape[1]
    HW = H * W
    inner = wo_ref.shape[1]
    dim_head = inner // heads

    px = px_ref[0]                                           # (Kp, HW)
    pxs = pxs_ref[0]                                         # (Kp, HWs)

    # One K=Kp MXU matmul per projection; scale & biases are folded into the weights.
    q = jnp.dot(wq_ref[...], px, preferred_element_type=jnp.float32)       # (inner, HW)
    kv = jnp.dot(wkv_ref[...], pxs, preferred_element_type=jnp.float32)    # (2*inner, HWs)

    for h in range(heads):                                   # static unroll; heads small
        lo = h * dim_head
        qh = q[lo:lo + dim_head, :]                          # (d, n)
        kh = kv[lo:lo + dim_head, :]                         # (d, m)
        vh = kv[inner + lo:inner + lo + dim_head, :]         # (d, m)
        # dots[n, m] = sum_d q[d, n] k[d, m]  (scale already folded into wq)
        dots = lax.dot_general(qh, kh, (((0,), (0,)), ((), ())),
                               preferred_element_type=jnp.float32)          # (n, m)
        mx = jnp.max(dots, axis=-1, keepdims=True)
        p = jnp.exp(dots - mx)
        # deferred normalization: EUP reciprocal instead of a VALU divide per element
        inv = pl.reciprocal(jnp.sum(p, axis=-1, keepdims=True), approx=True)
        attn = p * inv
        # out_h[d, n] = sum_m v[d, m] attn[n, m]; 16-row stores are 8-sublane aligned.
        out_sc[lo:lo + dim_head, :] = lax.dot_general(
            vh, attn, (((1,), (1,)), ((), ())), preferred_element_type=jnp.float32)

    # to_out 1x1 conv + BN (folded); z never leaves VMEM.
    z = jnp.dot(wo_ref[...], out_sc[...],
                preferred_element_type=jnp.float32) + bo_ref[...]           # (C, HW)

    # Fused 3x3 conv (KKAN stand-in): write z into a lane-halo scratch, read the nine
    # shifted windows, kill image-border wrap with the precomputed masks, accumulate
    # nine tiny K=C MXU matmuls.
    halo = (zpad_ref.shape[1] - HW) // 2
    zeros_halo = jnp.zeros((C, halo), jnp.float32)
    zpad_ref[:, :halo] = zeros_halo
    zpad_ref[:, halo + HW:] = zeros_halo
    zpad_ref[:, halo:halo + HW] = z

    acc = jnp.zeros((C, HW), jnp.float32)
    s = 0
    for dh in (-1, 0, 1):
        for dw in (-1, 0, 1):
            off = dh * W + dw
            zwin = zpad_ref[:, halo + off:halo + off + HW]                  # (C, HW)
            tap = zwin if (dh == 0 and dw == 0) else zwin * mask_ref[s]     # (C, HW)
            acc = acc + jnp.dot(wk_ref[s], tap, preferred_element_type=jnp.float32)
            s += 1
    y_ref[0] = (acc + bk_ref[...]).astype(y_ref.dtype)


# --------------------------------------------------------------------------------------
# Wrapper helpers
# --------------------------------------------------------------------------------------
def _im2col(x_nchw, ksize, stride):
    """Patches for a KxK conv with padding=K//2 on NCHW input.

    Returns (B, K*K*C, Ho*Wo) with row index s*C + c, s = kh*K + kw.  Spatial stays
    flattened on the last (lane) axis — no NCHW<->NHWC transpose anywhere.
    """
    B, C, H, W = x_nchw.shape
    pad = ksize // 2
    xp = jnp.pad(x_nchw, ((0, 0), (0, 0), (pad, pad), (pad, pad)))
    Ho = (H + 2 * pad - ksize) // stride + 1
    Wo = (W + 2 * pad - ksize) // stride + 1
    cols = []
    for kh in range(ksize):
        for kw in range(ksize):
            sl = xp[:, :, kh:kh + stride * Ho:stride, kw:kw + stride * Wo:stride]
            cols.append(sl.reshape(B, C, Ho * Wo))
    return jnp.concatenate(cols, axis=1)


def _bn_scale_shift(gamma, beta, mean, var):
    a = gamma / jnp.sqrt(var + _BN_EPS)
    return a, beta - mean * a


@functools.partial(jax.jit, static_argnames=("heads", "kv_stride"))
def attention_forward(x, params, *, heads, kv_stride):
    """Attention forward pass.  x: (B, dim, H, W) float32 -> (B, dim, H, W)."""
    B, C, H, W = x.shape
    HW = H * W
    inner = params["w1q"].shape[0]
    dim_head = inner // heads
    scale = float(dim_head) ** -0.5
    assert W + 1 <= _HALO

    # ---- fold eval-mode BatchNorm + depthwise conv + 1x1 conv into single matrices ----
    aq, dq = _bn_scale_shift(params["q_gamma"], params["q_beta"],
                             params["q_mean"], params["q_var"])
    akv, dkv = _bn_scale_shift(params["kv_gamma"], params["kv_beta"],
                               params["kv_mean"], params["kv_var"])
    ao, do = _bn_scale_shift(params["o_gamma"], params["o_beta"],
                             params["o_mean"], params["o_var"])

    wq_eff = jnp.einsum("oc,c,cs->osc", params["w1q"], aq,
                        params["wdq"].reshape(C, 9)).reshape(inner, 9 * C)
    bq_eff = params["w1q"] @ dq                                      # (inner,)
    wkv_eff = jnp.einsum("oc,c,cs->osc", params["w1kv"], akv,
                         params["wdkv"].reshape(C, 9)).reshape(2 * inner, 9 * C)
    bkv_eff = params["w1kv"] @ dkv                                   # (2*inner,)
    wo_eff = ao[:, None] * params["wo"]                              # (dim, inner)
    bo_eff = (ao * params["bo"] + do).reshape(C, 1)
    wk_eff = jnp.transpose(params["wk"], (2, 3, 0, 1)).reshape(9, C, C)
    bk_eff = params["bk"].reshape(C, 1)

    # ---- fold biases (and attention scale) into the projection matmuls ----------------
    Kq = 9 * C + 1                              # im2col rows + ones row
    Kp = ((Kq + 7) // 8) * 8                    # pad to a clean sublane multiple

    def aug_patches(p):
        b_, k_, n_ = p.shape
        return jnp.concatenate(
            [p, jnp.ones((b_, 1, n_), p.dtype),
             jnp.zeros((b_, Kp - k_ - 1, n_), p.dtype)], axis=1)

    def aug_weight(w, b):
        o_, k_ = w.shape
        return jnp.concatenate(
            [w, b[:, None], jnp.zeros((o_, Kp - k_ - 1), w.dtype)], axis=1)

    wq_aug = scale * aug_weight(wq_eff, bq_eff)        # attention scale folded into q
    wkv_aug = aug_weight(wkv_eff, bkv_eff)

    # ---- lane-dense im2col patch tensors (padding fused into this tiny producer) ------
    px = aug_patches(_im2col(x, 3, 1))                 # (B, Kp, HW)
    pxs = aug_patches(_im2col(x, 3, kv_stride))        # (B, Kp, HWs)
    HWs = pxs.shape[-1]

    # ---- image-border validity masks for the fused 3x3 conv ---------------------------
    hh, ww = jnp.meshgrid(jnp.arange(H), jnp.arange(W), indexing="ij")
    hh = hh.reshape(-1)
    ww = ww.reshape(-1)
    masks = []
    for dh in (-1, 0, 1):
        for dw in (-1, 0, 1):
            ok = ((hh + dh >= 0) & (hh + dh < H) & (ww + dw >= 0) & (ww + dw < W))
            masks.append(ok.astype(x.dtype).reshape(1, 1, HW))
    conv_mask = jnp.concatenate(masks, axis=0)         # (9, 1, HW)

    # ---- single fused kernel -----------------------------------------------------------
    mm_flops = (inner * Kp * HW + 2 * inner * Kp * HWs         # projections
                + 2 * heads * HW * HWs * dim_head              # QK^T + PV
                + C * inner * HW                               # to_out 1x1
                + 9 * C * C * HW)                              # fused 3x3 conv
    cost = pl.CostEstimate(
        flops=2 * B * mm_flops,
        transcendentals=B * heads * (HW * HWs + HW),
        bytes_accessed=4 * (px.size + pxs.size + conv_mask.size + wq_aug.size
                            + wkv_aug.size + wo_eff.size + bo_eff.size
                            + wk_eff.size + bk_eff.size + B * C * HW))

    y = pl.pallas_call(
        functools.partial(_attn_conv_kernel, heads=heads, H=H, W=W),
        out_shape=jax.ShapeDtypeStruct((B, C, HW), x.dtype),
        grid_spec=pltpu.PrefetchScalarGridSpec(
            num_scalar_prefetch=0,
            grid=(B,),
            in_specs=[
                pl.BlockSpec((1, Kp, HW), lambda b: (b, 0, 0)),
                pl.BlockSpec((1, Kp, HWs), lambda b: (b, 0, 0)),
                pl.BlockSpec((inner, Kp), lambda b: (0, 0)),
                pl.BlockSpec((2 * inner, Kp), lambda b: (0, 0)),
                pl.BlockSpec((C, inner), lambda b: (0, 0)),
                pl.BlockSpec((C, 1), lambda b: (0, 0)),
                pl.BlockSpec((9, C, C), lambda b: (0, 0, 0)),
                pl.BlockSpec((C, 1), lambda b: (0, 0)),
                pl.BlockSpec((9, 1, HW), lambda b: (0, 0, 0)),
            ],
            out_specs=pl.BlockSpec((1, C, HW), lambda b: (b, 0, 0)),
            scratch_shapes=[
                pltpu.VMEM((inner, HW), jnp.float32),            # per-head outputs
                pltpu.VMEM((C, 2 * _HALO + HW), jnp.float32),    # conv lane-halo
            ],
        ),
        compiler_params=pltpu.CompilerParams(dimension_semantics=("parallel",)),
        cost_estimate=cost,
    )(px, pxs, wq_aug, wkv_aug, wo_eff, bo_eff, wk_eff, bk_eff, conv_mask)

    return y.reshape(B, C, H, W)


# --------------------------------------------------------------------------------------
# Pure-JAX reference (mirrors the PyTorch graph; independent of the kernel's folding)
# --------------------------------------------------------------------------------------
def _reference(x, params, heads, kv_stride):
    B, C, H, W = x.shape
    inner = params["w1q"].shape[0]
    dim_head = inner // heads

    def dw_bn_pw(xx, wd, g, b, m, v, w1, stride):
        dw = lax.conv_general_dilated(
            xx, wd.reshape(C, 1, 3, 3), (stride, stride), ((1, 1), (1, 1)),
            dimension_numbers=("NCHW", "OIHW", "NCHW"), feature_group_count=C)
        a = g / jnp.sqrt(v + _BN_EPS)
        bn = a[None, :, None, None] * dw + (b - m * a)[None, :, None, None]
        return jnp.einsum("oc,bchw->bohw", w1, bn)

    q = dw_bn_pw(x, params["wdq"], params["q_gamma"], params["q_beta"],
                 params["q_mean"], params["q_var"], params["w1q"], 1)
    kv = dw_bn_pw(x, params["wdkv"], params["kv_gamma"], params["kv_beta"],
                  params["kv_mean"], params["kv_var"], params["w1kv"], kv_stride)
    k, v = kv[:, :inner], kv[:, inner:]

    def rearr(t):  # 'b (h d) x y -> (b h) (x y) d'
        b_, _, h_, w_ = t.shape
        return t.reshape(b_, heads, dim_head, h_ * w_).transpose(0, 1, 3, 2).reshape(
            b_ * heads, h_ * w_, dim_head)

    qs, ks, vs = rearr(q), rearr(k), rearr(v)
    dots = jnp.einsum("bid,bjd->bij", qs, ks) * (dim_head ** -0.5)
    attn = jax.nn.softmax(dots, axis=-1)
    o = jnp.einsum("bij,bjd->bid", attn, vs)
    o = o.reshape(B, heads, H * W, dim_head).transpose(0, 1, 3, 2).reshape(B, inner, H, W)

    z = jnp.einsum("oc,bchw->bohw", params["wo"], o) + params["bo"][None, :, None, None]
    ao = params["o_gamma"] / jnp.sqrt(params["o_var"] + _BN_EPS)
    z = ao[None, :, None, None] * z + (
        params["o_beta"] - params["o_mean"] * ao)[None, :, None, None]
    y = lax.conv_general_dilated(
        z, params["wk"], (1, 1), ((1, 1), (1, 1)),
        dimension_numbers=("NCHW", "OIHW", "NCHW")) + params["bk"][None, :, None, None]
    return y


# --------------------------------------------------------------------------------------
if __name__ == "__main__":
    # Small shapes consistent with the module: dim=4, proj_kernel=3, kv_proj_stride=2,
    # heads=4, dim_head=16 (defaults), spatial 16x16, batch 2.
    B, dim, H, W = 2, 4, 16, 16
    heads, dim_head, kv_stride = 4, 16, 2
    inner = heads * dim_head

    keys = jax.random.split(jax.random.PRNGKey(0), 21)

    def nrm(k, shape, s=0.3):
        return jax.random.normal(k, shape, dtype=jnp.float32) * s

    x = jax.random.normal(keys[0], (B, dim, H, W), dtype=jnp.float32)
    params = dict(
        # to_q: DepthWiseConv2d(dim, inner, 3, padding=1, stride=1, bias=False)
        wdq=nrm(keys[1], (dim, 3, 3)),
        q_gamma=1.0 + nrm(keys[2], (dim,), 0.1),
        q_beta=nrm(keys[3], (dim,), 0.1),
        q_mean=nrm(keys[4], (dim,), 0.1),
        q_var=jax.random.uniform(keys[5], (dim,), minval=0.5, maxval=1.5),
        w1q=nrm(keys[6], (inner, dim)),
        # to_kv: DepthWiseConv2d(dim, 2*inner, 3, padding=1, stride=kv_stride, bias=False)
        wdkv=nrm(keys[7], (dim, 3, 3)),
        kv_gamma=1.0 + nrm(keys[8], (dim,), 0.1),
        kv_beta=nrm(keys[9], (dim,), 0.1),
        kv_mean=nrm(keys[10], (dim,), 0.1),
        kv_var=jax.random.uniform(keys[11], (dim,), minval=0.5, maxval=1.5),
        w1kv=nrm(keys[12], (2 * inner, dim)),
        # to_out: Conv2d(inner, dim, 1) + BatchNorm2d(dim) + KKAN(model) + Dropout(eval)
        wo=nrm(keys[13], (dim, inner)),
        bo=nrm(keys[14], (dim,), 0.1),
        o_gamma=1.0 + nrm(keys[15], (dim,), 0.1),
        o_beta=nrm(keys[16], (dim,), 0.1),
        o_mean=nrm(keys[17], (dim,), 0.1),
        o_var=jax.random.uniform(keys[18], (dim,), minval=0.5, maxval=1.5),
        wk=nrm(keys[19], (dim, dim, 3, 3)),
        bk=nrm(keys[20], (dim,), 0.1),
    )

    out = attention_forward(x, params, heads=heads, kv_stride=kv_stride)
    out = jax.block_until_ready(out)

    ref = jax.block_until_ready(_reference(x, params, heads, kv_stride))
    assert out.shape == (B, dim, H, W), out.shape
    max_err = float(jnp.max(jnp.abs(out - ref)))
    assert jnp.allclose(out, ref, atol=2e-2, rtol=2e-2), f"mismatch vs reference ({max_err})"

    print("KERNEL_OK")
</pallas_src>

<mosaic_0001>
module attributes {stable_mosaic.version = 11 : i64} {
  func.func @_attn_conv_kernel(%arg0: i32, %arg1: memref<1x40x256xf32, #tpu.memory_space<vmem>>, %arg2: memref<1x40x64xf32, #tpu.memory_space<vmem>>, %arg3: memref<64x40xf32, #tpu.memory_space<vmem>>, %arg4: memref<128x40xf32, #tpu.memory_space<vmem>>, %arg5: memref<4x64xf32, #tpu.memory_space<vmem>>, %arg6: memref<4x1xf32, #tpu.memory_space<vmem>>, %arg7: memref<9x4x4xf32, #tpu.memory_space<vmem>>, %arg8: memref<4x1xf32, #tpu.memory_space<vmem>>, %arg9: memref<9x1x256xf32, #tpu.memory_space<vmem>>, %arg10: memref<1x4x256xf32, #tpu.memory_space<vmem>>, %arg11: memref<64x256xf32, #tpu.memory_space<vmem>>, %arg12: memref<4x512xf32, #tpu.memory_space<vmem>>) attributes {dimension_semantics = [#tpu.dimension_semantics<parallel>], iteration_bounds = array<i64: 2>, scalar_prefetch = 0 : i64, scratch_operands = 2 : i64, tpu.core_type = #tpu.core_type<tc>, window_params = [{transform_indices = @transform_0, window_bounds = array<i64: 1, 40, 256>}, {transform_indices = @transform_1, window_bounds = array<i64: 1, 40, 64>}, {pipeline_mode = #tpu.pipeline_mode<synchronous>, transform_indices = @transform_2, window_bounds = array<i64: 64, 40>}, {pipeline_mode = #tpu.pipeline_mode<synchronous>, transform_indices = @transform_3, window_bounds = array<i64: 128, 40>}, {pipeline_mode = #tpu.pipeline_mode<synchronous>, transform_indices = @transform_4, window_bounds = array<i64: 4, 64>}, {pipeline_mode = #tpu.pipeline_mode<synchronous>, transform_indices = @transform_5, window_bounds = array<i64: 4, 1>}, {pipeline_mode = #tpu.pipeline_mode<synchronous>, transform_indices = @transform_6, window_bounds = array<i64: 9, 4, 4>}, {pipeline_mode = #tpu.pipeline_mode<synchronous>, transform_indices = @transform_7, window_bounds = array<i64: 4, 1>}, {pipeline_mode = #tpu.pipeline_mode<synchronous>, transform_indices = @transform_8, window_bounds = array<i64: 9, 1, 256>}, {transform_indices = @transform_9, window_bounds = array<i64: 1, 4, 256>}]} {
    %c0 = arith.constant 0 : index
    %c0_0 = arith.constant 0 : index
    %c0_1 = arith.constant 0 : index
    %0 = vector.load %arg1[%c0, %c0_0, %c0_1] : memref<1x40x256xf32, #tpu.memory_space<vmem>>, vector<1x40x256xf32>
    %1 = vector.shape_cast %0 : vector<1x40x256xf32> to vector<40x256xf32>
    %c0_2 = arith.constant 0 : index
    %c0_3 = arith.constant 0 : index
    %c0_4 = arith.constant 0 : index
    %2 = vector.load %arg2[%c0_2, %c0_3, %c0_4] : memref<1x40x64xf32, #tpu.memory_space<vmem>>, vector<1x40x64xf32>
    %3 = vector.shape_cast %2 : vector<1x40x64xf32> to vector<40x64xf32>
    %c0_5 = arith.constant 0 : index
    %c0_6 = arith.constant 0 : index
    %4 = vector.load %arg3[%c0_5, %c0_6] : memref<64x40xf32, #tpu.memory_space<vmem>>, vector<64x40xf32>
    %cst = arith.constant dense<0.000000e+00> : vector<64x256xf32>
    %5 = tpu.matmul %4, %1, %cst {dimension_numbers = #tpu.dot_dimension_numbers<[1], [0], [0], [1], [0, 0, 1, 1], [], []>} : vector<64x40xf32>, vector<40x256xf32>, vector<64x256xf32> -> vector<64x256xf32>
    %c0_7 = arith.constant 0 : index
    %c0_8 = arith.constant 0 : index
    %6 = vector.load %arg4[%c0_7, %c0_8] : memref<128x40xf32, #tpu.memory_space<vmem>>, vector<128x40xf32>
    %cst_9 = arith.constant dense<0.000000e+00> : vector<128x64xf32>
    %7 = tpu.matmul %6, %3, %cst_9 {dimension_numbers = #tpu.dot_dimension_numbers<[1], [0], [0], [1], [0, 0, 1, 1], [], []>} : vector<128x40xf32>, vector<40x64xf32>, vector<128x64xf32> -> vector<128x64xf32>
    %8 = vector.extract_strided_slice %5 {offsets = [0, 0], sizes = [16, 256], strides = [1, 1]} : vector<64x256xf32> to vector<16x256xf32>
    %9 = vector.extract_strided_slice %7 {offsets = [0, 0], sizes = [16, 64], strides = [1, 1]} : vector<128x64xf32> to vector<16x64xf32>
    %10 = vector.extract_strided_slice %7 {offsets = [64, 0], sizes = [16, 64], strides = [1, 1]} : vector<128x64xf32> to vector<16x64xf32>
    %cst_10 = arith.constant dense<0.000000e+00> : vector<256x64xf32>
    %11 = tpu.matmul %8, %9, %cst_10 {dimension_numbers = #tpu.dot_dimension_numbers<[0], [0], [1], [1], [0, 1, 1, 1], [], []>} : vector<16x256xf32>, vector<16x64xf32>, vector<256x64xf32> -> vector<256x64xf32>
    %cst_11 = arith.constant dense<0xFF800000> : vector<256xf32>
    %12 = vector.multi_reduction <maximumf>, %11, %cst_11 [1] : vector<256x64xf32> to vector<256xf32>
    %13 = vector.shape_cast %12 : vector<256xf32> to vector<256x1xf32>
    %14 = vector.broadcast %13 : vector<256x1xf32> to vector<256x64xf32>
    %15 = arith.subf %11, %14 : vector<256x64xf32>
    %16 = math.exp %15 : vector<256x64xf32>
    %cst_12 = arith.constant dense<0.000000e+00> : vector<256xf32>
    %17 = vector.multi_reduction <add>, %16, %cst_12 [1] : vector<256x64xf32> to vector<256xf32>
    %18 = vector.shape_cast %17 : vector<256xf32> to vector<256x1xf32>
    %19 = tpu.reciprocal %18 {approx = true} : vector<256x1xf32> -> vector<256x1xf32>
    %20 = vector.broadcast %19 : vector<256x1xf32> to vector<256x64xf32>
    %21 = arith.mulf %16, %20 : vector<256x64xf32>
    %cst_13 = arith.constant dense<0.000000e+00> : vector<16x256xf32>
    %22 = tpu.matmul %10, %21, %cst_13 {dimension_numbers = #tpu.dot_dimension_numbers<[1], [1], [0], [0], [0, 0, 1, 0], [], []>} : vector<16x64xf32>, vector<256x64xf32>, vector<16x256xf32> -> vector<16x256xf32>
    %c0_14 = arith.constant 0 : index
    %c0_15 = arith.constant 0 : index
    %23 = vector.load %arg11[%c0_14, %c0_15] : memref<64x256xf32, #tpu.memory_space<vmem>>, vector<16x256xf32>
    tpu.vector_store %arg11[%c0_14, %c0_15], %22 {strides = array<i32>} : memref<64x256xf32, #tpu.memory_space<vmem>>, vector<16x256xf32>,
    %24 = vector.extract_strided_slice %5 {offsets = [16, 0], sizes = [16, 256], strides = [1, 1]} : vector<64x256xf32> to vector<16x256xf32>
    %25 = vector.extract_strided_slice %7 {offsets = [16, 0], sizes = [16, 64], strides = [1, 1]} : vector<128x64xf32> to vector<16x64xf32>
    %26 = vector.extract_strided_slice %7 {offsets = [80, 0], sizes = [16, 64], strides = [1, 1]} : vector<128x64xf32> to vector<16x64xf32>
    %cst_16 = arith.constant dense<0.000000e+00> : vector<256x64xf32>
    %27 = tpu.matmul %24, %25, %cst_16 {dimension_numbers = #tpu.dot_dimension_numbers<[0], [0], [1], [1], [0, 1, 1, 1], [], []>} : vector<16x256xf32>, vector<16x64xf32>, vector<256x64xf32> -> vector<256x64xf32>
    %cst_17 = arith.constant dense<0xFF800000> : vector<256xf32>
    %28 = vector.multi_reduction <maximumf>, %27, %cst_17 [1] : vector<256x64xf32> to vector<256xf32>
    %29 = vector.shape_cast %28 : vector<256xf32> to vector<256x1xf32>
    %30 = vector.broadcast %29 : vector<256x1xf32> to vector<256x64xf32>
    %31 = arith.subf %27, %30 : vector<256x64xf32>
    %32 = math.exp %31 : vector<256x64xf32>
    %cst_18 = arith.constant dense<0.000000e+00> : vector<256xf32>
    %33 = vector.multi_reduction <add>, %32, %cst_18 [1] : vector<256x64xf32> to vector<256xf32>
    %34 = vector.shape_cast %33 : vector<256xf32> to vector<256x1xf32>
    %35 = tpu.reciprocal %34 {approx = true} : vector<256x1xf32> -> vector<256x1xf32>
    %36 = vector.broadcast %35 : vector<256x1xf32> to vector<256x64xf32>
    %37 = arith.mulf %32, %36 : vector<256x64xf32>
    %cst_19 = arith.constant dense<0.000000e+00> : vector<16x256xf32>
    %38 = tpu.matmul %26, %37, %cst_19 {dimension_numbers = #tpu.dot_dimension_numbers<[1], [1], [0], [0], [0, 0, 1, 0], [], []>} : vector<16x64xf32>, vector<256x64xf32>, vector<16x256xf32> -> vector<16x256xf32>
    %c16 = arith.constant 16 : index
    %c0_20 = arith.constant 0 : index
    %39 = vector.load %arg11[%c16, %c0_20] : memref<64x256xf32, #tpu.memory_space<vmem>>, vector<16x256xf32>
    tpu.vector_store %arg11[%c16, %c0_20], %38 {strides = array<i32>} : memref<64x256xf32, #tpu.memory_space<vmem>>, vector<16x256xf32>,
    %40 = vector.extract_strided_slice %5 {offsets = [32, 0], sizes = [16, 256], strides = [1, 1]} : vector<64x256xf32> to vector<16x256xf32>
    %41 = vector.extract_strided_slice %7 {offsets = [32, 0], sizes = [16, 64], strides = [1, 1]} : vector<128x64xf32> to vector<16x64xf32>
    %42 = vector.extract_strided_slice %7 {offsets = [96, 0], sizes = [16, 64], strides = [1, 1]} : vector<128x64xf32> to vector<16x64xf32>
    %cst_21 = arith.constant dense<0.000000e+00> : vector<256x64xf32>
    %43 = tpu.matmul %40, %41, %cst_21 {dimension_numbers = #tpu.dot_dimension_numbers<[0], [0], [1], [1], [0, 1, 1, 1], [], []>} : vector<16x256xf32>, vector<16x64xf32>, vector<256x64xf32> -> vector<256x64xf32>
    %cst_22 = arith.constant dense<0xFF800000> : vector<256xf32>
    %44 = vector.multi_reduction <maximumf>, %43, %cst_22 [1] : vector<256x64xf32> to vector<256xf32>
    %45 = vector.shape_cast %44 : vector<256xf32> to vector<256x1xf32>
    %46 = vector.broadcast %45 : vector<256x1xf32> to vector<256x64xf32>
    %47 = arith.subf %43, %46 : vector<256x64xf32>
    %48 = math.exp %47 : vector<256x64xf32>
    %cst_23 = arith.constant dense<0.000000e+00> : vector<256xf32>
    %49 = vector.multi_reduction <add>, %48, %cst_23 [1] : vector<256x64xf32> to vector<256xf32>
    %50 = vector.shape_cast %49 : vector<256xf32> to vector<256x1xf32>
    %51 = tpu.reciprocal %50 {approx = true} : vector<256x1xf32> -> vector<256x1xf32>
    %52 = vector.broadcast %51 : vector<256x1xf32> to vector<256x64xf32>
    %53 = arith.mulf %48, %52 : vector<256x64xf32>
    %cst_24 = arith.constant dense<0.000000e+00> : vector<16x256xf32>
    %54 = tpu.matmul %42, %53, %cst_24 {dimension_numbers = #tpu.dot_dimension_numbers<[1], [1], [0], [0], [0, 0, 1, 0], [], []>} : vector<16x64xf32>, vector<256x64xf32>, vector<16x256xf32> -> vector<16x256xf32>
    %c32 = arith.constant 32 : index
    %c0_25 = arith.constant 0 : index
    %55 = vector.load %arg11[%c32, %c0_25] : memref<64x256xf32, #tpu.memory_space<vmem>>, vector<16x256xf32>
    tpu.vector_store %arg11[%c32, %c0_25], %54 {strides = array<i32>} : memref<64x256xf32, #tpu.memory_space<vmem>>, vector<16x256xf32>,
    %56 = vector.extract_strided_slice %5 {offsets = [48, 0], sizes = [16, 256], strides = [1, 1]} : vector<64x256xf32> to vector<16x256xf32>
    %57 = vector.extract_strided_slice %7 {offsets = [48, 0], sizes = [16, 64], strides = [1, 1]} : vector<128x64xf32> to vector<16x64xf32>
    %58 = vector.extract_strided_slice %7 {offsets = [112, 0], sizes = [16, 64], strides = [1, 1]} : vector<128x64xf32> to vector<16x64xf32>
    %cst_26 = arith.constant dense<0.000000e+00> : vector<256x64xf32>
    %59 = tpu.matmul %56, %57, %cst_26 {dimension_numbers = #tpu.dot_dimension_numbers<[0], [0], [1], [1], [0, 1, 1, 1], [], []>} : vector<16x256xf32>, vector<16x64xf32>, vector<256x64xf32> -> vector<256x64xf32>
    %cst_27 = arith.constant dense<0xFF800000> : vector<256xf32>
    %60 = vector.multi_reduction <maximumf>, %59, %cst_27 [1] : vector<256x64xf32> to vector<256xf32>
    %61 = vector.shape_cast %60 : vector<256xf32> to vector<256x1xf32>
    %62 = vector.broadcast %61 : vector<256x1xf32> to vector<256x64xf32>
    %63 = arith.subf %59, %62 : vector<256x64xf32>
    %64 = math.exp %63 : vector<256x64xf32>
    %cst_28 = arith.constant dense<0.000000e+00> : vector<256xf32>
    %65 = vector.multi_reduction <add>, %64, %cst_28 [1] : vector<256x64xf32> to vector<256xf32>
    %66 = vector.shape_cast %65 : vector<256xf32> to vector<256x1xf32>
    %67 = tpu.reciprocal %66 {approx = true} : vector<256x1xf32> -> vector<256x1xf32>
    %68 = vector.broadcast %67 : vector<256x1xf32> to vector<256x64xf32>
    %69 = arith.mulf %64, %68 : vector<256x64xf32>
    %cst_29 = arith.constant dense<0.000000e+00> : vector<16x256xf32>
    %70 = tpu.matmul %58, %69, %cst_29 {dimension_numbers = #tpu.dot_dimension_numbers<[1], [1], [0], [0], [0, 0, 1, 0], [], []>} : vector<16x64xf32>, vector<256x64xf32>, vector<16x256xf32> -> vector<16x256xf32>
    %c48 = arith.constant 48 : index
    %c0_30 = arith.constant 0 : index
    %71 = vector.load %arg11[%c48, %c0_30] : memref<64x256xf32, #tpu.memory_space<vmem>>, vector<16x256xf32>
    tpu.vector_store %arg11[%c48, %c0_30], %70 {strides = array<i32>} : memref<64x256xf32, #tpu.memory_space<vmem>>, vector<16x256xf32>,
    %c0_31 = arith.constant 0 : index
    %c0_32 = arith.constant 0 : index
    %72 = vector.load %arg5[%c0_31, %c0_32] : memref<4x64xf32, #tpu.memory_space<vmem>>, vector<4x64xf32>
    %c0_33 = arith.constant 0 : index
    %c0_34 = arith.constant 0 : index
    %73 = vector.load %arg11[%c0_33, %c0_34] : memref<64x256xf32, #tpu.memory_space<vmem>>, vector<64x256xf32>
    %cst_35 = arith.constant dense<0.000000e+00> : vector<4x256xf32>
    %74 = tpu.matmul %72, %73, %cst_35 {dimension_numbers = #tpu.dot_dimension_numbers<[1], [0], [0], [1], [0, 0, 1, 1], [], []>} : vector<4x64xf32>, vector<64x256xf32>, vector<4x256xf32> -> vector<4x256xf32>
    %c0_36 = arith.constant 0 : index
    %c0_37 = arith.constant 0 : index
    %75 = vector.load %arg6[%c0_36, %c0_37] : memref<4x1xf32, #tpu.memory_space<vmem>>, vector<4x1xf32>
    %76 = vector.broadcast %75 : vector<4x1xf32> to vector<4x256xf32>
    %77 = arith.addf %74, %76 : vector<4x256xf32>
    %cst_38 = arith.constant 0.000000e+00 : f32
    %78 = vector.broadcast %cst_38 : f32 to vector<4x128xf32>
    %c0_39 = arith.constant 0 : index
    %c0_40 = arith.constant 0 : index
    %79 = vector.load %arg12[%c0_39, %c0_40] : memref<4x512xf32, #tpu.memory_space<vmem>>, vector<4x128xf32>
    tpu.vector_store %arg12[%c0_39, %c0_40], %78 {strides = array<i32>} : memref<4x512xf32, #tpu.memory_space<vmem>>, vector<4x128xf32>,
    %c0_41 = arith.constant 0 : index
    %c384 = arith.constant 384 : index
    %80 = vector.load %arg12[%c0_41, %c384] : memref<4x512xf32, #tpu.memory_space<vmem>>, vector<4x128xf32>
    tpu.vector_store %arg12[%c0_41, %c384], %78 {strides = array<i32>} : memref<4x512xf32, #tpu.memory_space<vmem>>, vector<4x128xf32>,
    %c0_42 = arith.constant 0 : index
    %c128 = arith.constant 128 : index
    %81 = vector.load %arg12[%c0_42, %c128] : memref<4x512xf32, #tpu.memory_space<vmem>>, vector<4x256xf32>
    tpu.vector_store %arg12[%c0_42, %c128], %77 {strides = array<i32>} : memref<4x512xf32, #tpu.memory_space<vmem>>, vector<4x256xf32>,
    %cst_43 = arith.constant 0.000000e+00 : f32
    %82 = vector.broadcast %cst_43 : f32 to vector<4x256xf32>
    %c0_44 = arith.constant 0 : index
    %c111 = arith.constant 111 : index
    %83 = vector.load %arg12[%c0_44, %c111] : memref<4x512xf32, #tpu.memory_space<vmem>>, vector<4x256xf32>
    %c0_45 = arith.constant 0 : index
    %c0_46 = arith.constant 0 : index
    %c0_47 = arith.constant 0 : index
    %84 = vector.load %arg9[%c0_45, %c0_46, %c0_47] : memref<9x1x256xf32, #tpu.memory_space<vmem>>, vector<1x1x256xf32>
    %85 = vector.shape_cast %84 : vector<1x1x256xf32> to vector<1x256xf32>
    %86 = vector.broadcast %85 : vector<1x256xf32> to vector<4x256xf32>
    %87 = arith.mulf %83, %86 : vector<4x256xf32>
    %c0_48 = arith.constant 0 : index
    %c0_49 = arith.constant 0 : index
    %c0_50 = arith.constant 0 : index
    %88 = vector.load %arg7[%c0_48, %c0_49, %c0_50] : memref<9x4x4xf32, #tpu.memory_space<vmem>>, vector<1x4x4xf32>
    %89 = vector.shape_cast %88 : vector<1x4x4xf32> to vector<4x4xf32>
    %cst_51 = arith.constant dense<0.000000e+00> : vector<4x256xf32>
    %90 = tpu.matmul %89, %87, %cst_51 {dimension_numbers = #tpu.dot_dimension_numbers<[1], [0], [0], [1], [0, 0, 1, 1], [], []>} : vector<4x4xf32>, vector<4x256xf32>, vector<4x256xf32> -> vector<4x256xf32>
    %91 = arith.addf %82, %90 : vector<4x256xf32>
    %c0_52 = arith.constant 0 : index
    %c112 = arith.constant 112 : index
    %92 = vector.load %arg12[%c0_52, %c112] : memref<4x512xf32, #tpu.memory_space<vmem>>, vector<4x256xf32>
    %c1 = arith.constant 1 : index
    %c0_53 = arith.constant 0 : index
    %c0_54 = arith.constant 0 : index
    %93 = vector.load %arg9[%c1, %c0_53, %c0_54] : memref<9x1x256xf32, #tpu.memory_space<vmem>>, vector<1x1x256xf32>
    %94 = vector.shape_cast %93 : vector<1x1x256xf32> to vector<1x256xf32>
    %95 = vector.broadcast %94 : vector<1x256xf32> to vector<4x256xf32>
    %96 = arith.mulf %92, %95 : vector<4x256xf32>
    %c1_55 = arith.constant 1 : index
    %c0_56 = arith.constant 0 : index
    %c0_57 = arith.constant 0 : index
    %97 = vector.load %arg7[%c1_55, %c0_56, %c0_57] : memref<9x4x4xf32, #tpu.memory_space<vmem>>, vector<1x4x4xf32>
    %98 = vector.shape_cast %97 : vector<1x4x4xf32> to vector<4x4xf32>
    %cst_58 = arith.constant dense<0.000000e+00> : vector<4x256xf32>
    %99 = tpu.matmul %98, %96, %cst_58 {dimension_numbers = #tpu.dot_dimension_numbers<[1], [0], [0], [1], [0, 0, 1, 1], [], []>} : vector<4x4xf32>, vector<4x256xf32>, vector<4x256xf32> -> vector<4x256xf32>
    %100 = arith.addf %91, %99 : vector<4x256xf32>
    %c0_59 = arith.constant 0 : index
    %c113 = arith.constant 113 : index
    %101 = vector.load %arg12[%c0_59, %c113] : memref<4x512xf32, #tpu.memory_space<vmem>>, vector<4x256xf32>
    %c2 = arith.constant 2 : index
    %c0_60 = arith.constant 0 : index
    %c0_61 = arith.constant 0 : index
    %102 = vector.load %arg9[%c2, %c0_60, %c0_61] : memref<9x1x256xf32, #tpu.memory_space<vmem>>, vector<1x1x256xf32>
    %103 = vector.shape_cast %102 : vector<1x1x256xf32> to vector<1x256xf32>
    %104 = vector.broadcast %103 : vector<1x256xf32> to vector<4x256xf32>
    %105 = arith.mulf %101, %104 : vector<4x256xf32>
    %c2_62 = arith.constant 2 : index
    %c0_63 = arith.constant 0 : index
    %c0_64 = arith.constant 0 : index
    %106 = vector.load %arg7[%c2_62, %c0_63, %c0_64] : memref<9x4x4xf32, #tpu.memory_space<vmem>>, vector<1x4x4xf32>
    %107 = vector.shape_cast %106 : vector<1x4x4xf32> to vector<4x4xf32>
    %cst_65 = arith.constant dense<0.000000e+00> : vector<4x256xf32>
    %108 = tpu.matmul %107, %105, %cst_65 {dimension_numbers = #tpu.dot_dimension_numbers<[1], [0], [0], [1], [0, 0, 1, 1], [], []>} : vector<4x4xf32>, vector<4x256xf32>, vector<4x256xf32> -> vector<4x256xf32>
    %109 = arith.addf %100, %108 : vector<4x256xf32>
    %c0_66 = arith.constant 0 : index
    %c127 = arith.constant 127 : index
    %110 = vector.load %arg12[%c0_66, %c127] : memref<4x512xf32, #tpu.memory_space<vmem>>, vector<4x256xf32>
    %c3 = arith.constant 3 : index
    %c0_67 = arith.constant 0 : index
    %c0_68 = arith.constant 0 : index
    %111 = vector.load %arg9[%c3, %c0_67, %c0_68] : memref<9x1x256xf32, #tpu.memory_space<vmem>>, vector<1x1x256xf32>
    %112 = vector.shape_cast %111 : vector<1x1x256xf32> to vector<1x256xf32>
    %113 = vector.broadcast %112 : vector<1x256xf32> to vector<4x256xf32>
    %114 = arith.mulf %110, %113 : vector<4x256xf32>
    %c3_69 = arith.constant 3 : index
    %c0_70 = arith.constant 0 : index
    %c0_71 = arith.constant 0 : index
    %115 = vector.load %arg7[%c3_69, %c0_70, %c0_71] : memref<9x4x4xf32, #tpu.memory_space<vmem>>, vector<1x4x4xf32>
    %116 = vector.shape_cast %115 : vector<1x4x4xf32> to vector<4x4xf32>
    %cst_72 = arith.constant dense<0.000000e+00> : vector<4x256xf32>
    %117 = tpu.matmul %116, %114, %cst_72 {dimension_numbers = #tpu.dot_dimension_numbers<[1], [0], [0], [1], [0, 0, 1, 1], [], []>} : vector<4x4xf32>, vector<4x256xf32>, vector<4x256xf32> -> vector<4x256xf32>
    %118 = arith.addf %109, %117 : vector<4x256xf32>
    %c0_73 = arith.constant 0 : index
    %c128_74 = arith.constant 128 : index
    %119 = vector.load %arg12[%c0_73, %c128_74] : memref<4x512xf32, #tpu.memory_space<vmem>>, vector<4x256xf32>
    %c4 = arith.constant 4 : index
    %c0_75 = arith.constant 0 : index
    %c0_76 = arith.constant 0 : index
    %120 = vector.load %arg7[%c4, %c0_75, %c0_76] : memref<9x4x4xf32, #tpu.memory_space<vmem>>, vector<1x4x4xf32>
    %121 = vector.shape_cast %120 : vector<1x4x4xf32> to vector<4x4xf32>
    %cst_77 = arith.constant dense<0.000000e+00> : vector<4x256xf32>
    %122 = tpu.matmul %121, %119, %cst_77 {dimension_numbers = #tpu.dot_dimension_numbers<[1], [0], [0], [1], [0, 0, 1, 1], [], []>} : vector<4x4xf32>, vector<4x256xf32>, vector<4x256xf32> -> vector<4x256xf32>
    %123 = arith.addf %118, %122 : vector<4x256xf32>
    %c0_78 = arith.constant 0 : index
    %c129 = arith.constant 129 : index
    %124 = vector.load %arg12[%c0_78, %c129] : memref<4x512xf32, #tpu.memory_space<vmem>>, vector<4x256xf32>
    %c5 = arith.constant 5 : index
    %c0_79 = arith.constant 0 : index
    %c0_80 = arith.constant 0 : index
    %125 = vector.load %arg9[%c5, %c0_79, %c0_80] : memref<9x1x256xf32, #tpu.memory_space<vmem>>, vector<1x1x256xf32>
    %126 = vector.shape_cast %125 : vector<1x1x256xf32> to vector<1x256xf32>
    %127 = vector.broadcast %126 : vector<1x256xf32> to vector<4x256xf32>
    %128 = arith.mulf %124, %127 : vector<4x256xf32>
    %c5_81 = arith.constant 5 : index
    %c0_82 = arith.constant 0 : index
    %c0_83 = arith.constant 0 : index
    %129 = vector.load %arg7[%c5_81, %c0_82, %c0_83] : memref<9x4x4xf32, #tpu.memory_space<vmem>>, vector<1x4x4xf32>
    %130 = vector.shape_cast %129 : vector<1x4x4xf32> to vector<4x4xf32>
    %cst_84 = arith.constant dense<0.000000e+00> : vector<4x256xf32>
    %131 = tpu.matmul %130, %128, %cst_84 {dimension_numbers = #tpu.dot_dimension_numbers<[1], [0], [0], [1], [0, 0, 1, 1], [], []>} : vector<4x4xf32>, vector<4x256xf32>, vector<4x256xf32> -> vector<4x256xf32>
    %132 = arith.addf %123, %131 : vector<4x256xf32>
    %c0_85 = arith.constant 0 : index
    %c143 = arith.constant 143 : index
    %133 = vector.load %arg12[%c0_85, %c143] : memref<4x512xf32, #tpu.memory_space<vmem>>, vector<4x256xf32>
    %c6 = arith.constant 6 : index
    %c0_86 = arith.constant 0 : index
    %c0_87 = arith.constant 0 : index
    %134 = vector.load %arg9[%c6, %c0_86, %c0_87] : memref<9x1x256xf32, #tpu.memory_space<vmem>>, vector<1x1x256xf32>
    %135 = vector.shape_cast %134 : vector<1x1x256xf32> to vector<1x256xf32>
    %136 = vector.broadcast %135 : vector<1x256xf32> to vector<4x256xf32>
    %137 = arith.mulf %133, %136 : vector<4x256xf32>
    %c6_88 = arith.constant 6 : index
    %c0_89 = arith.constant 0 : index
    %c0_90 = arith.constant 0 : index
    %138 = vector.load %arg7[%c6_88, %c0_89, %c0_90] : memref<9x4x4xf32, #tpu.memory_space<vmem>>, vector<1x4x4xf32>
    %139 = vector.shape_cast %138 : vector<1x4x4xf32> to vector<4x4xf32>
    %cst_91 = arith.constant dense<0.000000e+00> : vector<4x256xf32>
    %140 = tpu.matmul %139, %137, %cst_91 {dimension_numbers = #tpu.dot_dimension_numbers<[1], [0], [0], [1], [0, 0, 1, 1], [], []>} : vector<4x4xf32>, vector<4x256xf32>, vector<4x256xf32> -> vector<4x256xf32>
    %141 = arith.addf %132, %140 : vector<4x256xf32>
    %c0_92 = arith.constant 0 : index
    %c144 = arith.constant 144 : index
    %142 = vector.load %arg12[%c0_92, %c144] : memref<4x512xf32, #tpu.memory_space<vmem>>, vector<4x256xf32>
    %c7 = arith.constant 7 : index
    %c0_93 = arith.constant 0 : index
    %c0_94 = arith.constant 0 : index
    %143 = vector.load %arg9[%c7, %c0_93, %c0_94] : memref<9x1x256xf32, #tpu.memory_space<vmem>>, vector<1x1x256xf32>
    %144 = vector.shape_cast %143 : vector<1x1x256xf32> to vector<1x256xf32>
    %145 = vector.broadcast %144 : vector<1x256xf32> to vector<4x256xf32>
    %146 = arith.mulf %142, %145 : vector<4x256xf32>
    %c7_95 = arith.constant 7 : index
    %c0_96 = arith.constant 0 : index
    %c0_97 = arith.constant 0 : index
    %147 = vector.load %arg7[%c7_95, %c0_96, %c0_97] : memref<9x4x4xf32, #tpu.memory_space<vmem>>, vector<1x4x4xf32>
    %148 = vector.shape_cast %147 : vector<1x4x4xf32> to vector<4x4xf32>
    %cst_98 = arith.constant dense<0.000000e+00> : vector<4x256xf32>
    %149 = tpu.matmul %148, %146, %cst_98 {dimension_numbers = #tpu.dot_dimension_numbers<[1], [0], [0], [1], [0, 0, 1, 1], [], []>} : vector<4x4xf32>, vector<4x256xf32>, vector<4x256xf32> -> vector<4x256xf32>
    %150 = arith.addf %141, %149 : vector<4x256xf32>
    %c0_99 = arith.constant 0 : index
    %c145 = arith.constant 145 : index
    %151 = vector.load %arg12[%c0_99, %c145] : memref<4x512xf32, #tpu.memory_space<vmem>>, vector<4x256xf32>
    %c8 = arith.constant 8 : index
    %c0_100 = arith.constant 0 : index
    %c0_101 = arith.constant 0 : index
    %152 = vector.load %arg9[%c8, %c0_100, %c0_101] : memref<9x1x256xf32, #tpu.memory_space<vmem>>, vector<1x1x256xf32>
    %153 = vector.shape_cast %152 : vector<1x1x256xf32> to vector<1x256xf32>
    %154 = vector.broadcast %153 : vector<1x256xf32> to vector<4x256xf32>
    %155 = arith.mulf %151, %154 : vector<4x256xf32>
    %c8_102 = arith.constant 8 : index
    %c0_103 = arith.constant 0 : index
    %c0_104 = arith.constant 0 : index
    %156 = vector.load %arg7[%c8_102, %c0_103, %c0_104] : memref<9x4x4xf32, #tpu.memory_space<vmem>>, vector<1x4x4xf32>
    %157 = vector.shape_cast %156 : vector<1x4x4xf32> to vector<4x4xf32>
    %cst_105 = arith.constant dense<0.000000e+00> : vector<4x256xf32>
    %158 = tpu.matmul %157, %155, %cst_105 {dimension_numbers = #tpu.dot_dimension_numbers<[1], [0], [0], [1], [0, 0, 1, 1], [], []>} : vector<4x4xf32>, vector<4x256xf32>, vector<4x256xf32> -> vector<4x256xf32>
    %159 = arith.addf %150, %158 : vector<4x256xf32>
    %c0_106 = arith.constant 0 : index
    %c0_107 = arith.constant 0 : index
    %160 = vector.load %arg8[%c0_106, %c0_107] : memref<4x1xf32, #tpu.memory_space<vmem>>, vector<4x1xf32>
    %161 = vector.broadcast %160 : vector<4x1xf32> to vector<4x256xf32>
    %162 = arith.addf %159, %161 : vector<4x256xf32>
    %c0_108 = arith.constant 0 : index
    %c0_109 = arith.constant 0 : index
    %c0_110 = arith.constant 0 : index
    %163 = vector.load %arg10[%c0_108, %c0_109, %c0_110] : memref<1x4x256xf32, #tpu.memory_space<vmem>>, vector<1x4x256xf32>
    %164 = vector.shape_cast %163 : vector<1x4x256xf32> to vector<4x256xf32>
    %165 = vector.shape_cast %162 : vector<4x256xf32> to vector<1x4x256xf32>
    tpu.vector_store %arg10[%c0_108, %c0_109, %c0_110], %165 {strides = array<i32>} : memref<1x4x256xf32, #tpu.memory_space<vmem>>, vector<1x4x256xf32>,
    return
  }
  func.func @transform_0(%arg0: i32) -> (i32, i32, i32) {
    %c0_i32 = arith.constant 0 : i32
    %c0_i32_0 = arith.constant 0 : i32
    %c0_i32_1 = arith.constant 0 : i32
    return %arg0, %c0_i32, %c0_i32_0 : i32, i32, i32
  }
  func.func @transform_1(%arg0: i32) -> (i32, i32, i32) {
    %c0_i32 = arith.constant 0 : i32
    %c0_i32_0 = arith.constant 0 : i32
    %c0_i32_1 = arith.constant 0 : i32
    return %arg0, %c0_i32, %c0_i32_0 : i32, i32, i32
  }
  func.func @transform_2(%arg0: i32) -> (i32, i32) {
    %c0_i32 = arith.constant 0 : i32
    %c0_i32_0 = arith.constant 0 : i32
    %c0_i32_1 = arith.constant 0 : i32
    return %c0_i32, %c0_i32_0 : i32, i32
  }
  func.func @transform_3(%arg0: i32) -> (i32, i32) {
    %c0_i32 = arith.constant 0 : i32
    %c0_i32_0 = arith.constant 0 : i32
    %c0_i32_1 = arith.constant 0 : i32
    return %c0_i32, %c0_i32_0 : i32, i32
  }
  func.func @transform_4(%arg0: i32) -> (i32, i32) {
    %c0_i32 = arith.constant 0 : i32
    %c0_i32_0 = arith.constant 0 : i32
    %c0_i32_1 = arith.constant 0 : i32
    return %c0_i32, %c0_i32_0 : i32, i32
  }
  func.func @transform_5(%arg0: i32) -> (i32, i32) {
    %c0_i32 = arith.constant 0 : i32
    %c0_i32_0 = arith.constant 0 : i32
    %c0_i32_1 = arith.constant 0 : i32
    return %c0_i32, %c0_i32_0 : i32, i32
  }
  func.func @transform_6(%arg0: i32) -> (i32, i32, i32) {
    %c0_i32 = arith.constant 0 : i32
    %c0_i32_0 = arith.constant 0 : i32
    %c0_i32_1 = arith.constant 0 : i32
    %c0_i32_2 = arith.constant 0 : i32
    return %c0_i32, %c0_i32_0, %c0_i32_1 : i32, i32, i32
  }
  func.func @transform_7(%arg0: i32) -> (i32, i32) {
    %c0_i32 = arith.constant 0 : i32
    %c0_i32_0 = arith.constant 0 : i32
    %c0_i32_1 = arith.constant 0 : i32
    return %c0_i32, %c0_i32_0 : i32, i32
  }
  func.func @transform_8(%arg0: i32) -> (i32, i32, i32) {
    %c0_i32 = arith.constant 0 : i32
    %c0_i32_0 = arith.constant 0 : i32
    %c0_i32_1 = arith.constant 0 : i32
    %c0_i32_2 = arith.constant 0 : i32
    return %c0_i32, %c0_i32_0, %c0_i32_1 : i32, i32, i32
  }
  func.func @transform_9(%arg0: i32) -> (i32, i32, i32) {
    %c0_i32 = arith.constant 0 : i32
    %c0_i32_0 = arith.constant 0 : i32
    %c0_i32_1 = arith.constant 0 : i32
    return %arg0, %c0_i32, %c0_i32_0 : i32, i32, i32
  }
}

</mosaic_0001>

<bundles_post_ra>
// kernel: attention_forward.1
= control target key start
LH: loop header
LB: loop body
LE: loop exit
PB: predicated region body
PF: predicated region fallthrough
CT: control target
= control target key end

     0   :  { %s7339_s30 = smov 0   ;;  %s9311_s0 = inlined_call_operand.vmem [shape: f32[2,40,256], index: 0, kind: input, shape index: {}]   ;;  %s9312_s1 = inlined_call_operand.vmem [shape: f32[2,40,64], index: 1, kind: input, shape index: {}]   ;;  %s9313_s2 = inlined_call_operand.vmem [shape: f32[64,40], index: 2, kind: input, shape index: {}]   ;;  %s9314_s3 = inlined_call_operand.vmem [shape: f32[128,40], index: 3, kind: input, shape index: {}]   ;;  %s9315_s4 = inlined_call_operand.vmem [shape: f32[4,64], index: 4, kind: input, shape index: {}]   ;;  %s9316_s5 = inlined_call_operand.vmem [shape: f32[4,1], index: 5, kind: input, shape index: {}]   ;;  %s9317_s6 = inlined_call_operand.vmem [shape: f32[9,4,4], index: 6, kind: input, shape index: {}]   ;;  %s9318_s7 = inlined_call_operand.vmem [shape: f32[4,1], index: 7, kind: input, shape index: {}]   ;;  %s9319_s8 = inlined_call_operand.vmem [shape: f32[9,1,256], index: 8, kind: input, shape index: {}]   ;;  %s9320_s9 = inlined_call_operand.vmem [shape: f32[2,4,256], index: 9, kind: output, shape index: {}]  }
   0x1 LB: > { %s5595_s10 = sadd.s32 4294967295, %s7277_s30   ;;  %p5599_p0 = scmp.ge.s32.totalorder %s7277_s30, 1  ;;  %s7277_s30 = sphi %s7339_s30, %s19_s30  }
   0x2   : > { %p297_p1 = scmp.lt.s32.totalorder %s7277_s30, 3 }
   0x4   : > { %p298_p2 = pnand %p5599_p0, %p297_p1 }
   0x6   : > { %301 = sbr.rel (%p298_p2) target bundleno = 3898 (0xf3a), region = 56 }
   0xd   : > { %p338_p3 = scmp.lt.s32.totalorder %s5595_s10, 1  ;;  %vm376_vm0 = vcmask 326656   ;;  %v514_v0 = vld [vmem:[%s9314_s3] sm:$0xff]  ;;  %v9321_v1 = vmov 0.0   ;;  %v515_v24 = vld [vmem:[%s9314_s3 + $0x8] sm:$0xff]  ;;  %v370_v26 = vld [vmem:[%s9313_s2 + $0x10] sm:$0xff] }
   0xe   : > { %465 = vmatprep.mubr.f32.mxu0 %v9321_v1  ;;  %4502 = vst [vmem:[#allocation3] sm:$0xf] %v9321_v1  ;;  %4503 = vst [vmem:[#allocation3 + $0xc] sm:$0xf] %v9321_v1  ;;  %6249 = vmatprep.mubr.msk.f32.mxu1 %vm376_vm0, %v514_v0  ;;  %v368_v23 = vld [vmem:[%s9313_s2] sm:$0xff]  ;;  %v369_v25 = vld [vmem:[%s9313_s2 + $0x8] sm:$0xff] }
   0xf   : > { %s9338_s10 = smov (!%p338_p3, %s5595_s10), 1  ;;  %v371_v27 = vld [vmem:[%s9313_s2 + $0x18] sm:$0xff]  ;;  %v372_v28 = vld [vmem:[%s9313_s2 + $0x20] sm:$0xff]  ;;  %v373_v29 = vld [vmem:[%s9313_s2 + $0x28] sm:$0xff]  ;;  %vm787_vm1 = vcmask 130048   ;;  %vm1109_vm2 = vcmask 523264  }
  0x10   : > { %s6737_s13 = smul.u32 80, %s9338_s10  ;;  %v374_v30 = vld [vmem:[%s9313_s2 + $0x30] sm:$0xff]  ;;  %v375_v31 = vld [vmem:[%s9313_s2 + $0x38] sm:$0xff]  ;;  %vm7827_vm3 = vmpackc.low %vm1109_vm2, %vm1109_vm2  ;;  %s7281_s18 = smov 112   ;;  %vm4525_vm4 = vcmask 908288   ;;  %vm4547_vm5 = vcmask 916480  }
  0x11   : > { %s6738_s14 = smul.u32 40, %s9338_s10  ;;  %s7282_s21 = smov 111   ;;  %vm4753_vm6 = vcmask 924672   ;;  %vm4870_vm7 = vcmask 1039360   ;;  %vm4887_vm8 = vcmask 7168   ;;  %vm4770_vm9 = vcmask 121856  }
  0x12   : > { %s342_s17 = scalar_lea.vmem %s9311_s0, %s6737_s13  ;;  %s7283_s24 = smov 113   ;;  %vm4655_vm10 = vcmask 138240   ;;  %vm4570_vm11 = vcmask 1043456   ;;  %vm4566_vm12 = vcmask 31744  }
  0x13   : > { %v354_v2 = vld [vmem:[%s342_s17 + $0x8] sm:$0xff]  ;;  %v356_v3 = vld [vmem:[%s342_s17 + $0x18] sm:$0xff]  ;;  %v353_v4 = vld [vmem:[%s342_s17] sm:$0xff]  ;;  %s347_s20 = scalar_lea.vmem %s9312_s1, %s6738_s14  ;;  %s7284_s27 = smov 127  }
  0x14   : > { %v6481_v5 = vpack.c.bf16 %v356_v3, %v354_v2  ;;  %v355_v6 = vld [vmem:[%s342_s17 + $0x10] sm:$0xff]  ;;  %v358_v7 = vld [vmem:[%s342_s17 + $0x28] sm:$0xff]  ;;  %v360_v8 = vld [vmem:[%s342_s17 + $0x38] sm:$0xff]  ;;  %s7285_s11 = smov 1   ;;  %s7286_s14 = smov 15  }
  0x15   : > { %v6483_v9 = vpack.c.bf16 %v355_v6, %v353_v4  ;;  %v6485_v10 = vpack.c.bf16 %v360_v8, %v358_v7  ;;  %v357_v11 = vld [vmem:[%s342_s17 + $0x20] sm:$0xff]  ;;  %v359_v12 = vld [vmem:[%s342_s17 + $0x30] sm:$0xff]  ;;  %v364_v14 = vld [vmem:[%s347_s20 + $0x8] sm:$0xff]  ;;  %s7287_s15 = smov 16   ;;  %s7288_s16 = smov 17  }
  0x16   : > { %6482 = vmatprep.subr.bf16.mxu0 %v6481_v5  ;;  %v363_v13 = vld [vmem:[%s347_s20] sm:$0xff]  ;;  %v6487_v15 = vpack.c.bf16 %v359_v12, %v357_v11  ;;  %v365_v17 = vld [vmem:[%s347_s20 + $0x10] sm:$0xff]  ;;  %v366_v18 = vld [vmem:[%s347_s20 + $0x18] sm:$0xff]  ;;  %s5937_s22 = sshll.u32 %s9338_s10, 3 }
  0x17   : > { %6484 = vmatpush1.bf16.msra.mxu0 %v6483_v9  ;;  %v6489_v16 = vpack.c.bf16 %v364_v14, %v363_v13  ;;  %v6493_v19 = vpack.c.bf16 %v366_v18, %v365_v17  ;;  %v362_v20 = vld [vmem:[%s342_s17 + $0x48] sm:$0xff]  ;;  %v361_v21 = vld [vmem:[%s342_s17 + $0x40] sm:$0xff] }
  0x18   : > { %6486 = vmatprep.subr.bf16.mxu0 %v6485_v10  ;;  %v367_v22 = vld [vmem:[%s347_s20 + $0x20] sm:$0xff] }
  0x19   : > { %6490 = vmatprep.subr.bf16.mxu1 %v6489_v16 }
  0x1a   : > { %6492 = vmatpush3.bf16.msra.mxu1 %v6489_v16 }
  0x1b   : > { %6488 = vmatpush1.bf16.msra.mxu0 %v6487_v15  ;;  %6494 = vmatprep.subr.bf16.mxu1 %v6493_v19 }
  0x1c   : > { %409 = vmatprep.subr.mxu0 %v362_v20 }
  0x1e   : > { %6496 = vmatpush3.bf16.msra.mxu1 %v6493_v19 }
  0x1f   : > { %410 = vmatpush1.msra.mxu0 %v361_v21  ;;  %6247 = vmatprep.subr.mxu1 %v367_v22 }
  0x20   : > { %5604 = vmatmul.mubr.msk.f32.vlgmr.msra.gmra.mrb[0].mxu0 %vm376_vm0, %v368_v23 }
  0x21   : > { %471 = vmatprep.mubr.f32.mxu0 %v9321_v1 }
  0x22   : > { %6248 = vmatpush3.msra.mxu1 %v367_v22 }
  0x23   : > { %6250 = vmatmul.mubr.msk.f32.vlgmr.msra.gmra.mrb[0].mxu1 %vm376_vm0, %v515_v24 }
  0x24   : > { %5605 = vmatmul.mubr.msk.f32.gmra.mrb[2].mxu0 %vm376_vm0, %v369_v25 }
  0x25   : > { %477 = vmatprep.mubr.f32.mxu0 %v9321_v1 }
  0x28   : > { %5606 = vmatmul.mubr.msk.f32.gmra.mrb[4].mxu0 %vm376_vm0, %v370_v26 }
  0x29   : > { %483 = vmatprep.mubr.f32.mxu0 %v9321_v1 }
  0x2c   : > { %5607 = vmatmul.mubr.msk.f32.gmra.mrb[6].mxu0 %vm376_vm0, %v371_v27 }
  0x2d   : > { %489 = vmatprep.mubr.f32.mxu0 %v9321_v1 }
  0x30   : > { %5608 = vmatmul.mubr.msk.f32.gmra.mrb[8].mxu0 %vm376_vm0, %v372_v28 }
  0x31   : > { %495 = vmatprep.mubr.f32.mxu0 %v9321_v1 }
  0x34   : > { %5609 = vmatmul.mubr.msk.f32.gmra.mrb[10].mxu0 %vm376_vm0, %v373_v29 }
  0x35   : > { %501 = vmatprep.mubr.f32.mxu0 %v9321_v1 }
  0x38   : > { %5610 = vmatmul.mubr.msk.f32.gmra.mrb[12].mxu0 %vm376_vm0, %v374_v30 }
  0x39   : > { %507 = vmatprep.mubr.f32.mxu0 %v9321_v1 }
  0x3c   : > { %5611 = vmatmul.mubr.msk.f32.gmra.mrb[14].mxu0 %vm376_vm0, %v375_v31 }
  0xf3   : > { %v467_v32 = vpop.f32.mrb[0].mxu0 }
  0xf4   : > { %723 = vxpose.xlu0.b32.start [1/2] (short) %v467_v32, 128  ;;  %v469_v33 = vpop.f32.mrb[1].mxu0 }
  0xf5   : > { %755 = vxpose.xlu1.b32.start [1/2] (short) %v469_v33, 128 }
  0xf6   : > { %v6251_v34 = vpop.f32.mrb[0].mxu1 }
  0xf7   : > { %v473_v35 = vpop.f32.mrb[2].mxu0  ;;  %v644_v36 = vpop.f32.mrb[1].mxu1 }
  0xf8   : > { %724 = vxpose.xlu0.b32.end [2/2] (short) %v473_v35, 128  ;;  %v475_v37 = vpop.f32.mrb[3].mxu0  ;;  %v6497_v38 = vpack.c.bf16 %v6251_v34, %v644_v36 }
  0xf9   : > { %756 = vxpose.xlu1.b32.end [2/2] (short) %v475_v37, 128 }
  0xfa   : > { %6498 = vmatprep.subr.bf16.mxu0 %v6497_v38 }
  0xfb   : > { %6500 = vmatpush3.bf16.msra.mxu0 %v6497_v38  ;;  %v7407_v39 = vpop.f32.mrb[4].mxu0 }
  0xfc   : > { %v7409_v40 = vpop.f32.mrb[5].mxu0 }
  0xff   : > { %v7411_v41 = vpop.f32.mrb[6].mxu0 }
 0x100   : > { %v7413_v42 = vpop.f32.mrb[7].mxu0 }
 0x103   : > { %v7415_v43 = vpop.f32.mrb[8].mxu0 }
 0x104   : > { %v7417_v44 = vpop.f32.mrb[9].mxu0 }
 0x107   : > { %v7419_v45 = vpop.f32.mrb[10].mxu0 }
 0x108   : > { %v7421_v46 = vpop.f32.mrb[11].mxu0 }
 0x10b   : > { %v7423_v47 = vpop.f32.mrb[12].mxu0 }
 0x10c   : > { %v7425_v48 = vpop.f32.mrb[13].mxu0 }
 0x10f   : > { %v7427_v49 = vpop.f32.mrb[14].mxu0 }
 0x110   : > { %v7429_v50 = vpop.f32.mrb[15].mxu0 }
 0x174   : > { %v739_v51 = vpop.trf.xlu0 }
 0x175   : > { %6277 = vmatprep.mubr.msk.f32.mxu0 %vm787_vm1, %v739_v51  ;;  %v771_v52 = vpop.trf.xlu1 }
 0x178   : > { %v740_v53 = vpop.trf.xlu0 }
 0x179   : > { %6278 = vmatmul.mubr.msk.f32.vlgmr.msra.gmra.mrb[16].mxu0 %vm787_vm1, %v740_v53  ;;  %v772_v54 = vpop.trf.xlu1 }
 0x17c   : > { %v741_v55 = vpop.trf.xlu0 }
 0x17d   : > { %6280 = vmatprep.mubr.msk.f32.mxu0 %vm787_vm1, %v741_v55  ;;  %v773_v57 = vpop.trf.xlu1 }
 0x180   : > { %v742_v56 = vpop.trf.xlu0 }
 0x181   : > { %6281 = vmatmul.mubr.msk.f32.gmra.mrb[18].mxu0 %vm787_vm1, %v742_v56  ;;  %v774_v59 = vpop.trf.xlu1 }
 0x184   : > { %v743_v58 = vpop.trf.xlu0 }
 0x185   : > { %6283 = vmatprep.mubr.msk.f32.mxu0 %vm787_vm1, %v743_v58  ;;  %v775_v62 = vpop.trf.xlu1 }
 0x188   : > { %v744_v60 = vpop.trf.xlu0 }
 0x189   : > { %6284 = vmatmul.mubr.msk.f32.gmra.mrb[20].mxu0 %vm787_vm1, %v744_v60  ;;  %v776_v0 = vpop.trf.xlu1 }
 0x18c   : > { %v745_v61 = vpop.trf.xlu0 }
 0x18d   : > { %6286 = vmatprep.mubr.msk.f32.mxu0 %vm787_vm1, %v745_v61  ;;  %v777_v4 = vpop.trf.xlu1 }
 0x190   : > { %v746_v63 = vpop.trf.xlu0 }
 0x191   : > { %6287 = vmatmul.mubr.msk.f32.gmra.mrb[22].mxu0 %vm787_vm1, %v746_v63  ;;  %v778_v6 = vpop.trf.xlu1 }
 0x194   : > { %v747_v2 = vpop.trf.xlu0 }
 0x195   : > { %6289 = vmatprep.mubr.msk.f32.mxu0 %vm787_vm1, %v747_v2  ;;  %v779_v9 = vpop.trf.xlu1 }
 0x198   : > { %v748_v3 = vpop.trf.xlu0 }
 0x199   : > { %6290 = vmatmul.mubr.msk.f32.gmra.mrb[24].mxu0 %vm787_vm1, %v748_v3  ;;  %v780_v11 = vpop.trf.xlu1 }
 0x19c   : > { %v749_v5 = vpop.trf.xlu0 }
 0x19d   : > { %6292 = vmatprep.mubr.msk.f32.mxu0 %vm787_vm1, %v749_v5  ;;  %v781_v14 = vpop.trf.xlu1 }
 0x1a0   : > { %v750_v7 = vpop.trf.xlu0 }
 0x1a1   : > { %6293 = vmatmul.mubr.msk.f32.gmra.mrb[26].mxu0 %vm787_vm1, %v750_v7  ;;  %v782_v15 = vpop.trf.xlu1 }
 0x1a4   : > { %v751_v8 = vpop.trf.xlu0 }
 0x1a5   : > { %6295 = vmatprep.mubr.msk.f32.mxu0 %vm787_vm1, %v751_v8  ;;  %v783_v16 = vpop.trf.xlu1 }
 0x1a8   : > { %v752_v10 = vpop.trf.xlu0 }
 0x1a9   : > { %6296 = vmatmul.mubr.msk.f32.gmra.mrb[28].mxu0 %vm787_vm1, %v752_v10  ;;  %v784_v17 = vpop.trf.xlu1 }
 0x1ac   : > { %v753_v12 = vpop.trf.xlu0 }
 0x1ad   : > { %6298 = vmatprep.mubr.msk.f32.mxu0 %vm787_vm1, %v753_v12  ;;  %v785_v18 = vpop.trf.xlu1 }
 0x1b0   : > { %v754_v13 = vpop.trf.xlu0 }
 0x1b1   : > { %6299 = vmatmul.mubr.msk.f32.gmra.mrb[30].mxu0 %vm787_vm1, %v754_v13  ;;  %v786_v19 = vpop.trf.xlu1 }
 0x1b2   : > { %6301 = vmatprep.mubr.msk.f32.mxu0 %vm787_vm1, %v771_v52 }
 0x1b5   : > { %6302 = vmatmul.mubr.msk.f32.gmra.mrb[32].mxu0 %vm787_vm1, %v772_v54 }
 0x1b6   : > { %6304 = vmatprep.mubr.msk.f32.mxu0 %vm787_vm1, %v773_v57 }
 0x1b9   : > { %6305 = vmatmul.mubr.msk.f32.gmra.mrb[34].mxu0 %vm787_vm1, %v774_v59 }
 0x1ba   : > { %6307 = vmatprep.mubr.msk.f32.mxu0 %vm787_vm1, %v775_v62 }
 0x1bd   : > { %6308 = vmatmul.mubr.msk.f32.gmra.mrb[36].mxu0 %vm787_vm1, %v776_v0 }
 0x1be   : > { %6310 = vmatprep.mubr.msk.f32.mxu0 %vm787_vm1, %v777_v4 }
 0x1c1   : > { %6311 = vmatmul.mubr.msk.f32.gmra.mrb[38].mxu0 %vm787_vm1, %v778_v6 }
 0x1c2   : > { %6313 = vmatprep.mubr.msk.f32.mxu0 %vm787_vm1, %v779_v9 }
 0x1c5   : > { %6314 = vmatmul.mubr.msk.f32.gmra.mrb[40].mxu0 %vm787_vm1, %v780_v11 }
 0x1c6   : > { %6316 = vmatprep.mubr.msk.f32.mxu0 %vm787_vm1, %v781_v14 }
 0x1c9   : > { %6317 = vmatmul.mubr.msk.f32.gmra.mrb[42].mxu0 %vm787_vm1, %v782_v15 }
 0x1ca   : > { %6319 = vmatprep.mubr.msk.f32.mxu0 %vm787_vm1, %v783_v16 }
 0x1cd   : > { %6320 = vmatmul.mubr.msk.f32.gmra.mrb[44].mxu0 %vm787_vm1, %v784_v17 }
 0x1ce   : > { %6322 = vmatprep.mubr.msk.f32.mxu0 %vm787_vm1, %v785_v18 }
 0x1d1   : > { %6323 = vmatmul.mubr.msk.f32.gmra.mrb[46].mxu0 %vm787_vm1, %v786_v19  ;;  %v516_v19 = vld [vmem:[%s9314_s3 + $0x10] sm:$0xff] }
 0x1d2   : > { %6252 = vmatprep.mubr.msk.f32.mxu1 %vm376_vm0, %v516_v19 }
 0x24c   : > { %v7463_v20 = vpop.f32.mrb[16].mxu0 }
 0x24d   : > { %v7465_v21 = vpop.f32.mrb[17].mxu0  ;;  %v1113_v57 = vsel %vm1109_vm2, %v7463_v20, -inf }
 0x24e   : > { %v1110_v54 = vsel %vm1109_vm2, %v7465_v21, -inf }
 0x254   : > { %v7467_v22 = vpop.f32.mrb[18].mxu0 }
 0x255   : > { %v7469_v23 = vpop.f32.mrb[19].mxu0  ;;  %v1119_v2 = vsel %vm1109_vm2, %v7467_v22, -inf }
 0x256   : > { %v1116_v59 = vsel %vm1109_vm2, %v7469_v23, -inf }
 0x25c   : > { %v7471_v24 = vpop.f32.mrb[20].mxu0 }
 0x25d   : > { %v7473_v25 = vpop.f32.mrb[21].mxu0  ;;  %v1125_v10 = vsel %vm1109_vm2, %v7471_v24, -inf }
 0x25e   : > { %v1122_v4 = vsel %vm1109_vm2, %v7473_v25, -inf }
 0x264   : > { %v7475_v26 = vpop.f32.mrb[22].mxu0 }
 0x265   : > { %v7477_v27 = vpop.f32.mrb[23].mxu0  ;;  %v1131_v17 = vsel %vm1109_vm2, %v7475_v26, -inf }
 0x266   : > { %v1128_v12 = vsel %vm1109_vm2, %v7477_v27, -inf }
 0x26c   : > { %v7479_v28 = vpop.f32.mrb[24].mxu0 }
 0x26d   : > { %v7481_v29 = vpop.f32.mrb[25].mxu0 }
 0x26e   : > { %v1134_v18 = vsel %vm1109_vm2, %v7481_v29, -inf }
 0x274   : > { %v7483_v30 = vpop.f32.mrb[26].mxu0 }
 0x275   : > { %v7485_v31 = vpop.f32.mrb[27].mxu0 }
 0x27c   : > { %v7487_v32 = vpop.f32.mrb[28].mxu0 }
 0x27d   : > { %v7489_v33 = vpop.f32.mrb[29].mxu0 }
 0x284   : > { %v7491_v34 = vpop.f32.mrb[30].mxu0 }
 0x285   : > { %v7493_v35 = vpop.f32.mrb[31].mxu0 }
 0x286   : > { %v1152_v19 = vsel %vm1109_vm2, %v7493_v35, -inf }
 0x288   : > { %v7495_v36 = vpop.f32.mrb[32].mxu0 }
 0x289   : > { %v7497_v37 = vpop.f32.mrb[33].mxu0  ;;  %v1161_v38 = vsel %vm1109_vm2, %v7495_v36, -inf }
 0x28a   : > { %1162 = vmax.xlane.f32.xlu1 %v1161_v38  ;;  %v1158_v51 = vsel %vm1109_vm2, %v7497_v37, -inf  ;;  %v517_v38 = vld [vmem:[%s9314_s3 + $0x18] sm:$0xff] }
 0x28b   : > { %1159 = vmax.xlane.f32.xlu0 %v1158_v51  ;;  %6253 = vmatmul.mubr.msk.f32.gmra.mrb[2].mxu1 %vm376_vm0, %v517_v38 }
 0x28c   : > { %v7503_v52 = vpop.f32.mrb[34].mxu0 }
 0x28d   : > { %v7505_v53 = vpop.f32.mrb[35].mxu0  ;;  %v1167_v62 = vsel %vm1109_vm2, %v7503_v52, -inf }
 0x28e   : > { %1111 = vmax.xlane.f32.xlu1 %v1110_v54  ;;  %v1164_v55 = vsel %vm1109_vm2, %v7505_v53, -inf }
 0x28f   : > { %1165 = vmax.xlane.f32.xlu0 %v1164_v55  ;;  %v518_v55 = vld [vmem:[%s9314_s3 + $0x20] sm:$0xff] }
 0x290   : > { %v7511_v56 = vpop.f32.mrb[36].mxu0  ;;  %6255 = vmatprep.mubr.msk.f32.mxu1 %vm376_vm0, %v518_v55 }
 0x291   : > { %v7515_v58 = vpop.f32.mrb[37].mxu0  ;;  %v1173_v7 = vsel %vm1109_vm2, %v7511_v56, -inf }
 0x292   : > { %1114 = vmax.xlane.f32.xlu1 %v1113_v57  ;;  %v1170_v60 = vsel %vm1109_vm2, %v7515_v58, -inf  ;;  %v519_v57 = vld [vmem:[%s9314_s3 + $0x28] sm:$0xff] }
 0x293   : > { %1117 = vmax.xlane.f32.xlu0 %v1116_v59  ;;  %6256 = vmatmul.mubr.msk.f32.gmra.mrb[4].mxu1 %vm376_vm0, %v519_v57  ;;  %v1137_v59 = vsel %vm1109_vm2, %v7479_v28, -inf }
 0x294   : > { %v7521_v61 = vpop.f32.mrb[38].mxu0 }
 0x295   : > { %v7525_v63 = vpop.f32.mrb[39].mxu0  ;;  %v1179_v15 = vsel %vm1109_vm2, %v7521_v61, -inf }
 0x296   : > { %1168 = vmax.xlane.f32.xlu1 %v1167_v62  ;;  %v1176_v5 = vsel %vm1109_vm2, %v7525_v63, -inf  ;;  %v520_v62 = vld [vmem:[%s9314_s3 + $0x30] sm:$0xff] }
 0x297   : > { %1171 = vmax.xlane.f32.xlu0 %v1170_v60  ;;  %v1140_v60 = vsel %vm1109_vm2, %v7485_v31, -inf  ;;  %6258 = vmatprep.mubr.msk.f32.mxu1 %vm376_vm0, %v520_v62 }
 0x298   : > { %v7527_v0 = vpop.f32.mrb[40].mxu0 }
 0x299   : > { %v7531_v3 = vpop.f32.mrb[41].mxu0  ;;  %v1185_v54 = vsel %vm1109_vm2, %v7527_v0, -inf }
 0x29a   : > { %1120 = vmax.xlane.f32.xlu1 %v1119_v2  ;;  %v1182_v13 = vsel %vm1109_vm2, %v7531_v3, -inf  ;;  %v521_v2 = vld [vmem:[%s9314_s3 + $0x38] sm:$0xff] }
 0x29b   : > { %1123 = vmax.xlane.f32.xlu0 %v1122_v4  ;;  %6259 = vmatmul.mubr.msk.f32.gmra.mrb[6].mxu1 %vm376_vm0, %v521_v2 }
 0x29c   : > { %v7537_v6 = vpop.f32.mrb[42].mxu0 }
 0x29d   : > { %v7541_v8 = vpop.f32.mrb[43].mxu0 }
 0x29e   : > { %1174 = vmax.xlane.f32.xlu1 %v1173_v7  ;;  %v1188_v51 = vsel %vm1109_vm2, %v7541_v8, -inf  ;;  %v522_v7 = vld [vmem:[%s9314_s3 + $0x40] sm:$0xff] }
 0x29f   : > { %1177 = vmax.xlane.f32.xlu0 %v1176_v5  ;;  %v1191_v5 = vsel %vm1109_vm2, %v7537_v6, -inf  ;;  %6261 = vmatprep.mubr.msk.f32.mxu1 %vm376_vm0, %v522_v7 }
 0x2a0   : > { %v7543_v9 = vpop.f32.mrb[44].mxu0 }
 0x2a1   : > { %v7547_v11 = vpop.f32.mrb[45].mxu0 }
 0x2a2   : > { %1126 = vmax.xlane.f32.xlu1 %v1125_v10  ;;  %v1194_v4 = vsel %vm1109_vm2, %v7547_v11, -inf  ;;  %v523_v10 = vld [vmem:[%s9314_s3 + $0x48] sm:$0xff] }
 0x2a3   : > { %1129 = vmax.xlane.f32.xlu0 %v1128_v12  ;;  %6262 = vmatmul.mubr.msk.f32.gmra.mrb[8].mxu1 %vm376_vm0, %v523_v10  ;;  %v1143_v12 = vsel %vm1109_vm2, %v7483_v30, -inf }
 0x2a4   : > { %v7553_v14 = vpop.f32.mrb[46].mxu0 }
 0x2a5   : > { %v7557_v16 = vpop.f32.mrb[47].mxu0  ;;  %v1203_v38 = vsel %vm1109_vm2, %v7553_v14, -inf }
 0x2a6   : > { %1180 = vmax.xlane.f32.xlu1 %v1179_v15  ;;  %v1200_v15 = vsel %vm1109_vm2, %v7557_v16, -inf }
 0x2a7   : > { %1183 = vmax.xlane.f32.xlu0 %v1182_v13  ;;  %v1146_v13 = vsel %vm1109_vm2, %v7489_v33, -inf }
 0x2aa   : > { %1132 = vmax.xlane.f32.xlu1 %v1131_v17  ;;  %v1197_v17 = vsel %vm1109_vm2, %v7543_v9, -inf }
 0x2ab   : > { %1135 = vmax.xlane.f32.xlu0 %v1134_v18  ;;  %v1149_v18 = vsel %vm1109_vm2, %v7487_v32, -inf }
 0x2ae   : > { %1186 = vmax.xlane.f32.xlu1 %v1185_v54 }
 0x2af   : > { %1189 = vmax.xlane.f32.xlu0 %v1188_v51  ;;  %v1155_v51 = vsel %vm1109_vm2, %v7491_v34, -inf }
 0x2b2   : > { %1138 = vmax.xlane.f32.xlu1 %v1137_v59 }
 0x2b3   : > { %1141 = vmax.xlane.f32.xlu0 %v1140_v60 }
 0x2b6   : > { %1192 = vmax.xlane.f32.xlu1 %v1191_v5 }
 0x2b7   : > { %1195 = vmax.xlane.f32.xlu0 %v1194_v4 }
 0x2ba   : > { %1144 = vmax.xlane.f32.xlu1 %v1143_v12 }
 0x2bb   : > { %1147 = vmax.xlane.f32.xlu0 %v1146_v13 }
 0x2be   : > { %1198 = vmax.xlane.f32.xlu1 %v1197_v17 }
 0x2bf   : > { %1201 = vmax.xlane.f32.xlu0 %v1200_v15 }
 0x2c2   : > { %1150 = vmax.xlane.f32.xlu1 %v1149_v18 }
 0x2c3   : > { %1153 = vmax.xlane.f32.xlu0 %v1152_v19 }
 0x2c6   : > { %1204 = vmax.xlane.f32.xlu1 %v1203_v38 }
 0x2ca   : > { %1156 = vmax.xlane.f32.xlu1 %v1155_v51 }
 0x317   : > { %v1163_v54 = vpop.xlane.xlu1 %1162 }
 0x318   : > { %v1223_v55 = vsub.f32 %v7495_v36, %v1163_v54  ;;  %v1160_v57 = vpop.xlane.xlu0 %1159 }
 0x319   : > { %v1222_v59 = vsub.f32 %v7497_v37, %v1160_v57 }
 0x31a   : > { %v1272_v60 = vmul.f32 1.442695, %v1223_v55 }
 0x31b   : > { %v1270_v62 = vmul.f32 1.442695, %v1222_v59  ;;  %v1112_v2 = vpop.xlane.xlu1 %1111 }
 0x31c   : > { %6758 = vpow2.f32 %v1272_v60  ;;  %v1206_v4 = vsub.f32 %v7465_v21, %v1112_v2  ;;  %v1166_v5 = vpop.xlane.xlu0 %1165 }
 0x31d   : > { %6760 = vpow2.f32 %v1270_v62  ;;  %v1224_v7 = vsub.f32 %v7505_v53, %v1166_v5 }
 0x31e   : > { %v1238_v10 = vmul.f32 1.442695, %v1206_v4 }
 0x31f   : > { %v1274_v12 = vmul.f32 1.442695, %v1224_v7  ;;  %v1115_v13 = vpop.xlane.xlu1 %1114 }
 0x320   : > { %6762 = vpow2.f32 %v1238_v10  ;;  %v1207_v15 = vsub.f32 %v7463_v20, %v1115_v13  ;;  %v1118_v36 = vpop.xlane.xlu0 %1117 }
 0x321   : > { %v1208_v17 = vsub.f32 %v7469_v23, %v1118_v36  ;;  %6764 = vpow2.f32 %v1274_v12 }
 0x322   : > { %v1240_v37 = vmul.f32 1.442695, %v1207_v15 }
 0x323   : > { %v1242_v18 = vmul.f32 1.442695, %v1208_v17  ;;  %v1169_v19 = vpop.xlane.xlu1 %1168 }
 0x324   : > { %6766 = vpow2.f32 %v1240_v37  ;;  %v1225_v21 = vsub.f32 %v7503_v52, %v1169_v19  ;;  %v1172_v38 = vpop.xlane.xlu0 %1171 }
 0x325   : > { %v1226_v51 = vsub.f32 %v7515_v58, %v1172_v38  ;;  %6768 = vpow2.f32 %v1242_v18 }
 0x326   : > { %v7631_v53 = vpop.eup %6758  ;;  %v1276_v54 = vmul.f32 1.442695, %v1225_v21 }
 0x327   : > { %v7633_v55 = vpop.eup %6760  ;;  %v1278_v20 = vmul.f32 1.442695, %v1226_v51  ;;  %v1121_v57 = vpop.xlane.xlu1 %1120  ;;  %v1353_v23 = vsel %vm1109_vm2, %v7631_v53, 0.0 }
 0x328   : > { %6770 = vpow2.f32 %v1276_v54  ;;  %v1209_v59 = vsub.f32 %v7467_v22, %v1121_v57  ;;  %v1124_v60 = vpop.xlane.xlu0 %1123  ;;  %1354 = vadd.xlane.f32.xlu1 %v1353_v23  ;;  %v1350_v52 = vsel %vm1109_vm2, %v7633_v55, 0.0 }
 0x329   : > { %v1210_v58 = vsub.f32 %v7473_v25, %v1124_v60  ;;  %1351 = vadd.xlane.f32.xlu0 %v1350_v52  ;;  %6772 = vpow2.f32 %v1278_v20 }
 0x32a   : > { %v7641_v62 = vpop.eup %6762  ;;  %v1244_v2 = vmul.f32 1.442695, %v1209_v59 }
 0x32b   : > { %v1246_v4 = vmul.f32 1.442695, %v1210_v58  ;;  %v1175_v5 = vpop.xlane.xlu1 %1174  ;;  %v1302_v7 = vsel %vm1109_vm2, %v7641_v62, 0.0  ;;  %v7646_v12 = vpop.eup %6764 }
 0x32c   : > { %6774 = vpow2.f32 %v1244_v2  ;;  %v1227_v22 = vsub.f32 %v7511_v56, %v1175_v5  ;;  %v1178_v10 = vpop.xlane.xlu0 %1177  ;;  %v1356_v56 = vsel %vm1109_vm2, %v7646_v12, 0.0 }
 0x32d   : > { %v1228_v13 = vsub.f32 %v7525_v63, %v1178_v10  ;;  %1303 = vadd.xlane.f32.xlu0 %v1302_v7  ;;  %6776 = vpow2.f32 %v1246_v4 }
 0x32e   : > { %v7649_v25 = vpop.eup %6766  ;;  %v1280_v15 = vmul.f32 1.442695, %v1227_v22 }
 0x32f   : > { %v1282_v36 = vmul.f32 1.442695, %v1228_v13  ;;  %v1127_v17 = vpop.xlane.xlu1 %1126  ;;  %v1305_v37 = vsel %vm1109_vm2, %v7649_v25, 0.0  ;;  %v7656_v21 = vpop.eup %6768 }
 0x330   : > { %6778 = vpow2.f32 %v1280_v15  ;;  %v1211_v18 = vsub.f32 %v7471_v24, %v1127_v17  ;;  %v1130_v19 = vpop.xlane.xlu0 %1129  ;;  %1306 = vadd.xlane.f32.xlu1 %v1305_v37  ;;  %v1308_v59 = vsel %vm1109_vm2, %v7656_v21, 0.0 }
 0x331   : > { %v1212_v63 = vsub.f32 %v7477_v27, %v1130_v19  ;;  %1357 = vadd.xlane.f32.xlu0 %v1356_v56  ;;  %6780 = vpow2.f32 %v1282_v36 }
 0x332   : > { %v7659_v38 = vpop.eup %6770  ;;  %v1248_v51 = vmul.f32 1.442695, %v1211_v18 }
 0x333   : > { %v1250_v54 = vmul.f32 1.442695, %v1212_v63  ;;  %v1181_v20 = vpop.xlane.xlu1 %1180  ;;  %v1359_v57 = vsel %vm1109_vm2, %v7659_v38, 0.0  ;;  %v7666_v60 = vpop.eup %6772 }
 0x334   : > { %6782 = vpow2.f32 %v1248_v51  ;;  %v1229_v24 = vsub.f32 %v7521_v61, %v1181_v20  ;;  %v1184_v23 = vpop.xlane.xlu0 %1183  ;;  %1360 = vadd.xlane.f32.xlu1 %v1359_v57  ;;  %v1362_v22 = vsel %vm1109_vm2, %v7666_v60, 0.0 }
 0x335   : > { %v1230_v27 = vsub.f32 %v7531_v3, %v1184_v23  ;;  %1309 = vadd.xlane.f32.xlu0 %v1308_v59  ;;  %6784 = vpow2.f32 %v1250_v54 }
 0x336   : > { %v7669_v52 = vpop.eup %6774  ;;  %v1284_v58 = vmul.f32 1.442695, %v1229_v24 }
 0x337   : > { %v1286_v2 = vmul.f32 1.442695, %v1230_v27  ;;  %v1133_v4 = vpop.xlane.xlu1 %1132  ;;  %v1311_v5 = vsel %vm1109_vm2, %v7669_v52, 0.0  ;;  %v7676_v10 = vpop.eup %6776 }
 0x338   : > { %6786 = vpow2.f32 %v1284_v58  ;;  %v1213_v61 = vsub.f32 %v7475_v26, %v1133_v4  ;;  %v1136_v7 = vpop.xlane.xlu0 %1135  ;;  %1312 = vadd.xlane.f32.xlu1 %v1311_v5  ;;  %v1314_v19 = vsel %vm1109_vm2, %v7676_v10, 0.0 }
 0x339   : > { %v1214_v3 = vsub.f32 %v7481_v29, %v1136_v7  ;;  %1363 = vadd.xlane.f32.xlu0 %v1362_v22  ;;  %6788 = vpow2.f32 %v1286_v2 }
 0x33a   : > { %v7679_v13 = vpop.eup %6778  ;;  %v1252_v15 = vmul.f32 1.442695, %v1213_v61 }
 0x33b   : > { %v1254_v36 = vmul.f32 1.442695, %v1214_v3  ;;  %v1187_v17 = vpop.xlane.xlu1 %1186  ;;  %v1365_v37 = vsel %vm1109_vm2, %v7679_v13, 0.0  ;;  %v7686_v56 = vpop.eup %6780 }
 0x33c   : > { %6790 = vpow2.f32 %v1252_v15  ;;  %v1231_v26 = vsub.f32 %v7527_v0, %v1187_v17  ;;  %v1190_v18 = vpop.xlane.xlu0 %1189  ;;  %1366 = vadd.xlane.f32.xlu1 %v1365_v37  ;;  %v1368_v23 = vsel %vm1109_vm2, %v7686_v56, 0.0 }
 0x33d   : > { %v1232_v29 = vsub.f32 %v7541_v8, %v1190_v18  ;;  %1315 = vadd.xlane.f32.xlu0 %v1314_v19  ;;  %6792 = vpow2.f32 %v1254_v36 }
 0x33e   : > { %v7689_v63 = vpop.eup %6782  ;;  %v1288_v51 = vmul.f32 1.442695, %v1231_v26 }
 0x33f   : > { %v1290_v54 = vmul.f32 1.442695, %v1232_v29  ;;  %v1139_v20 = vpop.xlane.xlu1 %1138  ;;  %v1317_v57 = vsel %vm1109_vm2, %v7689_v63, 0.0  ;;  %v7696_v59 = vpop.eup %6784 }
 0x340   : > { %6794 = vpow2.f32 %v1288_v51  ;;  %v1215_v0 = vsub.f32 %v7479_v28, %v1139_v20  ;;  %v1142_v24 = vpop.xlane.xlu0 %1141  ;;  %1318 = vadd.xlane.f32.xlu1 %v1317_v57  ;;  %v1320_v7 = vsel %vm1109_vm2, %v7696_v59, 0.0 }
 0x341   : > { %v1216_v8 = vsub.f32 %v7485_v31, %v1142_v24  ;;  %1369 = vadd.xlane.f32.xlu0 %v1368_v23  ;;  %6796 = vpow2.f32 %v1290_v54 }
 0x342   : > { %v7699_v27 = vpop.eup %6786  ;;  %v1256_v58 = vmul.f32 1.442695, %v1215_v0 }
 0x343   : > { %v1258_v2 = vmul.f32 1.442695, %v1216_v8  ;;  %v1193_v4 = vpop.xlane.xlu1 %1192  ;;  %v1371_v5 = vsel %vm1109_vm2, %v7699_v27, 0.0  ;;  %v7706_v22 = vpop.eup %6788 }
 0x344   : > { %6798 = vpow2.f32 %v1256_v58  ;;  %v1233_v28 = vsub.f32 %v7537_v6, %v1193_v4  ;;  %v1196_v61 = vpop.xlane.xlu0 %1195  ;;  %1372 = vadd.xlane.f32.xlu1 %v1371_v5  ;;  %v1374_v18 = vsel %vm1109_vm2, %v7706_v22, 0.0 }
 0x345   : > { %v1234_v31 = vsub.f32 %v7547_v11, %v1196_v61  ;;  %1321 = vadd.xlane.f32.xlu0 %v1320_v7  ;;  %6800 = vpow2.f32 %v1258_v2 }
 0x346   : > { %v7709_v3 = vpop.eup %6790  ;;  %v1292_v15 = vmul.f32 1.442695, %v1233_v28 }
 0x347   : > { %v1294_v36 = vmul.f32 1.442695, %v1234_v31  ;;  %v1145_v17 = vpop.xlane.xlu1 %1144  ;;  %v1323_v37 = vsel %vm1109_vm2, %v7709_v3, 0.0  ;;  %v7716_v19 = vpop.eup %6792 }
 0x348   : > { %6802 = vpow2.f32 %v1292_v15  ;;  %v1217_v6 = vsub.f32 %v7483_v30, %v1145_v17  ;;  %v1148_v26 = vpop.xlane.xlu0 %1147  ;;  %1324 = vadd.xlane.f32.xlu1 %v1323_v37  ;;  %v1326_v24 = vsel %vm1109_vm2, %v7716_v19, 0.0 }
 0x349   : > { %v1218_v11 = vsub.f32 %v7489_v33, %v1148_v26  ;;  %1375 = vadd.xlane.f32.xlu0 %v1374_v18  ;;  %6804 = vpow2.f32 %v1294_v36 }
 0x34a   : > { %v7719_v29 = vpop.eup %6794  ;;  %v1260_v51 = vmul.f32 1.442695, %v1217_v6 }
 0x34b   : > { %v1262_v54 = vmul.f32 1.442695, %v1218_v11  ;;  %v1199_v20 = vpop.xlane.xlu1 %1198  ;;  %v1377_v57 = vsel %vm1109_vm2, %v7719_v29, 0.0  ;;  %v7726_v23 = vpop.eup %6796 }
 0x34c   : > { %6806 = vpow2.f32 %v1260_v51  ;;  %v1235_v30 = vsub.f32 %v7543_v9, %v1199_v20  ;;  %1378 = vadd.xlane.f32.xlu1 %v1377_v57  ;;  %v1202_v0 = vpop.xlane.xlu0 %1201  ;;  %v1380_v61 = vsel %vm1109_vm2, %v7726_v23, 0.0 }
 0x34d   : > { %v1236_v33 = vsub.f32 %v7557_v16, %v1202_v0  ;;  %1327 = vadd.xlane.f32.xlu0 %v1326_v24  ;;  %6808 = vpow2.f32 %v1262_v54 }
 0x34e   : > { %v7729_v8 = vpop.eup %6798  ;;  %v1296_v58 = vmul.f32 1.442695, %v1235_v30 }
 0x34f   : > { %v1298_v2 = vmul.f32 1.442695, %v1236_v33  ;;  %v1151_v4 = vpop.xlane.xlu1 %1150  ;;  %v1329_v5 = vsel %vm1109_vm2, %v7729_v8, 0.0  ;;  %v7736_v7 = vpop.eup %6800 }
 0x350   : > { %6810 = vpow2.f32 %v1296_v58  ;;  %v1219_v9 = vsub.f32 %v7487_v32, %v1151_v4  ;;  %1330 = vadd.xlane.f32.xlu1 %v1329_v5  ;;  %v1154_v28 = vpop.xlane.xlu0 %1153  ;;  %v1332_v6 = vsel %vm1109_vm2, %v7736_v7, 0.0 }
 0x351   : > { %v1220_v16 = vsub.f32 %v7493_v35, %v1154_v28  ;;  %1381 = vadd.xlane.f32.xlu0 %v1380_v61  ;;  %6812 = vpow2.f32 %v1298_v2 }
 0x352   : > { %v7739_v31 = vpop.eup %6802  ;;  %v1264_v15 = vmul.f32 1.442695, %v1219_v9 }
 0x353   : > { %v1266_v36 = vmul.f32 1.442695, %v1220_v16  ;;  %v1205_v17 = vpop.xlane.xlu1 %1204  ;;  %v1383_v37 = vsel %vm1109_vm2, %v7739_v31, 0.0  ;;  %v7746_v26 = vpop.eup %6804 }
 0x354   : > { %6814 = vpow2.f32 %v1264_v15  ;;  %v1237_v32 = vsub.f32 %v7553_v14, %v1205_v17  ;;  %1384 = vadd.xlane.f32.xlu1 %v1383_v37  ;;  %v1386_v14 = vsel %vm1109_vm2, %v7746_v26, 0.0  ;;  %v524_v15 = vld [vmem:[%s9314_s3 + $0x50] sm:$0xff]  ;;  %v526_v37 = vld [vmem:[%s9314_s3 + $0x60] sm:$0xff] }
 0x355   : > { %1333 = vadd.xlane.f32.xlu0 %v1332_v6  ;;  %6816 = vpow2.f32 %v1266_v36  ;;  %6264 = vmatprep.mubr.msk.f32.mxu1 %vm376_vm0, %v524_v15  ;;  %v525_v36 = vld [vmem:[%s9314_s3 + $0x58] sm:$0xff]  ;;  %v527_v6 = vld [vmem:[%s9314_s3 + $0x68] sm:$0xff] }
 0x356   : > { %v7748_v35 = vpop.eup %6806  ;;  %v1300_v18 = vmul.f32 1.442695, %v1237_v32  ;;  %6265 = vmatmul.mubr.msk.f32.gmra.mrb[10].mxu1 %vm376_vm0, %v525_v36 }
 0x357   : > { %v1157_v11 = vpop.xlane.xlu1 %1156  ;;  %v1335_v51 = vsel %vm1109_vm2, %v7748_v35, 0.0  ;;  %v7755_v20 = vpop.eup %6808  ;;  %6267 = vmatprep.mubr.msk.f32.mxu1 %vm376_vm0, %v526_v37 }
 0x358   : > { %6818 = vpow2.f32 %v1300_v18  ;;  %v1221_v54 = vsub.f32 %v7491_v34, %v1157_v11  ;;  %1336 = vadd.xlane.f32.xlu1 %v1335_v51  ;;  %v1338_v24 = vsel %vm1109_vm2, %v7755_v20, 0.0  ;;  %v528_v18 = vld [vmem:[%s9314_s3 + $0x70] sm:$0xff] }
 0x359   : > { %1387 = vadd.xlane.f32.xlu0 %v1386_v14  ;;  %v529_v14 = vld [vmem:[%s9314_s3 + $0x78] sm:$0xff] }
 0x35a   : > { %v7757_v57 = vpop.eup %6810  ;;  %v1268_v30 = vmul.f32 1.442695, %v1221_v54  ;;  %6268 = vmatmul.mubr.msk.f32.gmra.mrb[12].mxu1 %vm376_vm0, %v527_v6 }
 0x35b   : > { %v1389_v0 = vsel %vm1109_vm2, %v7757_v57, 0.0  ;;  %v7763_v33 = vpop.eup %6812  ;;  %6270 = vmatprep.mubr.msk.f32.mxu1 %vm376_vm0, %v528_v18 }
 0x35c   : > { %6820 = vpow2.f32 %v1268_v30  ;;  %1390 = vadd.xlane.f32.xlu1 %v1389_v0  ;;  %v1392_v2 = vsel %vm1109_vm2, %v7763_v33, 0.0 }
 0x35d   : > { %1339 = vadd.xlane.f32.xlu0 %v1338_v24 }
 0x35e   : > { %v7765_v34 = vpop.eup %6814  ;;  %v6254_v17 = vpop.f32.mrb[2].mxu1  ;;  %6271 = vmatmul.mubr.msk.f32.gmra.mrb[14].mxu1 %vm376_vm0, %v529_v14 }
 0x35f   : > { %v1341_v58 = vsel %vm1109_vm2, %v7765_v34, 0.0  ;;  %v7771_v4 = vpop.eup %6816  ;;  %v654_v32 = vpop.f32.mrb[3].mxu1 }
 0x360   : > { %1342 = vadd.xlane.f32.xlu1 %v1341_v58  ;;  %v1344_v28 = vsel %vm1109_vm2, %v7771_v4, 0.0  ;;  %v7801_v11 = vpack.c.bf16 %v6254_v17, %v654_v32 }
 0x361   : > { %1393 = vadd.xlane.f32.xlu0 %v1392_v2 }
 0x362   : > { %v7773_v5 = vpop.eup %6818 }
 0x363   : > { %v1395_v9 = vsel %vm1109_vm2, %v7773_v5, 0.0 }
 0x364   : > { %1396 = vadd.xlane.f32.xlu1 %v1395_v9 }
 0x365   : > { %1345 = vadd.xlane.f32.xlu0 %v1344_v28 }
 0x366   : > { %v7779_v61 = vpop.eup %6820  ;;  %v6257_v51 = vpop.f32.mrb[4].mxu1 }
 0x367   : > { %v1347_v16 = vsel %vm1109_vm2, %v7779_v61, 0.0  ;;  %v664_v54 = vpop.f32.mrb[5].mxu1 }
 0x368   : > { %1348 = vadd.xlane.f32.xlu1 %v1347_v16  ;;  %v7808_v30 = vpack.c.bf16 %v6257_v51, %v664_v54 }
 0x36e   : > { %v6260_v0 = vpop.f32.mrb[6].mxu1 }
 0x36f   : > { %v674_v24 = vpop.f32.mrb[7].mxu1 }
 0x370   : > { %v7810_v58 = vpack.c.bf16 %v6260_v0, %v674_v24 }
 0x376   : > { %v7813_v2 = vpop.f32.mrb[8].mxu1 }
 0x377   : > { %v7815_v9 = vpop.f32.mrb[9].mxu1 }
 0x378   : > { %6025 = vmatprep.mubr.msk.f32.mxu1 %vm1109_vm2, %v7815_v9 }
 0x392   : > { %1645 = vxpose.xlu0.b32.start [1/2] (short) %v7407_v39, 128 }
 0x396   : > { %1646 = vxpose.xlu0.b32.end [2/2] (short) %v7411_v41, 128 }
 0x39b   : > { %1677 = vxpose.xlu1.b32.start [1/2] (short) %v7409_v40, 128 }
 0x39f   : > { %1678 = vxpose.xlu1.b32.end [2/2] (short) %v7413_v42, 128 }
 0x3b5   : > { %v1355_v28 = vpop.xlane.xlu1 %1354 }
 0x3b6   : > { %6822 = vrcp.f32 %v1355_v28  ;;  %v1352_v16 = vpop.xlane.xlu0 %1351 }
 0x3b7   : > { %6824 = vrcp.f32 %v1352_v16 }
 0x3ba   : > { %v1304_v15 = vpop.xlane.xlu0 %1303 }
 0x3bb   : > { %6826 = vrcp.f32 %v1304_v15 }
 0x3bd   : > { %v1307_v36 = vpop.xlane.xlu1 %1306 }
 0x3be   : > { %6828 = vrcp.f32 %v1307_v36  ;;  %v1358_v17 = vpop.xlane.xlu0 %1357 }
 0x3bf   : > { %6830 = vrcp.f32 %v1358_v17 }
 0x3c0   : > { %v6823_v37 = vpop.eup %6822 }
 0x3c1   : > { %v6825_v32 = vpop.eup %6824  ;;  %v1361_v6 = vpop.xlane.xlu1 %1360  ;;  %v1447_v39 = vmul.f32 %v6823_v37, %v7631_v53 }
 0x3c2   : > { %6832 = vrcp.f32 %v1361_v6  ;;  %v1310_v41 = vpop.xlane.xlu0 %1309  ;;  %v1446_v40 = vmul.f32 %v6825_v32, %v7633_v55 }
 0x3c3   : > { %6834 = vrcp.f32 %v1310_v41 }
 0x3c4   : > { %v6501_v18 = vpack.c.bf16 %v1447_v39, %v1446_v40 }
 0x3c5   : > { %v1313_v51 = vpop.xlane.xlu1 %1312  ;;  %v6827_v54 = vpop.eup %6826 }
 0x3c6   : > { %6836 = vrcp.f32 %v1313_v51  ;;  %6503 = vmatprep.subr.msk.bf16.mxu1 %vm7827_vm3, %v6501_v18  ;;  %v1364_v14 = vpop.xlane.xlu0 %1363  ;;  %v1430_v0 = vmul.f32 %v6827_v54, %v7641_v62 }
 0x3c7   : > { %6838 = vrcp.f32 %v1364_v14 }
 0x3c8   : > { %v6829_v53 = vpop.eup %6828 }
 0x3c9   : > { %v1431_v55 = vmul.f32 %v6829_v53, %v7649_v25  ;;  %v1367_v24 = vpop.xlane.xlu1 %1366  ;;  %v6831_v28 = vpop.eup %6830 }
 0x3ca   : > { %6840 = vrcp.f32 %v1367_v24  ;;  %v1316_v16 = vpop.xlane.xlu0 %1315  ;;  %v1448_v37 = vmul.f32 %v6831_v28, %v7646_v12 }
 0x3cb   : > { %v6504_v15 = vpack.c.bf16 %v1431_v55, %v1430_v0  ;;  %6842 = vrcp.f32 %v1316_v16 }
 0x3cc   : > { %v6833_v36 = vpop.eup %6832 }
 0x3cd   : > { %v1319_v17 = vpop.xlane.xlu1 %1318  ;;  %6506 = vmatpush3.bf16.xpose.msk.msra.mxu1 %vm7827_vm3, %v6504_v15  ;;  %v1449_v32 = vmul.f32 %v6833_v36, %v7659_v38  ;;  %v6835_v6 = vpop.eup %6834 }
 0x3ce   : > { %6844 = vrcp.f32 %v1319_v17  ;;  %v1370_v62 = vpop.xlane.xlu0 %1369  ;;  %v1432_v41 = vmul.f32 %v6835_v6, %v7656_v21 }
 0x3cf   : > { %v6507_v39 = vpack.c.bf16 %v1449_v32, %v1448_v37  ;;  %6846 = vrcp.f32 %v1370_v62 }
 0x3d0   : > { %v6837_v25 = vpop.eup %6836 }
 0x3d1   : > { %v1433_v40 = vmul.f32 %v6837_v25, %v7669_v52  ;;  %v1373_v18 = vpop.xlane.xlu1 %1372  ;;  %6509 = vmatprep.subr.msk.bf16.mxu1 %vm7827_vm3, %v6507_v39  ;;  %v6839_v51 = vpop.eup %6838 }
 0x3d2   : > { %6848 = vrcp.f32 %v1373_v18  ;;  %v1322_v54 = vpop.xlane.xlu0 %1321  ;;  %v1450_v53 = vmul.f32 %v6839_v51, %v7666_v60 }
 0x3d3   : > { %v6510_v12 = vpack.c.bf16 %v1433_v40, %v1432_v41  ;;  %6850 = vrcp.f32 %v1322_v54 }
 0x3d4   : > { %v6841_v14 = vpop.eup %6840 }
 0x3d5   : > { %v1325_v38 = vpop.xlane.xlu1 %1324  ;;  %6512 = vmatpush3.bf16.xpose.msk.msra.mxu1 %vm7827_vm3, %v6510_v12  ;;  %v1451_v21 = vmul.f32 %v6841_v14, %v7679_v13  ;;  %v6843_v0 = vpop.eup %6842 }
 0x3d6   : > { %6852 = vrcp.f32 %v1325_v38  ;;  %v1376_v52 = vpop.xlane.xlu0 %1375  ;;  %v1434_v28 = vmul.f32 %v6843_v0, %v7676_v10 }
 0x3d7   : > { %v6513_v55 = vpack.c.bf16 %v1451_v21, %v1450_v53  ;;  %6854 = vrcp.f32 %v1376_v52 }
 0x3d8   : > { %v6845_v24 = vpop.eup %6844 }
 0x3d9   : > { %v1435_v16 = vmul.f32 %v6845_v24, %v7689_v63  ;;  %v1379_v15 = vpop.xlane.xlu1 %1378  ;;  %6515 = vmatprep.subr.msk.bf16.mxu1 %vm7827_vm3, %v6513_v55  ;;  %v6847_v36 = vpop.eup %6846 }
 0x3da   : > { %6856 = vrcp.f32 %v1379_v15  ;;  %v1328_v17 = vpop.xlane.xlu0 %1327  ;;  %v1452_v32 = vmul.f32 %v6847_v36, %v7686_v56 }
 0x3db   : > { %v6516_v60 = vpack.c.bf16 %v1435_v16, %v1434_v28  ;;  %6858 = vrcp.f32 %v1328_v17 }
 0x3dc   : > { %v6849_v37 = vpop.eup %6848 }
 0x3dd   : > { %v1331_v13 = vpop.xlane.xlu1 %1330  ;;  %6518 = vmatpush3.bf16.xpose.msk.msra.mxu1 %vm7827_vm3, %v6516_v60  ;;  %v1453_v10 = vmul.f32 %v6849_v37, %v7699_v27  ;;  %v6851_v6 = vpop.eup %6850 }
 0x3de   : > { %6860 = vrcp.f32 %v1331_v13  ;;  %v1382_v63 = vpop.xlane.xlu0 %1381  ;;  %v1436_v25 = vmul.f32 %v6851_v6, %v7696_v59 }
 0x3df   : > { %v6519_v62 = vpack.c.bf16 %v1453_v10, %v1452_v32  ;;  %6862 = vrcp.f32 %v1382_v63 }
 0x3e0   : > { %v6853_v39 = vpop.eup %6852 }
 0x3e1   : > { %v1437_v41 = vmul.f32 %v6853_v39, %v7709_v3  ;;  %v1385_v40 = vpop.xlane.xlu1 %1384  ;;  %6521 = vmatprep.subr.msk.bf16.mxu1 %vm7827_vm3, %v6519_v62  ;;  %v6855_v18 = vpop.eup %6854 }
 0x3e2   : > { %6864 = vrcp.f32 %v1385_v40  ;;  %v1334_v51 = vpop.xlane.xlu0 %1333  ;;  %v1454_v12 = vmul.f32 %v6855_v18, %v7706_v22 }
 0x3e3   : > { %v6522_v56 = vpack.c.bf16 %v1437_v41, %v1436_v25  ;;  %6866 = vrcp.f32 %v1334_v51 }
 0x3e4   : > { %v6857_v54 = vpop.eup %6856 }
 0x3e5   : > { %v1337_v27 = vpop.xlane.xlu1 %1336  ;;  %6524 = vmatpush3.bf16.xpose.msk.msra.mxu1 %vm7827_vm3, %v6522_v56  ;;  %v1455_v59 = vmul.f32 %v6857_v54, %v7719_v29  ;;  %v6859_v14 = vpop.eup %6858 }
 0x3e6   : > { %6868 = vrcp.f32 %v1337_v27  ;;  %v1388_v3 = vpop.xlane.xlu0 %1387  ;;  %v1438_v21 = vmul.f32 %v6859_v14, %v7716_v19 }
 0x3e7   : > { %v6525_v38 = vpack.c.bf16 %v1455_v59, %v1454_v12  ;;  %6870 = vrcp.f32 %v1388_v3 }
 0x3e8   : > { %v6861_v53 = vpop.eup %6860 }
 0x3e9   : > { %v1439_v0 = vmul.f32 %v6861_v53, %v7729_v8  ;;  %v1391_v52 = vpop.xlane.xlu1 %1390  ;;  %6527 = vmatprep.subr.msk.bf16.mxu1 %vm7827_vm3, %v6525_v38  ;;  %v6863_v55 = vpop.eup %6862 }
 0x3ea   : > { %6872 = vrcp.f32 %v1391_v52  ;;  %v1340_v24 = vpop.xlane.xlu0 %1339  ;;  %v1456_v16 = vmul.f32 %v6863_v55, %v7726_v23 }
 0x3eb   : > { %v6528_v22 = vpack.c.bf16 %v1439_v0, %v1438_v21  ;;  %6874 = vrcp.f32 %v1340_v24 }
 0x3ec   : > { %v6865_v28 = vpop.eup %6864 }
 0x3ed   : > { %v1343_v29 = vpop.xlane.xlu1 %1342  ;;  %6530 = vmatpush3.bf16.xpose.msk.msra.mxu1 %vm7827_vm3, %v6528_v22  ;;  %v1457_v19 = vmul.f32 %v6865_v28, %v7739_v31  ;;  %v6867_v15 = vpop.eup %6866 }
 0x3ee   : > { %6876 = vrcp.f32 %v1343_v29  ;;  %v1394_v8 = vpop.xlane.xlu0 %1393  ;;  %v1440_v60 = vmul.f32 %v6867_v15, %v7736_v7 }
 0x3ef   : > { %v6531_v36 = vpack.c.bf16 %v1457_v19, %v1456_v16  ;;  %6878 = vrcp.f32 %v1394_v8 }
 0x3f0   : > { %v6869_v17 = vpop.eup %6868 }
 0x3f1   : > { %v1441_v37 = vmul.f32 %v6869_v17, %v7748_v35  ;;  %v1397_v13 = vpop.xlane.xlu1 %1396  ;;  %6533 = vmatprep.subr.msk.bf16.mxu1 %vm7827_vm3, %v6531_v36  ;;  %v6871_v32 = vpop.eup %6870 }
 0x3f2   : > { %6880 = vrcp.f32 %v1397_v13  ;;  %v1346_v10 = vpop.xlane.xlu0 %1345  ;;  %v1458_v63 = vmul.f32 %v6871_v32, %v7746_v26 }
 0x3f3   : > { %v6534_v23 = vpack.c.bf16 %v1441_v37, %v1440_v60  ;;  %6882 = vrcp.f32 %v1346_v10 }
 0x3f4   : > { %v6873_v6 = vpop.eup %6872 }
 0x3f5   : > { %v1349_v31 = vpop.xlane.xlu1 %1348  ;;  %6536 = vmatpush3.bf16.xpose.msk.msra.mxu1 %vm7827_vm3, %v6534_v23  ;;  %v1459_v7 = vmul.f32 %v6873_v6, %v7757_v57  ;;  %v6875_v62 = vpop.eup %6874 }
 0x3f6   : > { %6884 = vrcp.f32 %v1349_v31  ;;  %v1442_v25 = vmul.f32 %v6875_v62, %v7755_v20 }
 0x3f7   : > { %v6537_v35 = vpack.c.bf16 %v1459_v7, %v1458_v63 }
 0x3f8   : > { %v6877_v39 = vpop.eup %6876 }
 0x3f9   : > { %v1443_v41 = vmul.f32 %v6877_v39, %v7765_v34  ;;  %6539 = vmatprep.subr.msk.bf16.mxu1 %vm7827_vm3, %v6537_v35  ;;  %v6879_v40 = vpop.eup %6878 }
 0x3fa   : > { %v1460_v26 = vmul.f32 %v6879_v40, %v7763_v33 }
 0x3fb   : > { %v6540_v18 = vpack.c.bf16 %v1443_v41, %v1442_v25 }
 0x3fc   : > { %v6881_v51 = vpop.eup %6880 }
 0x3fd   : > { %6542 = vmatpush3.bf16.xpose.msk.msra.mxu1 %vm7827_vm3, %v6540_v18  ;;  %v1461_v57 = vmul.f32 %v6881_v51, %v7773_v5  ;;  %v6883_v56 = vpop.eup %6882 }
 0x3fe   : > { %v1444_v20 = vmul.f32 %v6883_v56, %v7771_v4 }
 0x3ff   : > { %v6543_v54 = vpack.c.bf16 %v1461_v57, %v1460_v26 }
 0x400   : > { %v6885_v27 = vpop.eup %6884 }
 0x401   : > { %v1445_v34 = vmul.f32 %v6885_v27, %v7779_v61  ;;  %6545 = vmatprep.subr.msk.bf16.mxu1 %vm7827_vm3, %v6543_v54 }
 0x403   : > { %v6546_v12 = vpack.c.bf16 %v1445_v34, %v1444_v20 }
 0x405   : > { %6548 = vmatpush3.bf16.xpose.msk.msra.mxu1 %vm7827_vm3, %v6546_v12 }
 0x406   : > { %6550 = vmatprep.subr.bf16.mxu1 %v7801_v11 }
 0x40c   : > { %6026 = vmatmul.mubr.msk.f32.vlgmr.msra.gmra.mrb[16].mxu1 %vm1109_vm2, %v7815_v9 }
 0x40d   : > { %6027 = vmatprep.mubr.msk.f32.mxu1 %vm1109_vm2, %v7813_v2  ;;  %6552 = vmatpush3.bf16.msra.mxu1 %v7801_v11 }
 0x410   : > { %6028 = vmatmul.mubr.msk.f32.gmra.mrb[18].mxu1 %vm1109_vm2, %v7813_v2 }
 0x412   : > { %v1661_v33 = vpop.trf.xlu0 }
 0x413   : > { %6329 = vmatprep.mubr.msk.f32.mxu1 %vm787_vm1, %v1661_v33 }
 0x416   : > { %v1662_v4 = vpop.trf.xlu0 }
 0x417   : > { %6330 = vmatmul.mubr.msk.f32.vlgmr.msra.gmra.mrb[20].mxu1 %vm787_vm1, %v1662_v4 }
 0x41a   : > { %v1663_v5 = vpop.trf.xlu0 }
 0x41b   : > { %6332 = vmatprep.mubr.msk.f32.mxu1 %vm787_vm1, %v1663_v5  ;;  %v1693_v61 = vpop.trf.xlu1 }
 0x41e   : > { %v1664_v59 = vpop.trf.xlu0 }
 0x41f   : > { %6333 = vmatmul.mubr.msk.f32.gmra.mrb[22].mxu1 %vm787_vm1, %v1664_v59  ;;  %v1694_v9 = vpop.trf.xlu1 }
 0x422   : > { %v1665_v14 = vpop.trf.xlu0 }
 0x423   : > { %6335 = vmatprep.mubr.msk.f32.mxu1 %vm787_vm1, %v1665_v14  ;;  %v1695_v11 = vpop.trf.xlu1 }
 0x426   : > { %v1666_v3 = vpop.trf.xlu0 }
 0x427   : > { %6336 = vmatmul.mubr.msk.f32.gmra.mrb[24].mxu1 %vm787_vm1, %v1666_v3  ;;  %v1696_v2 = vpop.trf.xlu1 }
 0x429   : > { %v7920_v13 = vpop.f32.mrb[10].mxu1 }
 0x42a   : > { %v1667_v38 = vpop.trf.xlu0  ;;  %v7922_v32 = vpop.f32.mrb[11].mxu1 }
 0x42b   : > { %6338 = vmatprep.mubr.msk.f32.mxu1 %vm787_vm1, %v1667_v38  ;;  %v1697_v53 = vpop.trf.xlu1  ;;  %6095 = vmatprep.mubr.msk.f32.mxu0 %vm1109_vm2, %v7922_v32 }
 0x42d   : > { %v7928_v10 = vpop.f32.mrb[12].mxu1 }
 0x42e   : > { %v1668_v21 = vpop.trf.xlu0  ;;  %v7930_v6 = vpop.f32.mrb[13].mxu1 }
 0x42f   : > { %6339 = vmatmul.mubr.msk.f32.gmra.mrb[26].mxu1 %vm787_vm1, %v1668_v21  ;;  %v1698_v0 = vpop.trf.xlu1 }
 0x431   : > { %v7934_v31 = vpop.f32.mrb[14].mxu1 }
 0x432   : > { %v1669_v52 = vpop.trf.xlu0  ;;  %9328 = vst [vmem:[#allocation4_spill] sm:$0xff] %v7934_v31  ;;  %v7936_v63 = vpop.f32.mrb[15].mxu1 }
 0x433   : > { %6341 = vmatprep.mubr.msk.f32.mxu1 %vm787_vm1, %v1669_v52  ;;  %v1699_v24 = vpop.trf.xlu1 }
 0x436   : > { %v1670_v55 = vpop.trf.xlu0 }
 0x437   : > { %6342 = vmatmul.mubr.msk.f32.gmra.mrb[28].mxu1 %vm787_vm1, %v1670_v55  ;;  %v1700_v28 = vpop.trf.xlu1 }
 0x43a   : > { %v1671_v22 = vpop.trf.xlu0 }
 0x43b   : > { %6344 = vmatprep.mubr.msk.f32.mxu1 %vm787_vm1, %v1671_v22  ;;  %v1701_v19 = vpop.trf.xlu1 }
 0x43e   : > { %v1672_v29 = vpop.trf.xlu0 }
 0x43f   : > { %6345 = vmatmul.mubr.msk.f32.gmra.mrb[30].mxu1 %vm787_vm1, %v1672_v29  ;;  %v1702_v8 = vpop.trf.xlu1 }
 0x442   : > { %v1673_v16 = vpop.trf.xlu0 }
 0x443   : > { %6347 = vmatprep.mubr.msk.f32.mxu1 %vm787_vm1, %v1673_v16  ;;  %v1703_v60 = vpop.trf.xlu1 }
 0x446   : > { %v1674_v15 = vpop.trf.xlu0 }
 0x447   : > { %6348 = vmatmul.mubr.msk.f32.gmra.mrb[32].mxu1 %vm787_vm1, %v1674_v15  ;;  %v1704_v37 = vpop.trf.xlu1 }
 0x44a   : > { %v1675_v36 = vpop.trf.xlu0 }
 0x44b   : > { %6350 = vmatprep.mubr.msk.f32.mxu1 %vm787_vm1, %v1675_v36  ;;  %v1705_v23 = vpop.trf.xlu1 }
 0x44e   : > { %v1676_v17 = vpop.trf.xlu0 }
 0x44f   : > { %6351 = vmatmul.mubr.msk.f32.gmra.mrb[34].mxu1 %vm787_vm1, %v1676_v17  ;;  %v1706_v7 = vpop.trf.xlu1 }
 0x450   : > { %6353 = vmatprep.mubr.msk.f32.mxu1 %vm787_vm1, %v1693_v61 }
 0x453   : > { %6354 = vmatmul.mubr.msk.f32.gmra.mrb[36].mxu1 %vm787_vm1, %v1694_v9  ;;  %v1707_v62 = vpop.trf.xlu1 }
 0x454   : > { %6356 = vmatprep.mubr.msk.f32.mxu1 %vm787_vm1, %v1695_v11 }
 0x457   : > { %6357 = vmatmul.mubr.msk.f32.gmra.mrb[38].mxu1 %vm787_vm1, %v1696_v2  ;;  %v1708_v35 = vpop.trf.xlu1 }
 0x458   : > { %6359 = vmatprep.mubr.msk.f32.mxu1 %vm787_vm1, %v1697_v53 }
 0x45b   : > { %6360 = vmatmul.mubr.msk.f32.gmra.mrb[40].mxu1 %vm787_vm1, %v1698_v0 }
 0x45c   : > { %6362 = vmatprep.mubr.msk.f32.mxu1 %vm787_vm1, %v1699_v24 }
 0x45f   : > { %6363 = vmatmul.mubr.msk.f32.gmra.mrb[42].mxu1 %vm787_vm1, %v1700_v28 }
 0x460   : > { %6365 = vmatprep.mubr.msk.f32.mxu1 %vm787_vm1, %v1701_v19 }
 0x463   : > { %6366 = vmatmul.mubr.msk.f32.gmra.mrb[44].mxu1 %vm787_vm1, %v1702_v8 }
 0x464   : > { %6368 = vmatprep.mubr.msk.f32.mxu1 %vm787_vm1, %v1703_v60 }
 0x467   : > { %6369 = vmatmul.mubr.msk.f32.gmra.mrb[46].mxu1 %vm787_vm1, %v1704_v37 }
 0x468   : > { %6371 = vmatprep.mubr.msk.f32.mxu1 %vm787_vm1, %v1705_v23 }
 0x46b   : > { %6372 = vmatmul.mubr.msk.f32.gmra.mrb[48].mxu1 %vm787_vm1, %v1706_v7 }
 0x46c   : > { %6374 = vmatprep.mubr.msk.f32.mxu1 %vm787_vm1, %v1707_v62 }
 0x46f   : > { %6375 = vmatmul.mubr.msk.f32.gmra.mrb[50].mxu1 %vm787_vm1, %v1708_v35 }
 0x470   : > { %6165 = vmatprep.mubr.msk.f32.mxu1 %vm1109_vm2, %v7930_v6 }
 0x4df   : > { %v7949_v39 = vpop.f32.mrb[16].mxu1 }
 0x4e0   : > { %9329 = vst [vmem:[#allocation5_spill] sm:$0xff] %v7949_v39  ;;  %v7951_v25 = vpop.f32.mrb[17].mxu1 }
 0x4e3   : > { %v7953_v41 = vpop.f32.mrb[18].mxu1 }
 0x4e4   : > { %9330 = vst [vmem:[#allocation6_spill] sm:$0xff] %v7953_v41  ;;  %v7957_v18 = vpop.f32.mrb[19].mxu1 }
 0x4ea   : > { %v7961_v26 = vpop.f32.mrb[20].mxu1 }
 0x4eb   : > { %v7963_v57 = vpop.f32.mrb[21].mxu1  ;;  %v2033_v0 = vsel %vm1109_vm2, %v7961_v26, -inf }
 0x4ec   : > { %v2030_v55 = vsel %vm1109_vm2, %v7963_v57, -inf }
 0x4f2   : > { %v7965_v56 = vpop.f32.mrb[22].mxu1 }
 0x4f3   : > { %v7967_v54 = vpop.f32.mrb[23].mxu1  ;;  %v2039_v19 = vsel %vm1109_vm2, %v7965_v56, -inf }
 0x4f4   : > { %v2036_v8 = vsel %vm1109_vm2, %v7967_v54, -inf }
 0x4fa   : > { %v7969_v27 = vpop.f32.mrb[24].mxu1 }
 0x4fb   : > { %v7971_v20 = vpop.f32.mrb[25].mxu1  ;;  %v2045_v7 = vsel %vm1109_vm2, %v7969_v27, -inf }
 0x4fc   : > { %v2042_v35 = vsel %vm1109_vm2, %v7971_v20, -inf }
 0x502   : > { %v7973_v34 = vpop.f32.mrb[26].mxu1 }
 0x503   : > { %v7975_v12 = vpop.f32.mrb[27].mxu1 }
 0x50a   : > { %v7977_v33 = vpop.f32.mrb[28].mxu1 }
 0x50b   : > { %v7979_v4 = vpop.f32.mrb[29].mxu1 }
 0x512   : > { %v7981_v5 = vpop.f32.mrb[30].mxu1 }
 0x513   : > { %v7983_v61 = vpop.f32.mrb[31].mxu1 }
 0x51a   : > { %v7985_v59 = vpop.f32.mrb[32].mxu1 }
 0x51b   : > { %v7987_v9 = vpop.f32.mrb[33].mxu1 }
 0x522   : > { %v7989_v14 = vpop.f32.mrb[34].mxu1 }
 0x523   : > { %v7991_v11 = vpop.f32.mrb[35].mxu1 }
 0x526   : > { %v7993_v3 = vpop.f32.mrb[36].mxu1 }
 0x527   : > { %v7995_v2 = vpop.f32.mrb[37].mxu1  ;;  %v2081_v38 = vsel %vm1109_vm2, %v7993_v3, -inf }
 0x528   : > { %2082 = vmax.xlane.f32.xlu1 %v2081_v38  ;;  %v2078_v53 = vsel %vm1109_vm2, %v7995_v2, -inf }
 0x529   : > { %2079 = vmax.xlane.f32.xlu0 %v2078_v53 }
 0x52a   : > { %v8001_v21 = vpop.f32.mrb[38].mxu1 }
 0x52b   : > { %v8005_v52 = vpop.f32.mrb[39].mxu1  ;;  %v2087_v24 = vsel %vm1109_vm2, %v8001_v21, -inf }
 0x52c   : > { %2034 = vmax.xlane.f32.xlu1 %v2033_v0  ;;  %v2084_v22 = vsel %vm1109_vm2, %v8005_v52, -inf }
 0x52d   : > { %2031 = vmax.xlane.f32.xlu0 %v2030_v55 }
 0x52e   : > { %v8013_v28 = vpop.f32.mrb[40].mxu1 }
 0x52f   : > { %v8015_v29 = vpop.f32.mrb[41].mxu1  ;;  %v2093_v36 = vsel %vm1109_vm2, %v8013_v28, -inf }
 0x530   : > { %2088 = vmax.xlane.f32.xlu1 %v2087_v24  ;;  %v2090_v17 = vsel %vm1109_vm2, %v8015_v29, -inf }
 0x531   : > { %2085 = vmax.xlane.f32.xlu0 %v2084_v22  ;;  %v2051_v22 = vsel %vm1109_vm2, %v7973_v34, -inf }
 0x532   : > { %v8017_v16 = vpop.f32.mrb[42].mxu1 }
 0x533   : > { %v8021_v15 = vpop.f32.mrb[43].mxu1  ;;  %v2099_v38 = vsel %vm1109_vm2, %v8017_v16, -inf }
 0x534   : > { %2040 = vmax.xlane.f32.xlu1 %v2039_v19  ;;  %v2096_v53 = vsel %vm1109_vm2, %v8021_v15, -inf }
 0x535   : > { %2037 = vmax.xlane.f32.xlu0 %v2036_v8  ;;  %v2048_v8 = vsel %vm1109_vm2, %v7975_v12, -inf }
 0x536   : > { %v8029_v60 = vpop.f32.mrb[44].mxu1 }
 0x537   : > { %v8031_v37 = vpop.f32.mrb[45].mxu1 }
 0x538   : > { %2094 = vmax.xlane.f32.xlu1 %v2093_v36  ;;  %v2105_v36 = vsel %vm1109_vm2, %v8029_v60, -inf }
 0x539   : > { %2091 = vmax.xlane.f32.xlu0 %v2090_v17  ;;  %v2102_v17 = vsel %vm1109_vm2, %v8031_v37, -inf }
 0x53a   : > { %v8033_v23 = vpop.f32.mrb[46].mxu1 }
 0x53b   : > { %v8037_v62 = vpop.f32.mrb[47].mxu1 }
 0x53c   : > { %2046 = vmax.xlane.f32.xlu1 %v2045_v7  ;;  %v2057_v7 = vsel %vm1109_vm2, %v7977_v33, -inf }
 0x53d   : > { %2043 = vmax.xlane.f32.xlu0 %v2042_v35  ;;  %v2054_v35 = vsel %vm1109_vm2, %v7979_v4, -inf }
 0x53e   : > { %v8045_v0 = vpop.f32.mrb[48].mxu1 }
 0x53f   : > { %v8047_v55 = vpop.f32.mrb[49].mxu1 }
 0x540   : > { %2100 = vmax.xlane.f32.xlu1 %v2099_v38  ;;  %v2111_v38 = vsel %vm1109_vm2, %v8033_v23, -inf }
 0x541   : > { %2097 = vmax.xlane.f32.xlu0 %v2096_v53  ;;  %v2108_v53 = vsel %vm1109_vm2, %v8037_v62, -inf }
 0x542   : > { %v8049_v24 = vpop.f32.mrb[50].mxu1 }
 0x543   : > { %v8053_v19 = vpop.f32.mrb[51].mxu1 }
 0x544   : > { %2052 = vmax.xlane.f32.xlu1 %v2051_v22  ;;  %v2063_v22 = vsel %vm1109_vm2, %v7981_v5, -inf }
 0x545   : > { %2049 = vmax.xlane.f32.xlu0 %v2048_v8  ;;  %v2060_v8 = vsel %vm1109_vm2, %v7983_v61, -inf }
 0x548   : > { %2106 = vmax.xlane.f32.xlu1 %v2105_v36  ;;  %v2117_v36 = vsel %vm1109_vm2, %v8045_v0, -inf }
 0x549   : > { %2103 = vmax.xlane.f32.xlu0 %v2102_v17  ;;  %v2114_v17 = vsel %vm1109_vm2, %v8047_v55, -inf }
 0x54c   : > { %2058 = vmax.xlane.f32.xlu1 %v2057_v7  ;;  %v2069_v7 = vsel %vm1109_vm2, %v7985_v59, -inf }
 0x54d   : > { %2055 = vmax.xlane.f32.xlu0 %v2054_v35  ;;  %v2066_v35 = vsel %vm1109_vm2, %v7987_v9, -inf }
 0x550   : > { %2112 = vmax.xlane.f32.xlu1 %v2111_v38  ;;  %v2123_v38 = vsel %vm1109_vm2, %v8049_v24, -inf }
 0x551   : > { %2109 = vmax.xlane.f32.xlu0 %v2108_v53  ;;  %v2120_v53 = vsel %vm1109_vm2, %v8053_v19, -inf }
 0x554   : > { %2064 = vmax.xlane.f32.xlu1 %v2063_v22  ;;  %v2075_v22 = vsel %vm1109_vm2, %v7989_v14, -inf }
 0x555   : > { %2061 = vmax.xlane.f32.xlu0 %v2060_v8  ;;  %v2072_v8 = vsel %vm1109_vm2, %v7991_v11, -inf }
 0x558   : > { %2118 = vmax.xlane.f32.xlu1 %v2117_v36 }
 0x559   : > { %2115 = vmax.xlane.f32.xlu0 %v2114_v17 }
 0x55c   : > { %2070 = vmax.xlane.f32.xlu1 %v2069_v7 }
 0x55d   : > { %2067 = vmax.xlane.f32.xlu0 %v2066_v35 }
 0x560   : > { %2124 = vmax.xlane.f32.xlu1 %v2123_v38 }
 0x561   : > { %2121 = vmax.xlane.f32.xlu0 %v2120_v53 }
 0x564   : > { %2076 = vmax.xlane.f32.xlu1 %v2075_v22 }
 0x565   : > { %2073 = vmax.xlane.f32.xlu0 %v2072_v8 }
 0x5b5   : > { %v2083_v36 = vpop.xlane.xlu1 %2082 }
 0x5b6   : > { %v2143_v17 = vsub.f32 %v7993_v3, %v2083_v36  ;;  %v2080_v7 = vpop.xlane.xlu0 %2079 }
 0x5b7   : > { %v2142_v35 = vsub.f32 %v7995_v2, %v2080_v7 }
 0x5b8   : > { %v2192_v1 = vmul.f32 1.442695, %v2143_v17 }
 0x5b9   : > { %v2190_v40 = vmul.f32 1.442695, %v2142_v35  ;;  %v2035_v51 = vpop.xlane.xlu1 %2034 }
 0x5ba   : > { %6886 = vpow2.f32 %v2192_v1  ;;  %v2127_v38 = vsub.f32 %v7961_v26, %v2035_v51  ;;  %v2032_v53 = vpop.xlane.xlu0 %2031 }
 0x5bb   : > { %6888 = vpow2.f32 %v2190_v40  ;;  %v2126_v22 = vsub.f32 %v7963_v57, %v2032_v53 }
 0x5bc   : > { %v2160_v31 = vmul.f32 1.442695, %v2127_v38 }
 0x5bd   : > { %v2158_v39 = vmul.f32 1.442695, %v2126_v22  ;;  %v2089_v41 = vpop.xlane.xlu1 %2088 }
 0x5be   : > { %6890 = vpow2.f32 %v2160_v31  ;;  %v2145_v8 = vsub.f32 %v8001_v21, %v2089_v41  ;;  %v2086_v3 = vpop.xlane.xlu0 %2085 }
 0x5bf   : > { %6892 = vpow2.f32 %v2158_v39  ;;  %v2144_v2 = vsub.f32 %v8005_v52, %v2086_v3 }
 0x5c0   : > { %v2196_v36 = vmul.f32 1.442695, %v2145_v8 }
 0x5c1   : > { %v2194_v17 = vmul.f32 1.442695, %v2144_v2  ;;  %v2041_v7 = vpop.xlane.xlu1 %2040 }
 0x5c2   : > { %6894 = vpow2.f32 %v2196_v36  ;;  %v2129_v1 = vsub.f32 %v7965_v56, %v2041_v7  ;;  %v2038_v51 = vpop.xlane.xlu0 %2037 }
 0x5c3   : > { %6896 = vpow2.f32 %v2194_v17  ;;  %v2128_v40 = vsub.f32 %v7967_v54, %v2038_v51 }
 0x5c4   : > { %v8097_v26 = vpop.eup %6886  ;;  %v2164_v57 = vmul.f32 1.442695, %v2129_v1 }
 0x5c5   : > { %v8099_v31 = vpop.eup %6888  ;;  %v2162_v41 = vmul.f32 1.442695, %v2128_v40  ;;  %v2095_v21 = vpop.xlane.xlu1 %2094  ;;  %v2273_v39 = vsel %vm1109_vm2, %v8097_v26, 0.0 }
 0x5c6   : > { %6898 = vpow2.f32 %v2164_v57  ;;  %v2147_v52 = vsub.f32 %v8013_v28, %v2095_v21  ;;  %v2092_v35 = vpop.xlane.xlu0 %2091  ;;  %2274 = vadd.xlane.f32.xlu1 %v2273_v39  ;;  %v2270_v56 = vsel %vm1109_vm2, %v8099_v31, 0.0 }
 0x5c7   : > { %6900 = vpow2.f32 %v2162_v41  ;;  %v2146_v54 = vsub.f32 %v8015_v29, %v2092_v35  ;;  %2271 = vadd.xlane.f32.xlu0 %v2270_v56 }
 0x5c8   : > { %v8107_v38 = vpop.eup %6890  ;;  %v2200_v53 = vmul.f32 1.442695, %v2147_v52 }
 0x5c9   : > { %v8109_v22 = vpop.eup %6892  ;;  %v2198_v8 = vmul.f32 1.442695, %v2146_v54  ;;  %v2047_v3 = vpop.xlane.xlu1 %2046  ;;  %v2225_v2 = vsel %vm1109_vm2, %v8107_v38, 0.0 }
 0x5ca   : > { %6902 = vpow2.f32 %v2200_v53  ;;  %v2131_v28 = vsub.f32 %v7969_v27, %v2047_v3  ;;  %v2044_v36 = vpop.xlane.xlu0 %2043  ;;  %2226 = vadd.xlane.f32.xlu1 %v2225_v2  ;;  %v2222_v17 = vsel %vm1109_vm2, %v8109_v22, 0.0 }
 0x5cb   : > { %6904 = vpow2.f32 %v2198_v8  ;;  %v2130_v29 = vsub.f32 %v7971_v20, %v2044_v36  ;;  %2223 = vadd.xlane.f32.xlu0 %v2222_v17 }
 0x5cc   : > { %v8117_v7 = vpop.eup %6894  ;;  %v2168_v1 = vmul.f32 1.442695, %v2131_v28 }
 0x5cd   : > { %v8119_v51 = vpop.eup %6896  ;;  %v2166_v40 = vmul.f32 1.442695, %v2130_v29  ;;  %v2101_v57 = vpop.xlane.xlu1 %2100  ;;  %v2279_v41 = vsel %vm1109_vm2, %v8117_v7, 0.0 }
 0x5ce   : > { %6906 = vpow2.f32 %v2168_v1  ;;  %v2149_v27 = vsub.f32 %v8017_v16, %v2101_v57  ;;  %v2098_v21 = vpop.xlane.xlu0 %2097  ;;  %2280 = vadd.xlane.f32.xlu1 %v2279_v41  ;;  %v2276_v39 = vsel %vm1109_vm2, %v8119_v51, 0.0 }
 0x5cf   : > { %6908 = vpow2.f32 %v2166_v40  ;;  %v2148_v20 = vsub.f32 %v8021_v15, %v2098_v21  ;;  %2277 = vadd.xlane.f32.xlu0 %v2276_v39 }
 0x5d0   : > { %v8127_v52 = vpop.eup %6898  ;;  %v2204_v35 = vmul.f32 1.442695, %v2149_v27 }
 0x5d1   : > { %v8129_v56 = vpop.eup %6900  ;;  %v2202_v54 = vmul.f32 1.442695, %v2148_v20  ;;  %v2053_v53 = vpop.xlane.xlu1 %2052  ;;  %v2231_v8 = vsel %vm1109_vm2, %v8127_v52, 0.0 }
 0x5d2   : > { %6910 = vpow2.f32 %v2204_v35  ;;  %v2133_v16 = vsub.f32 %v7973_v34, %v2053_v53  ;;  %v2050_v3 = vpop.xlane.xlu0 %2049  ;;  %2232 = vadd.xlane.f32.xlu1 %v2231_v8  ;;  %v2228_v2 = vsel %vm1109_vm2, %v8129_v56, 0.0 }
 0x5d3   : > { %6912 = vpow2.f32 %v2202_v54  ;;  %v2132_v15 = vsub.f32 %v7975_v12, %v2050_v3  ;;  %2229 = vadd.xlane.f32.xlu0 %v2228_v2 }
 0x5d4   : > { %v8137_v28 = vpop.eup %6902  ;;  %v2172_v36 = vmul.f32 1.442695, %v2133_v16 }
 0x5d5   : > { %v8139_v17 = vpop.eup %6904  ;;  %v2170_v29 = vmul.f32 1.442695, %v2132_v15  ;;  %v2107_v1 = vpop.xlane.xlu1 %2106  ;;  %v2285_v40 = vsel %vm1109_vm2, %v8137_v28, 0.0 }
 0x5d6   : > { %6914 = vpow2.f32 %v2172_v36  ;;  %v2151_v34 = vsub.f32 %v8029_v60, %v2107_v1  ;;  %v2104_v57 = vpop.xlane.xlu0 %2103  ;;  %2286 = vadd.xlane.f32.xlu1 %v2285_v40  ;;  %v2282_v41 = vsel %vm1109_vm2, %v8139_v17, 0.0 }
 0x5d7   : > { %6916 = vpow2.f32 %v2170_v29  ;;  %v2150_v12 = vsub.f32 %v8031_v37, %v2104_v57  ;;  %2283 = vadd.xlane.f32.xlu0 %v2282_v41 }
 0x5d8   : > { %v8147_v27 = vpop.eup %6906  ;;  %v2208_v21 = vmul.f32 1.442695, %v2151_v34 }
 0x5d9   : > { %v8149_v39 = vpop.eup %6908  ;;  %v2206_v20 = vmul.f32 1.442695, %v2150_v12  ;;  %v2059_v35 = vpop.xlane.xlu1 %2058  ;;  %v2237_v54 = vsel %vm1109_vm2, %v8147_v27, 0.0 }
 0x5da   : > { %6918 = vpow2.f32 %v2208_v21  ;;  %v2135_v60 = vsub.f32 %v7977_v33, %v2059_v35  ;;  %v2056_v53 = vpop.xlane.xlu0 %2055  ;;  %2238 = vadd.xlane.f32.xlu1 %v2237_v54  ;;  %v2234_v8 = vsel %vm1109_vm2, %v8149_v39, 0.0 }
 0x5db   : > { %6920 = vpow2.f32 %v2206_v20  ;;  %v2134_v37 = vsub.f32 %v7979_v4, %v2056_v53  ;;  %2235 = vadd.xlane.f32.xlu0 %v2234_v8 }
 0x5dc   : > { %v8157_v16 = vpop.eup %6910  ;;  %v2176_v3 = vmul.f32 1.442695, %v2135_v60 }
 0x5dd   : > { %v8159_v2 = vpop.eup %6912  ;;  %v2174_v15 = vmul.f32 1.442695, %v2134_v37  ;;  %v2113_v36 = vpop.xlane.xlu1 %2112  ;;  %v2291_v29 = vsel %vm1109_vm2, %v8157_v16, 0.0 }
 0x5de   : > { %6922 = vpow2.f32 %v2176_v3  ;;  %v2153_v33 = vsub.f32 %v8033_v23, %v2113_v36  ;;  %v2110_v1 = vpop.xlane.xlu0 %2109  ;;  %2292 = vadd.xlane.f32.xlu1 %v2291_v29  ;;  %v2288_v40 = vsel %vm1109_vm2, %v8159_v2, 0.0 }
 0x5df   : > { %6924 = vpow2.f32 %v2174_v15  ;;  %v2152_v4 = vsub.f32 %v8037_v62, %v2110_v1  ;;  %2289 = vadd.xlane.f32.xlu0 %v2288_v40 }
 0x5e0   : > { %v8167_v34 = vpop.eup %6914  ;;  %v2212_v57 = vmul.f32 1.442695, %v2153_v33 }
 0x5e1   : > { %v8169_v41 = vpop.eup %6916  ;;  %v2210_v12 = vmul.f32 1.442695, %v2152_v4  ;;  %v2065_v21 = vpop.xlane.xlu1 %2064  ;;  %v2243_v20 = vsel %vm1109_vm2, %v8167_v34, 0.0 }
 0x5e2   : > { %6926 = vpow2.f32 %v2212_v57  ;;  %v2137_v23 = vsub.f32 %v7981_v5, %v2065_v21  ;;  %v2062_v35 = vpop.xlane.xlu0 %2061  ;;  %2244 = vadd.xlane.f32.xlu1 %v2243_v20  ;;  %v2240_v54 = vsel %vm1109_vm2, %v8169_v41, 0.0 }
 0x5e3   : > { %6928 = vpow2.f32 %v2210_v12  ;;  %v2136_v62 = vsub.f32 %v7983_v61, %v2062_v35  ;;  %2241 = vadd.xlane.f32.xlu0 %v2240_v54 }
 0x5e4   : > { %v8177_v60 = vpop.eup %6918  ;;  %v2180_v53 = vmul.f32 1.442695, %v2137_v23 }
 0x5e5   : > { %v8179_v8 = vpop.eup %6920  ;;  %v2178_v37 = vmul.f32 1.442695, %v2136_v62  ;;  %v2119_v3 = vpop.xlane.xlu1 %2118  ;;  %v2297_v15 = vsel %vm1109_vm2, %v8177_v60, 0.0 }
 0x5e6   : > { %6930 = vpow2.f32 %v2180_v53  ;;  %v2155_v5 = vsub.f32 %v8045_v0, %v2119_v3  ;;  %v2116_v36 = vpop.xlane.xlu0 %2115  ;;  %2298 = vadd.xlane.f32.xlu1 %v2297_v15  ;;  %v2294_v29 = vsel %vm1109_vm2, %v8179_v8, 0.0 }
 0x5e7   : > { %6932 = vpow2.f32 %v2178_v37  ;;  %v2154_v61 = vsub.f32 %v8047_v55, %v2116_v36  ;;  %2295 = vadd.xlane.f32.xlu0 %v2294_v29 }
 0x5e8   : > { %v8187_v33 = vpop.eup %6922  ;;  %v2216_v1 = vmul.f32 1.442695, %v2155_v5 }
 0x5e9   : > { %v8189_v40 = vpop.eup %6924  ;;  %v2214_v4 = vmul.f32 1.442695, %v2154_v61  ;;  %v2071_v57 = vpop.xlane.xlu1 %2070  ;;  %v2249_v12 = vsel %vm1109_vm2, %v8187_v33, 0.0 }
 0x5ea   : > { %6934 = vpow2.f32 %v2216_v1  ;;  %v2139_v0 = vsub.f32 %v7985_v59, %v2071_v57  ;;  %v2068_v21 = vpop.xlane.xlu0 %2067  ;;  %2250 = vadd.xlane.f32.xlu1 %v2249_v12  ;;  %v2246_v20 = vsel %vm1109_vm2, %v8189_v40, 0.0 }
 0x5eb   : > { %6936 = vpow2.f32 %v2214_v4  ;;  %v2138_v55 = vsub.f32 %v7987_v9, %v2068_v21  ;;  %2247 = vadd.xlane.f32.xlu0 %v2246_v20 }
 0x5ec   : > { %v8197_v23 = vpop.eup %6926  ;;  %v2184_v35 = vmul.f32 1.442695, %v2139_v0 }
 0x5ed   : > { %v8199_v54 = vpop.eup %6928  ;;  %v2182_v62 = vmul.f32 1.442695, %v2138_v55  ;;  %v2125_v53 = vpop.xlane.xlu1 %2124  ;;  %v2303_v37 = vsel %vm1109_vm2, %v8197_v23, 0.0 }
 0x5ee   : > { %6938 = vpow2.f32 %v2184_v35  ;;  %v2157_v59 = vsub.f32 %v8049_v24, %v2125_v53  ;;  %2304 = vadd.xlane.f32.xlu1 %v2303_v37  ;;  %v2122_v3 = vpop.xlane.xlu0 %2121  ;;  %v2300_v15 = vsel %vm1109_vm2, %v8199_v54, 0.0 }
 0x5ef   : > { %6940 = vpow2.f32 %v2182_v62  ;;  %v2156_v9 = vsub.f32 %v8053_v19, %v2122_v3  ;;  %2301 = vadd.xlane.f32.xlu0 %v2300_v15 }
 0x5f0   : > { %v8207_v5 = vpop.eup %6930  ;;  %v2220_v36 = vmul.f32 1.442695, %v2157_v59 }
 0x5f1   : > { %v8209_v29 = vpop.eup %6932  ;;  %v2218_v61 = vmul.f32 1.442695, %v2156_v9  ;;  %v2077_v1 = vpop.xlane.xlu1 %2076  ;;  %v2255_v4 = vsel %vm1109_vm2, %v8207_v5, 0.0 }
 0x5f2   : > { %6942 = vpow2.f32 %v2220_v36  ;;  %v2141_v24 = vsub.f32 %v7989_v14, %v2077_v1  ;;  %2256 = vadd.xlane.f32.xlu1 %v2255_v4  ;;  %v2074_v57 = vpop.xlane.xlu0 %2073  ;;  %v2252_v12 = vsel %vm1109_vm2, %v8209_v29, 0.0 }
 0x5f3   : > { %6944 = vpow2.f32 %v2218_v61  ;;  %v2140_v19 = vsub.f32 %v7991_v11, %v2074_v57  ;;  %2253 = vadd.xlane.f32.xlu0 %v2252_v12 }
 0x5f4   : > { %v8217_v0 = vpop.eup %6934  ;;  %v2188_v21 = vmul.f32 1.442695, %v2141_v24 }
 0x5f5   : > { %v8219_v20 = vpop.eup %6936  ;;  %v2186_v55 = vmul.f32 1.442695, %v2140_v19  ;;  %v2309_v35 = vsel %vm1109_vm2, %v8217_v0, 0.0 }
 0x5f6   : > { %6946 = vpow2.f32 %v2188_v21  ;;  %2310 = vadd.xlane.f32.xlu1 %v2309_v35  ;;  %v2306_v14 = vsel %vm1109_vm2, %v8219_v20, 0.0 }
 0x5f7   : > { %6948 = vpow2.f32 %v2186_v55  ;;  %2307 = vadd.xlane.f32.xlu0 %v2306_v14 }
 0x5f8   : > { %v8225_v62 = vpop.eup %6938 }
 0x5f9   : > { %v8227_v11 = vpop.eup %6940  ;;  %v2261_v53 = vsel %vm1109_vm2, %v8225_v62, 0.0 }
 0x5fa   : > { %2262 = vadd.xlane.f32.xlu1 %v2261_v53  ;;  %v2258_v37 = vsel %vm1109_vm2, %v8227_v11, 0.0 }
 0x5fb   : > { %2259 = vadd.xlane.f32.xlu0 %v2258_v37 }
 0x5fc   : > { %v8233_v59 = vpop.eup %6942 }
 0x5fd   : > { %v8235_v3 = vpop.eup %6944  ;;  %v2315_v15 = vsel %vm1109_vm2, %v8233_v59, 0.0 }
 0x5fe   : > { %2316 = vadd.xlane.f32.xlu1 %v2315_v15  ;;  %v2312_v9 = vsel %vm1109_vm2, %v8235_v3, 0.0 }
 0x5ff   : > { %2313 = vadd.xlane.f32.xlu0 %v2312_v9 }
 0x600   : > { %v8241_v36 = vpop.eup %6946 }
 0x601   : > { %v8243_v61 = vpop.eup %6948  ;;  %v2267_v1 = vsel %vm1109_vm2, %v8241_v36, 0.0 }
 0x602   : > { %2268 = vadd.xlane.f32.xlu1 %v2267_v1  ;;  %v2264_v4 = vsel %vm1109_vm2, %v8243_v61, 0.0 }
 0x603   : > { %2265 = vadd.xlane.f32.xlu0 %v2264_v4 }
 0x630   : > { %2565 = vxpose.xlu0.b32.start [1/2] (short) %v7415_v43, 128 }
 0x634   : > { %2566 = vxpose.xlu0.b32.end [2/2] (short) %v7419_v45, 128 }
 0x635   : > { %2597 = vxpose.xlu1.b32.start [1/2] (short) %v7417_v44, 128 }
 0x639   : > { %2598 = vxpose.xlu1.b32.end [2/2] (short) %v7421_v46, 128 }
 0x653   : > { %v2275_v24 = vpop.xlane.xlu1 %2274 }
 0x654   : > { %6950 = vrcp.f32 %v2275_v24  ;;  %v2272_v57 = vpop.xlane.xlu0 %2271 }
 0x655   : > { %6952 = vrcp.f32 %v2272_v57 }
 0x657   : > { %v2227_v12 = vpop.xlane.xlu1 %2226 }
 0x658   : > { %6954 = vrcp.f32 %v2227_v12  ;;  %v2224_v19 = vpop.xlane.xlu0 %2223 }
 0x659   : > { %6956 = vrcp.f32 %v2224_v19 }
 0x65b   : > { %v2281_v21 = vpop.xlane.xlu1 %2280 }
 0x65c   : > { %6958 = vrcp.f32 %v2281_v21  ;;  %v2278_v55 = vpop.xlane.xlu0 %2277 }
 0x65d   : > { %6960 = vrcp.f32 %v2278_v55 }
 0x65e   : > { %v6951_v35 = vpop.eup %6950 }
 0x65f   : > { %v6953_v43 = vpop.eup %6952  ;;  %v2233_v14 = vpop.xlane.xlu1 %2232  ;;  %v2367_v45 = vmul.f32 %v6951_v35, %v8097_v26 }
 0x660   : > { %6962 = vrcp.f32 %v2233_v14  ;;  %v2230_v44 = vpop.xlane.xlu0 %2229  ;;  %v2366_v46 = vmul.f32 %v6953_v43, %v8099_v31 }
 0x661   : > { %6964 = vrcp.f32 %v2230_v44 }
 0x662   : > { %v6955_v53 = vpop.eup %6954  ;;  %v6553_v37 = vpack.c.bf16 %v2367_v45, %v2366_v46 }
 0x663   : > { %v6957_v15 = vpop.eup %6956  ;;  %v2351_v9 = vmul.f32 %v6955_v53, %v8107_v38  ;;  %v2287_v1 = vpop.xlane.xlu1 %2286 }
 0x664   : > { %v2350_v4 = vmul.f32 %v6957_v15, %v8109_v22  ;;  %6966 = vrcp.f32 %v2287_v1  ;;  %6555 = vmatprep.subr.msk.bf16.mxu0 %vm7827_vm3, %v6553_v37  ;;  %v2284_v24 = vpop.xlane.xlu0 %2283 }
 0x665   : > { %6968 = vrcp.f32 %v2284_v24 }
 0x666   : > { %v6959_v26 = vpop.eup %6958  ;;  %v6556_v57 = vpack.c.bf16 %v2351_v9, %v2350_v4 }
 0x667   : > { %v6961_v12 = vpop.eup %6960  ;;  %v2239_v19 = vpop.xlane.xlu1 %2238  ;;  %v2369_v31 = vmul.f32 %v6959_v26, %v8117_v7 }
 0x668   : > { %6970 = vrcp.f32 %v2239_v19  ;;  %6558 = vmatpush3.bf16.xpose.msk.msra.mxu0 %vm7827_vm3, %v6556_v57  ;;  %v2236_v38 = vpop.xlane.xlu0 %2235  ;;  %v2368_v21 = vmul.f32 %v6961_v12, %v8119_v51 }
 0x669   : > { %6972 = vrcp.f32 %v2236_v38 }
 0x66a   : > { %v6963_v22 = vpop.eup %6962  ;;  %v6559_v55 = vpack.c.bf16 %v2369_v31, %v2368_v21 }
 0x66b   : > { %v6965_v35 = vpop.eup %6964  ;;  %v2353_v43 = vmul.f32 %v6963_v22, %v8127_v52  ;;  %v2293_v14 = vpop.xlane.xlu1 %2292 }
 0x66c   : > { %v2352_v45 = vmul.f32 %v6965_v35, %v8129_v56  ;;  %6974 = vrcp.f32 %v2293_v14  ;;  %6561 = vmatprep.subr.msk.bf16.mxu0 %vm7827_vm3, %v6559_v55  ;;  %v2290_v7 = vpop.xlane.xlu0 %2289 }
 0x66d   : > { %6976 = vrcp.f32 %v2290_v7 }
 0x66e   : > { %v6967_v44 = vpop.eup %6966  ;;  %v6562_v46 = vpack.c.bf16 %v2353_v43, %v2352_v45 }
 0x66f   : > { %v6969_v53 = vpop.eup %6968  ;;  %v2245_v37 = vpop.xlane.xlu1 %2244  ;;  %v2371_v51 = vmul.f32 %v6967_v44, %v8137_v28 }
 0x670   : > { %6978 = vrcp.f32 %v2245_v37  ;;  %6564 = vmatpush3.bf16.xpose.msk.msra.mxu0 %vm7827_vm3, %v6562_v46  ;;  %v2242_v52 = vpop.xlane.xlu0 %2241  ;;  %v2370_v15 = vmul.f32 %v6969_v53, %v8139_v17 }
 0x671   : > { %6980 = vrcp.f32 %v2242_v52 }
 0x672   : > { %v6971_v56 = vpop.eup %6970  ;;  %v6565_v9 = vpack.c.bf16 %v2371_v51, %v2370_v15 }
 0x673   : > { %v6973_v1 = vpop.eup %6972  ;;  %v2355_v4 = vmul.f32 %v6971_v56, %v8147_v27  ;;  %v2299_v24 = vpop.xlane.xlu1 %2298 }
 0x674   : > { %v2354_v26 = vmul.f32 %v6973_v1, %v8149_v39  ;;  %6982 = vrcp.f32 %v2299_v24  ;;  %6567 = vmatprep.subr.msk.bf16.mxu0 %vm7827_vm3, %v6565_v9  ;;  %v2296_v28 = vpop.xlane.xlu0 %2295 }
 0x675   : > { %6984 = vrcp.f32 %v2296_v28 }
 0x676   : > { %v6975_v57 = vpop.eup %6974  ;;  %v6568_v12 = vpack.c.bf16 %v2355_v4, %v2354_v26 }
 0x677   : > { %v6977_v19 = vpop.eup %6976  ;;  %v2251_v31 = vpop.xlane.xlu1 %2250  ;;  %v2373_v17 = vmul.f32 %v6975_v57, %v8157_v16 }
 0x678   : > { %6986 = vrcp.f32 %v2251_v31  ;;  %6570 = vmatpush3.bf16.xpose.msk.msra.mxu0 %vm7827_vm3, %v6568_v12  ;;  %v2248_v27 = vpop.xlane.xlu0 %2247  ;;  %v2372_v38 = vmul.f32 %v6977_v19, %v8159_v2 }
 0x679   : > { %6988 = vrcp.f32 %v2248_v27 }
 0x67a   : > { %v6979_v39 = vpop.eup %6978  ;;  %v6571_v21 = vpack.c.bf16 %v2373_v17, %v2372_v38 }
 0x67b   : > { %v6981_v22 = vpop.eup %6980  ;;  %v2357_v55 = vmul.f32 %v6979_v39, %v8167_v34  ;;  %v2305_v35 = vpop.xlane.xlu1 %2304 }
 0x67c   : > { %v2356_v43 = vmul.f32 %v6981_v22, %v8169_v41  ;;  %6990 = vrcp.f32 %v2305_v35  ;;  %6573 = vmatprep.subr.msk.bf16.mxu0 %vm7827_vm3, %v6571_v21  ;;  %v2302_v16 = vpop.xlane.xlu0 %2301 }
 0x67d   : > { %6992 = vrcp.f32 %v2302_v16 }
 0x67e   : > { %v6983_v14 = vpop.eup %6982  ;;  %v6574_v45 = vpack.c.bf16 %v2357_v55, %v2356_v43 }
 0x67f   : > { %v6985_v7 = vpop.eup %6984  ;;  %v2257_v44 = vpop.xlane.xlu1 %2256  ;;  %v2375_v2 = vmul.f32 %v6983_v14, %v8177_v60 }
 0x680   : > { %6994 = vrcp.f32 %v2257_v44  ;;  %6576 = vmatpush3.bf16.xpose.msk.msra.mxu0 %vm7827_vm3, %v6574_v45  ;;  %v2254_v34 = vpop.xlane.xlu0 %2253  ;;  %v2374_v46 = vmul.f32 %v6985_v7, %v8179_v8 }
 0x681   : > { %6996 = vrcp.f32 %v2254_v34 }
 0x682   : > { %v6987_v41 = vpop.eup %6986  ;;  %v6577_v53 = vpack.c.bf16 %v2375_v2, %v2374_v46 }
 0x683   : > { %v6989_v37 = vpop.eup %6988  ;;  %v2359_v51 = vmul.f32 %v6987_v41, %v8187_v33  ;;  %v2311_v52 = vpop.xlane.xlu1 %2310 }
 0x684   : > { %v2358_v15 = vmul.f32 %v6989_v37, %v8189_v40  ;;  %6998 = vrcp.f32 %v2311_v52  ;;  %6579 = vmatprep.subr.msk.bf16.mxu0 %vm7827_vm3, %v6577_v53  ;;  %v2308_v60 = vpop.xlane.xlu0 %2307 }
 0x685   : > { %7000 = vrcp.f32 %v2308_v60 }
 0x686   : > { %v6991_v56 = vpop.eup %6990  ;;  %v6580_v9 = vpack.c.bf16 %v2359_v51, %v2358_v15 }
 0x687   : > { %v6993_v1 = vpop.eup %6992  ;;  %v2263_v4 = vpop.xlane.xlu1 %2262  ;;  %v2377_v8 = vmul.f32 %v6991_v56, %v8197_v23 }
 0x688   : > { %7002 = vrcp.f32 %v2263_v4  ;;  %6582 = vmatpush3.bf16.xpose.msk.msra.mxu0 %vm7827_vm3, %v6580_v9  ;;  %v2260_v33 = vpop.xlane.xlu0 %2259  ;;  %v2376_v24 = vmul.f32 %v6993_v1, %v8199_v54 }
 0x689   : > { %7004 = vrcp.f32 %v2260_v33 }
 0x68a   : > { %v6995_v40 = vpop.eup %6994  ;;  %v6583_v26 = vpack.c.bf16 %v2377_v8, %v2376_v24 }
 0x68b   : > { %v6997_v28 = vpop.eup %6996  ;;  %v2361_v57 = vmul.f32 %v6995_v40, %v8207_v5  ;;  %v2317_v12 = vpop.xlane.xlu1 %2316 }
 0x68c   : > { %v2360_v19 = vmul.f32 %v6997_v28, %v8209_v29  ;;  %7006 = vrcp.f32 %v2317_v12  ;;  %6585 = vmatprep.subr.msk.bf16.mxu0 %vm7827_vm3, %v6583_v26  ;;  %v2314_v23 = vpop.xlane.xlu0 %2313 }
 0x68d   : > { %7008 = vrcp.f32 %v2314_v23 }
 0x68e   : > { %v6999_v31 = vpop.eup %6998  ;;  %v6586_v17 = vpack.c.bf16 %v2361_v57, %v2360_v19 }
 0x68f   : > { %v7001_v27 = vpop.eup %7000  ;;  %v2269_v38 = vpop.xlane.xlu1 %2268  ;;  %v2379_v54 = vmul.f32 %v6999_v31, %v8217_v0 }
 0x690   : > { %7010 = vrcp.f32 %v2269_v38  ;;  %6588 = vmatpush3.bf16.xpose.msk.msra.mxu0 %vm7827_vm3, %v6586_v17  ;;  %v2266_v5 = vpop.xlane.xlu0 %2265  ;;  %v2378_v39 = vmul.f32 %v7001_v27, %v8219_v20 }
 0x691   : > { %7012 = vrcp.f32 %v2266_v5 }
 0x692   : > { %v7003_v29 = vpop.eup %7002  ;;  %v6589_v21 = vpack.c.bf16 %v2379_v54, %v2378_v39 }
 0x693   : > { %v7005_v22 = vpop.eup %7004  ;;  %v2363_v55 = vmul.f32 %v7003_v29, %v8225_v62 }
 0x694   : > { %v2362_v35 = vmul.f32 %v7005_v22, %v8227_v11  ;;  %6591 = vmatprep.subr.msk.bf16.mxu0 %vm7827_vm3, %v6589_v21 }
 0x696   : > { %v7007_v43 = vpop.eup %7006  ;;  %v6592_v0 = vpack.c.bf16 %v2363_v55, %v2362_v35 }
 0x697   : > { %v7009_v16 = vpop.eup %7008  ;;  %v2381_v14 = vmul.f32 %v7007_v43, %v8233_v59 }
 0x698   : > { %6594 = vmatpush3.bf16.xpose.msk.msra.mxu0 %vm7827_vm3, %v6592_v0  ;;  %v2380_v20 = vmul.f32 %v7009_v16, %v8235_v3 }
 0x69a   : > { %v7011_v45 = vpop.eup %7010  ;;  %v6595_v7 = vpack.c.bf16 %v2381_v14, %v2380_v20 }
 0x69b   : > { %v7013_v44 = vpop.eup %7012  ;;  %v2365_v62 = vmul.f32 %v7011_v45, %v8241_v36 }
 0x69c   : > { %v2364_v11 = vmul.f32 %v7013_v44, %v8243_v61  ;;  %6597 = vmatprep.subr.msk.bf16.mxu0 %vm7827_vm3, %v6595_v7 }
 0x69e   : > { %v6598_v2 = vpack.c.bf16 %v2365_v62, %v2364_v11 }
 0x6a0   : > { %6600 = vmatpush3.bf16.xpose.msk.msra.mxu0 %vm7827_vm3, %v6598_v2 }
 0x6a1   : > { %6602 = vmatprep.subr.bf16.mxu0 %v7808_v30 }
 0x6a7   : > { %6096 = vmatmul.mubr.msk.f32.vlgmr.msra.gmra.mrb[48].mxu0 %vm1109_vm2, %v7922_v32 }
 0x6a8   : > { %6097 = vmatprep.mubr.msk.f32.mxu0 %vm1109_vm2, %v7920_v13  ;;  %6604 = vmatpush3.bf16.msra.mxu0 %v7808_v30 }
 0x6ab   : > { %6098 = vmatmul.mubr.msk.f32.gmra.mrb[50].mxu0 %vm1109_vm2, %v7920_v13 }
 0x6b0   : > { %v2581_v59 = vpop.trf.xlu0 }
 0x6b1   : > { %6381 = vmatprep.mubr.msk.f32.mxu0 %vm787_vm1, %v2581_v59 }
 0x6b4   : > { %v2582_v3 = vpop.trf.xlu0 }
 0x6b5   : > { %6382 = vmatmul.mubr.msk.f32.vlgmr.msra.gmra.mrb[52].mxu0 %vm787_vm1, %v2582_v3  ;;  %v2613_v36 = vpop.trf.xlu1 }
 0x6b8   : > { %v2583_v61 = vpop.trf.xlu0 }
 0x6b9   : > { %6384 = vmatprep.mubr.msk.f32.mxu0 %vm787_vm1, %v2583_v61  ;;  %v2614_v34 = vpop.trf.xlu1 }
 0x6bc   : > { %v2584_v32 = vpop.trf.xlu0 }
 0x6bd   : > { %6385 = vmatmul.mubr.msk.f32.gmra.mrb[54].mxu0 %vm787_vm1, %v2584_v32  ;;  %v2615_v46 = vpop.trf.xlu1 }
 0x6c0   : > { %v2585_v41 = vpop.trf.xlu0 }
 0x6c1   : > { %6387 = vmatprep.mubr.msk.f32.mxu0 %vm787_vm1, %v2585_v41  ;;  %v2616_v30 = vpop.trf.xlu1 }
 0x6c4   : > { %v2586_v13 = vpop.trf.xlu0 }
 0x6c5   : > { %6388 = vmatmul.mubr.msk.f32.gmra.mrb[56].mxu0 %vm787_vm1, %v2586_v13  ;;  %v2617_v37 = vpop.trf.xlu1 }
 0x6c8   : > { %v2587_v53 = vpop.trf.xlu0 }
 0x6c9   : > { %6390 = vmatprep.mubr.msk.f32.mxu0 %vm787_vm1, %v2587_v53  ;;  %v2618_v52 = vpop.trf.xlu1 }
 0x6cc   : > { %v2588_v51 = vpop.trf.xlu0 }
 0x6cd   : > { %6391 = vmatmul.mubr.msk.f32.gmra.mrb[58].mxu0 %vm787_vm1, %v2588_v51  ;;  %v2619_v56 = vpop.trf.xlu1 }
 0x6d0   : > { %v2589_v15 = vpop.trf.xlu0 }
 0x6d1   : > { %6393 = vmatprep.mubr.msk.f32.mxu0 %vm787_vm1, %v2589_v15  ;;  %v2620_v1 = vpop.trf.xlu1 }
 0x6d4   : > { %v2590_v60 = vpop.trf.xlu0 }
 0x6d5   : > { %6394 = vmatmul.mubr.msk.f32.gmra.mrb[60].mxu0 %vm787_vm1, %v2590_v60  ;;  %v2621_v33 = vpop.trf.xlu1 }
 0x6d8   : > { %v2591_v9 = vpop.trf.xlu0 }
 0x6d9   : > { %6396 = vmatprep.mubr.msk.f32.mxu0 %vm787_vm1, %v2591_v9  ;;  %v2622_v40 = vpop.trf.xlu1 }
 0x6dc   : > { %v2592_v4 = vpop.trf.xlu0 }
 0x6dd   : > { %6397 = vmatmul.mubr.msk.f32.gmra.mrb[62].mxu0 %vm787_vm1, %v2592_v4  ;;  %v2623_v57 = vpop.trf.xlu1 }
 0x6e0   : > { %v2593_v8 = vpop.trf.xlu0 }
 0x6e1   : > { %6399 = vmatprep.mubr.msk.f32.mxu0 %vm787_vm1, %v2593_v8  ;;  %v2624_v12 = vpop.trf.xlu1 }
 0x6e4   : > { %v2594_v24 = vpop.trf.xlu0 }
 0x6e5   : > { %6400 = vmatmul.mubr.msk.f32.gmra.mrb[64].mxu0 %vm787_vm1, %v2594_v24  ;;  %v2625_v19 = vpop.trf.xlu1 }
 0x6e8   : > { %v2595_v26 = vpop.trf.xlu0 }
 0x6e9   : > { %6402 = vmatprep.mubr.msk.f32.mxu0 %vm787_vm1, %v2595_v26  ;;  %v2626_v23 = vpop.trf.xlu1 }
 0x6ec   : > { %v2596_v28 = vpop.trf.xlu0 }
 0x6ed   : > { %6403 = vmatmul.mubr.msk.f32.gmra.mrb[66].mxu0 %vm787_vm1, %v2596_v28  ;;  %v2627_v31 = vpop.trf.xlu1 }
 0x6ee   : > { %6405 = vmatprep.mubr.msk.f32.mxu0 %vm787_vm1, %v2613_v36 }
 0x6f1   : > { %6406 = vmatmul.mubr.msk.f32.gmra.mrb[68].mxu0 %vm787_vm1, %v2614_v34  ;;  %v2628_v17 = vpop.trf.xlu1 }
 0x6f2   : > { %6408 = vmatprep.mubr.msk.f32.mxu0 %vm787_vm1, %v2615_v46 }
 0x6f5   : > { %6409 = vmatmul.mubr.msk.f32.gmra.mrb[70].mxu0 %vm787_vm1, %v2616_v30 }
 0x6f6   : > { %6411 = vmatprep.mubr.msk.f32.mxu0 %vm787_vm1, %v2617_v37 }
 0x6f9   : > { %6412 = vmatmul.mubr.msk.f32.gmra.mrb[72].mxu0 %vm787_vm1, %v2618_v52 }
 0x6fa   : > { %6414 = vmatprep.mubr.msk.f32.mxu0 %vm787_vm1, %v2619_v56 }
 0x6fd   : > { %6415 = vmatmul.mubr.msk.f32.gmra.mrb[74].mxu0 %vm787_vm1, %v2620_v1 }
 0x6fe   : > { %6417 = vmatprep.mubr.msk.f32.mxu0 %vm787_vm1, %v2621_v33 }
 0x701   : > { %6418 = vmatmul.mubr.msk.f32.gmra.mrb[76].mxu0 %vm787_vm1, %v2622_v40 }
 0x702   : > { %6420 = vmatprep.mubr.msk.f32.mxu0 %vm787_vm1, %v2623_v57 }
 0x705   : > { %6421 = vmatmul.mubr.msk.f32.gmra.mrb[78].mxu0 %vm787_vm1, %v2624_v12 }
 0x706   : > { %6423 = vmatprep.mubr.msk.f32.mxu0 %vm787_vm1, %v2625_v19 }
 0x709   : > { %6424 = vmatmul.mubr.msk.f32.gmra.mrb[80].mxu0 %vm787_vm1, %v2626_v23 }
 0x70a   : > { %6426 = vmatprep.mubr.msk.f32.mxu0 %vm787_vm1, %v2627_v31 }
 0x70d   : > { %6427 = vmatmul.mubr.msk.f32.gmra.mrb[82].mxu0 %vm787_vm1, %v2628_v17 }
 0x70e   : > { %6235 = vmatprep.mubr.msk.f32.mxu0 %vm1109_vm2, %v7936_v63 }
 0x77a   : > { %v8359_v27 = vpop.f32.mrb[48].mxu0 }
 0x77b   : > { %v8361_v38 = vpop.f32.mrb[49].mxu0 }
 0x77e   : > { %v8363_v54 = vpop.f32.mrb[50].mxu0 }
 0x77f   : > { %v6711_v5 = vpack.c.bf16 %v8363_v54, %v8359_v27  ;;  %v8367_v39 = vpop.f32.mrb[51].mxu0 }
 0x780   : > { %v6709_v29 = vpack.c.bf16 %v8367_v39, %v8361_v38 }
 0x788   : > { %v8371_v21 = vpop.f32.mrb[52].mxu0 }
 0x789   : > { %v8373_v22 = vpop.f32.mrb[53].mxu0  ;;  %v2953_v46 = vsel %vm1109_vm2, %v8371_v21, -inf }
 0x78a   : > { %v2950_v30 = vsel %vm1109_vm2, %v8373_v22, -inf }
 0x790   : > { %v8375_v55 = vpop.f32.mrb[54].mxu0 }
 0x791   : > { %v8377_v35 = vpop.f32.mrb[55].mxu0  ;;  %v2959_v15 = vsel %vm1109_vm2, %v8375_v55, -inf }
 0x792   : > { %v2956_v56 = vsel %vm1109_vm2, %v8377_v35, -inf }
 0x798   : > { %v8379_v43 = vpop.f32.mrb[56].mxu0 }
 0x799   : > { %v8381_v0 = vpop.f32.mrb[57].mxu0  ;;  %v2965_v24 = vsel %vm1109_vm2, %v8379_v43, -inf }
 0x79a   : > { %v2962_v26 = vsel %vm1109_vm2, %v8381_v0, -inf }
 0x7a0   : > { %v8383_v16 = vpop.f32.mrb[58].mxu0 }
 0x7a1   : > { %v8385_v14 = vpop.f32.mrb[59].mxu0  ;;  %v2971_v31 = vsel %vm1109_vm2, %v8383_v16, -inf }
 0x7a8   : > { %v8387_v20 = vpop.f32.mrb[60].mxu0 }
 0x7a9   : > { %v8389_v45 = vpop.f32.mrb[61].mxu0 }
 0x7b0   : > { %v8391_v7 = vpop.f32.mrb[62].mxu0 }
 0x7b1   : > { %v8393_v44 = vpop.f32.mrb[63].mxu0 }
 0x7b8   : > { %v8395_v62 = vpop.f32.mrb[64].mxu0 }
 0x7b9   : > { %v8397_v11 = vpop.f32.mrb[65].mxu0 }
 0x7c0   : > { %v8399_v2 = vpop.f32.mrb[66].mxu0 }
 0x7c1   : > { %v8401_v59 = vpop.f32.mrb[67].mxu0 }
 0x7c4   : > { %v8403_v3 = vpop.f32.mrb[68].mxu0 }
 0x7c5   : > { %v8405_v36 = vpop.f32.mrb[69].mxu0  ;;  %v3001_v61 = vsel %vm1109_vm2, %v8403_v3, -inf }
 0x7c6   : > { %3002 = vmax.xlane.f32.xlu1 %v3001_v61  ;;  %v2998_v34 = vsel %vm1109_vm2, %v8405_v36, -inf  ;;  %v2968_v61 = vsel %vm1109_vm2, %v8385_v14, -inf }
 0x7c7   : > { %2999 = vmax.xlane.f32.xlu0 %v2998_v34 }
 0x7c8   : > { %v8411_v32 = vpop.f32.mrb[70].mxu0 }
 0x7c9   : > { %v8415_v41 = vpop.f32.mrb[71].mxu0  ;;  %v3007_v13 = vsel %vm1109_vm2, %v8411_v32, -inf }
 0x7ca   : > { %2954 = vmax.xlane.f32.xlu1 %v2953_v46  ;;  %v3004_v53 = vsel %vm1109_vm2, %v8415_v41, -inf }
 0x7cb   : > { %2951 = vmax.xlane.f32.xlu0 %v2950_v30  ;;  %v2977_v30 = vsel %vm1109_vm2, %v8387_v20, -inf }
 0x7cc   : > { %v8423_v37 = vpop.f32.mrb[72].mxu0 }
 0x7cd   : > { %v8425_v51 = vpop.f32.mrb[73].mxu0  ;;  %v3013_v9 = vsel %vm1109_vm2, %v8423_v37, -inf }
 0x7ce   : > { %3008 = vmax.xlane.f32.xlu1 %v3007_v13  ;;  %v3010_v1 = vsel %vm1109_vm2, %v8425_v51, -inf  ;;  %v2974_v13 = vsel %vm1109_vm2, %v8389_v45, -inf }
 0x7cf   : > { %3005 = vmax.xlane.f32.xlu0 %v3004_v53 }
 0x7d0   : > { %v8427_v52 = vpop.f32.mrb[74].mxu0 }
 0x7d1   : > { %v8431_v60 = vpop.f32.mrb[75].mxu0  ;;  %v3019_v28 = vsel %vm1109_vm2, %v8427_v52, -inf }
 0x7d2   : > { %2960 = vmax.xlane.f32.xlu1 %v2959_v15  ;;  %v3016_v57 = vsel %vm1109_vm2, %v8431_v60, -inf }
 0x7d3   : > { %2957 = vmax.xlane.f32.xlu0 %v2956_v56  ;;  %v2983_v56 = vsel %vm1109_vm2, %v8391_v7, -inf }
 0x7d4   : > { %v8439_v4 = vpop.f32.mrb[76].mxu0 }
 0x7d5   : > { %v8441_v8 = vpop.f32.mrb[77].mxu0  ;;  %v3025_v34 = vsel %vm1109_vm2, %v8439_v4, -inf }
 0x7d6   : > { %3014 = vmax.xlane.f32.xlu1 %v3013_v9  ;;  %v3022_v46 = vsel %vm1109_vm2, %v8441_v8, -inf  ;;  %v2980_v9 = vsel %vm1109_vm2, %v8393_v44, -inf }
 0x7d7   : > { %3011 = vmax.xlane.f32.xlu0 %v3010_v1 }
 0x7d8   : > { %v8443_v33 = vpop.f32.mrb[78].mxu0 }
 0x7d9   : > { %v8447_v40 = vpop.f32.mrb[79].mxu0  ;;  %v3031_v53 = vsel %vm1109_vm2, %v8443_v33, -inf }
 0x7da   : > { %2966 = vmax.xlane.f32.xlu1 %v2965_v24  ;;  %v3028_v15 = vsel %vm1109_vm2, %v8447_v40, -inf }
 0x7db   : > { %2963 = vmax.xlane.f32.xlu0 %v2962_v26  ;;  %v2989_v26 = vsel %vm1109_vm2, %v8395_v62, -inf }
 0x7dc   : > { %v8455_v12 = vpop.f32.mrb[80].mxu0 }
 0x7dd   : > { %v8457_v19 = vpop.f32.mrb[81].mxu0  ;;  %v3037_v1 = vsel %vm1109_vm2, %v8455_v12, -inf }
 0x7de   : > { %3020 = vmax.xlane.f32.xlu1 %v3019_v28  ;;  %v3034_v24 = vsel %vm1109_vm2, %v8457_v19, -inf  ;;  %v2986_v28 = vsel %vm1109_vm2, %v8397_v11, -inf }
 0x7df   : > { %3017 = vmax.xlane.f32.xlu0 %v3016_v57 }
 0x7e0   : > { %v8459_v23 = vpop.f32.mrb[82].mxu0 }
 0x7e1   : > { %v8463_v17 = vpop.f32.mrb[83].mxu0  ;;  %v3043_v57 = vsel %vm1109_vm2, %v8459_v23, -inf }
 0x7e2   : > { %2972 = vmax.xlane.f32.xlu1 %v2971_v31  ;;  %v3040_v31 = vsel %vm1109_vm2, %v8463_v17, -inf }
 0x7e3   : > { %2969 = vmax.xlane.f32.xlu0 %v2968_v61  ;;  %v2995_v61 = vsel %vm1109_vm2, %v8399_v2, -inf }
 0x7e6   : > { %3026 = vmax.xlane.f32.xlu1 %v3025_v34  ;;  %v2992_v34 = vsel %vm1109_vm2, %v8401_v59, -inf }
 0x7e7   : > { %3023 = vmax.xlane.f32.xlu0 %v3022_v46 }
 0x7ea   : > { %2978 = vmax.xlane.f32.xlu1 %v2977_v30 }
 0x7eb   : > { %2975 = vmax.xlane.f32.xlu0 %v2974_v13 }
 0x7ee   : > { %3032 = vmax.xlane.f32.xlu1 %v3031_v53 }
 0x7ef   : > { %3029 = vmax.xlane.f32.xlu0 %v3028_v15 }
 0x7f2   : > { %2984 = vmax.xlane.f32.xlu1 %v2983_v56 }
 0x7f3   : > { %2981 = vmax.xlane.f32.xlu0 %v2980_v9 }
 0x7f6   : > { %3038 = vmax.xlane.f32.xlu1 %v3037_v1 }
 0x7f7   : > { %3035 = vmax.xlane.f32.xlu0 %v3034_v24 }
 0x7fa   : > { %2990 = vmax.xlane.f32.xlu1 %v2989_v26 }
 0x7fb   : > { %2987 = vmax.xlane.f32.xlu0 %v2986_v28 }
 0x7fe   : > { %3044 = vmax.xlane.f32.xlu1 %v3043_v57 }
 0x7ff   : > { %3041 = vmax.xlane.f32.xlu0 %v3040_v31 }
 0x802   : > { %2996 = vmax.xlane.f32.xlu1 %v2995_v61 }
 0x803   : > { %2993 = vmax.xlane.f32.xlu0 %v2992_v34 }
 0x853   : > { %v3003_v46 = vpop.xlane.xlu1 %3002 }
 0x854   : > { %v3063_v30 = vsub.f32 %v8403_v3, %v3003_v46  ;;  %v3000_v13 = vpop.xlane.xlu0 %2999 }
 0x855   : > { %v3062_v53 = vsub.f32 %v8405_v36, %v3000_v13 }
 0x856   : > { %v3112_v15 = vmul.f32 1.442695, %v3063_v30 }
 0x857   : > { %v3110_v56 = vmul.f32 1.442695, %v3062_v53  ;;  %v2955_v9 = vpop.xlane.xlu1 %2954 }
 0x858   : > { %7014 = vpow2.f32 %v3112_v15  ;;  %v3047_v1 = vsub.f32 %v8371_v21, %v2955_v9  ;;  %v2952_v24 = vpop.xlane.xlu0 %2951 }
 0x859   : > { %7016 = vpow2.f32 %v3110_v56  ;;  %v3046_v26 = vsub.f32 %v8373_v22, %v2952_v24 }
 0x85a   : > { %v3080_v28 = vmul.f32 1.442695, %v3047_v1 }
 0x85b   : > { %v3078_v57 = vmul.f32 1.442695, %v3046_v26  ;;  %v3009_v31 = vpop.xlane.xlu1 %3008 }
 0x85c   : > { %7018 = vpow2.f32 %v3080_v28  ;;  %v3065_v61 = vsub.f32 %v8411_v32, %v3009_v31  ;;  %v3006_v3 = vpop.xlane.xlu0 %3005 }
 0x85d   : > { %7020 = vpow2.f32 %v3078_v57  ;;  %v3064_v36 = vsub.f32 %v8415_v41, %v3006_v3 }
 0x85e   : > { %v3116_v34 = vmul.f32 1.442695, %v3065_v61 }
 0x85f   : > { %v3114_v46 = vmul.f32 1.442695, %v3064_v36  ;;  %v2961_v30 = vpop.xlane.xlu1 %2960 }
 0x860   : > { %7022 = vpow2.f32 %v3116_v34  ;;  %v3049_v21 = vsub.f32 %v8375_v55, %v2961_v30  ;;  %v2958_v13 = vpop.xlane.xlu0 %2957 }
 0x861   : > { %7024 = vpow2.f32 %v3114_v46  ;;  %v3048_v22 = vsub.f32 %v8377_v35, %v2958_v13 }
 0x862   : > { %v8507_v53 = vpop.eup %7014  ;;  %v3084_v15 = vmul.f32 1.442695, %v3049_v21 }
 0x863   : > { %v8509_v56 = vpop.eup %7016  ;;  %v3082_v32 = vmul.f32 1.442695, %v3048_v22  ;;  %v3015_v9 = vpop.xlane.xlu1 %3014  ;;  %v3193_v41 = vsel %vm1109_vm2, %v8507_v53, 0.0 }
 0x864   : > { %7026 = vpow2.f32 %v3084_v15  ;;  %v3067_v1 = vsub.f32 %v8423_v37, %v3015_v9  ;;  %v3012_v24 = vpop.xlane.xlu0 %3011  ;;  %3194 = vadd.xlane.f32.xlu1 %v3193_v41  ;;  %v3190_v55 = vsel %vm1109_vm2, %v8509_v56, 0.0 }
 0x865   : > { %7028 = vpow2.f32 %v3082_v32  ;;  %v3066_v35 = vsub.f32 %v8425_v51, %v3012_v24  ;;  %3191 = vadd.xlane.f32.xlu0 %v3190_v55 }
 0x866   : > { %v8517_v26 = vpop.eup %7018  ;;  %v3120_v28 = vmul.f32 1.442695, %v3067_v1 }
 0x867   : > { %v8519_v57 = vpop.eup %7020  ;;  %v3118_v31 = vmul.f32 1.442695, %v3066_v35  ;;  %v2967_v61 = vpop.xlane.xlu1 %2966  ;;  %v3145_v3 = vsel %vm1109_vm2, %v8517_v26, 0.0 }
 0x868   : > { %7030 = vpow2.f32 %v3120_v28  ;;  %v3051_v37 = vsub.f32 %v8379_v43, %v2967_v61  ;;  %v2964_v36 = vpop.xlane.xlu0 %2963  ;;  %3146 = vadd.xlane.f32.xlu1 %v3145_v3  ;;  %v3142_v34 = vsel %vm1109_vm2, %v8519_v57, 0.0 }
 0x869   : > { %7032 = vpow2.f32 %v3118_v31  ;;  %v3050_v51 = vsub.f32 %v8381_v0, %v2964_v36  ;;  %3143 = vadd.xlane.f32.xlu0 %v3142_v34 }
 0x86a   : > { %v8527_v46 = vpop.eup %7022  ;;  %v3088_v30 = vmul.f32 1.442695, %v3051_v37 }
 0x86b   : > { %v8529_v21 = vpop.eup %7024  ;;  %v3086_v13 = vmul.f32 1.442695, %v3050_v51  ;;  %v3021_v22 = vpop.xlane.xlu1 %3020  ;;  %v3199_v15 = vsel %vm1109_vm2, %v8527_v46, 0.0 }
 0x86c   : > { %7034 = vpow2.f32 %v3088_v30  ;;  %v3069_v43 = vsub.f32 %v8427_v52, %v3021_v22  ;;  %v3018_v32 = vpop.xlane.xlu0 %3017  ;;  %3200 = vadd.xlane.f32.xlu1 %v3199_v15  ;;  %v3196_v9 = vsel %vm1109_vm2, %v8529_v21, 0.0 }
 0x86d   : > { %7036 = vpow2.f32 %v3086_v13  ;;  %v3068_v0 = vsub.f32 %v8431_v60, %v3018_v32  ;;  %3197 = vadd.xlane.f32.xlu0 %v3196_v9 }
 0x86e   : > { %v8537_v41 = vpop.eup %7026  ;;  %v3124_v1 = vmul.f32 1.442695, %v3069_v43 }
 0x86f   : > { %v8539_v24 = vpop.eup %7028  ;;  %v3122_v55 = vmul.f32 1.442695, %v3068_v0  ;;  %v2973_v35 = vpop.xlane.xlu1 %2972  ;;  %v3151_v28 = vsel %vm1109_vm2, %v8537_v41, 0.0 }
 0x870   : > { %7038 = vpow2.f32 %v3124_v1  ;;  %v3053_v52 = vsub.f32 %v8383_v16, %v2973_v35  ;;  %v2970_v31 = vpop.xlane.xlu0 %2969  ;;  %3152 = vadd.xlane.f32.xlu1 %v3151_v28  ;;  %v3148_v61 = vsel %vm1109_vm2, %v8539_v24, 0.0 }
 0x871   : > { %7040 = vpow2.f32 %v3122_v55  ;;  %v3052_v60 = vsub.f32 %v8385_v14, %v2970_v31  ;;  %3149 = vadd.xlane.f32.xlu0 %v3148_v61 }
 0x872   : > { %v8547_v3 = vpop.eup %7030  ;;  %v3092_v37 = vmul.f32 1.442695, %v3053_v52 }
 0x873   : > { %v8549_v36 = vpop.eup %7032  ;;  %v3090_v34 = vmul.f32 1.442695, %v3052_v60  ;;  %v3027_v51 = vpop.xlane.xlu1 %3026  ;;  %v3205_v30 = vsel %vm1109_vm2, %v8547_v3, 0.0 }
 0x874   : > { %7042 = vpow2.f32 %v3092_v37  ;;  %v3071_v16 = vsub.f32 %v8439_v4, %v3027_v51  ;;  %v3024_v13 = vpop.xlane.xlu0 %3023  ;;  %3206 = vadd.xlane.f32.xlu1 %v3205_v30  ;;  %v3202_v22 = vsel %vm1109_vm2, %v8549_v36, 0.0 }
 0x875   : > { %7044 = vpow2.f32 %v3090_v34  ;;  %v3070_v14 = vsub.f32 %v8441_v8, %v3024_v13  ;;  %3203 = vadd.xlane.f32.xlu0 %v3202_v22 }
 0x876   : > { %v8557_v15 = vpop.eup %7034  ;;  %v3128_v43 = vmul.f32 1.442695, %v3071_v16 }
 0x877   : > { %v8559_v32 = vpop.eup %7036  ;;  %v3126_v9 = vmul.f32 1.442695, %v3070_v14  ;;  %v2979_v0 = vpop.xlane.xlu1 %2978  ;;  %v3157_v1 = vsel %vm1109_vm2, %v8557_v15, 0.0 }
 0x878   : > { %7046 = vpow2.f32 %v3128_v43  ;;  %v3055_v4 = vsub.f32 %v8387_v20, %v2979_v0  ;;  %v2976_v55 = vpop.xlane.xlu0 %2975  ;;  %3158 = vadd.xlane.f32.xlu1 %v3157_v1  ;;  %v3154_v35 = vsel %vm1109_vm2, %v8559_v32, 0.0 }
 0x879   : > { %7048 = vpow2.f32 %v3126_v9  ;;  %v3054_v8 = vsub.f32 %v8389_v45, %v2976_v55  ;;  %3155 = vadd.xlane.f32.xlu0 %v3154_v35 }
 0x87a   : > { %v8567_v28 = vpop.eup %7038  ;;  %v3096_v52 = vmul.f32 1.442695, %v3055_v4 }
 0x87b   : > { %v8569_v31 = vpop.eup %7040  ;;  %v3094_v61 = vmul.f32 1.442695, %v3054_v8  ;;  %v3033_v60 = vpop.xlane.xlu1 %3032  ;;  %v3211_v37 = vsel %vm1109_vm2, %v8567_v28, 0.0 }
 0x87c   : > { %7050 = vpow2.f32 %v3096_v52  ;;  %v3073_v20 = vsub.f32 %v8443_v33, %v3033_v60  ;;  %v3030_v34 = vpop.xlane.xlu0 %3029  ;;  %3212 = vadd.xlane.f32.xlu1 %v3211_v37  ;;  %v3208_v51 = vsel %vm1109_vm2, %v8569_v31, 0.0 }
 0x87d   : > { %7052 = vpow2.f32 %v3094_v61  ;;  %v3072_v45 = vsub.f32 %v8447_v40, %v3030_v34  ;;  %3209 = vadd.xlane.f32.xlu0 %v3208_v51 }
 0x87e   : > { %v8577_v30 = vpop.eup %7042  ;;  %v3132_v16 = vmul.f32 1.442695, %v3073_v20 }
 0x87f   : > { %v8579_v13 = vpop.eup %7044  ;;  %v3130_v22 = vmul.f32 1.442695, %v3072_v45  ;;  %v2985_v14 = vpop.xlane.xlu1 %2984  ;;  %v3163_v43 = vsel %vm1109_vm2, %v8577_v30, 0.0 }
 0x880   : > { %7054 = vpow2.f32 %v3132_v16  ;;  %v3057_v33 = vsub.f32 %v8391_v7, %v2985_v14  ;;  %v2982_v9 = vpop.xlane.xlu0 %2981  ;;  %3164 = vadd.xlane.f32.xlu1 %v3163_v43  ;;  %v3160_v0 = vsel %vm1109_vm2, %v8579_v13, 0.0 }
 0x881   : > { %7056 = vpow2.f32 %v3130_v22  ;;  %v3056_v40 = vsub.f32 %v8393_v44, %v2982_v9  ;;  %3161 = vadd.xlane.f32.xlu0 %v3160_v0 }
 0x882   : > { %v8587_v1 = vpop.eup %7046  ;;  %v3100_v4 = vmul.f32 1.442695, %v3057_v33 }
 0x883   : > { %v8589_v55 = vpop.eup %7048  ;;  %v3098_v35 = vmul.f32 1.442695, %v3056_v40  ;;  %v3039_v8 = vpop.xlane.xlu1 %3038  ;;  %v3217_v52 = vsel %vm1109_vm2, %v8587_v1, 0.0 }
 0x884   : > { %7058 = vpow2.f32 %v3100_v4  ;;  %v3075_v7 = vsub.f32 %v8455_v12, %v3039_v8  ;;  %v3036_v61 = vpop.xlane.xlu0 %3035  ;;  %3218 = vadd.xlane.f32.xlu1 %v3217_v52  ;;  %v3214_v60 = vsel %vm1109_vm2, %v8589_v55, 0.0 }
 0x885   : > { %7060 = vpow2.f32 %v3098_v35  ;;  %v3074_v44 = vsub.f32 %v8457_v19, %v3036_v61  ;;  %3215 = vadd.xlane.f32.xlu0 %v3214_v60 }
 0x886   : > { %v8597_v37 = vpop.eup %7050  ;;  %v3136_v20 = vmul.f32 1.442695, %v3075_v7 }
 0x887   : > { %v8599_v34 = vpop.eup %7052  ;;  %v3134_v51 = vmul.f32 1.442695, %v3074_v44  ;;  %v2991_v45 = vpop.xlane.xlu1 %2990  ;;  %v3169_v16 = vsel %vm1109_vm2, %v8597_v37, 0.0 }
 0x888   : > { %7062 = vpow2.f32 %v3136_v20  ;;  %v3059_v12 = vsub.f32 %v8395_v62, %v2991_v45  ;;  %v2988_v22 = vpop.xlane.xlu0 %2987  ;;  %3170 = vadd.xlane.f32.xlu1 %v3169_v16  ;;  %v3166_v14 = vsel %vm1109_vm2, %v8599_v34, 0.0 }
 0x889   : > { %7064 = vpow2.f32 %v3134_v51  ;;  %v3058_v19 = vsub.f32 %v8397_v11, %v2988_v22  ;;  %3167 = vadd.xlane.f32.xlu0 %v3166_v14 }
 0x88a   : > { %v8607_v43 = vpop.eup %7054  ;;  %v3104_v33 = vmul.f32 1.442695, %v3059_v12 }
 0x88b   : > { %v8609_v9 = vpop.eup %7056  ;;  %v3102_v0 = vmul.f32 1.442695, %v3058_v19  ;;  %v3045_v40 = vpop.xlane.xlu1 %3044  ;;  %v3223_v4 = vsel %vm1109_vm2, %v8607_v43, 0.0 }
 0x88c   : > { %7066 = vpow2.f32 %v3104_v33  ;;  %v3077_v62 = vsub.f32 %v8459_v23, %v3045_v40  ;;  %3224 = vadd.xlane.f32.xlu1 %v3223_v4  ;;  %v3042_v35 = vpop.xlane.xlu0 %3041  ;;  %v3220_v8 = vsel %vm1109_vm2, %v8609_v9, 0.0 }
 0x88d   : > { %7068 = vpow2.f32 %v3102_v0  ;;  %v3076_v11 = vsub.f32 %v8463_v17, %v3042_v35  ;;  %3221 = vadd.xlane.f32.xlu0 %v3220_v8 }
 0x88e   : > { %v8617_v52 = vpop.eup %7058  ;;  %v3140_v7 = vmul.f32 1.442695, %v3077_v62 }
 0x88f   : > { %v8619_v61 = vpop.eup %7060  ;;  %v3138_v60 = vmul.f32 1.442695, %v3076_v11  ;;  %v2997_v44 = vpop.xlane.xlu1 %2996  ;;  %v3175_v20 = vsel %vm1109_vm2, %v8617_v52, 0.0 }
 0x890   : > { %7070 = vpow2.f32 %v3140_v7  ;;  %v3061_v23 = vsub.f32 %v8399_v2, %v2997_v44  ;;  %3176 = vadd.xlane.f32.xlu1 %v3175_v20  ;;  %v2994_v51 = vpop.xlane.xlu0 %2993  ;;  %v3172_v45 = vsel %vm1109_vm2, %v8619_v61, 0.0 }
 0x891   : > { %7072 = vpow2.f32 %v3138_v60  ;;  %v3060_v17 = vsub.f32 %v8401_v59, %v2994_v51  ;;  %3173 = vadd.xlane.f32.xlu0 %v3172_v45 }
 0x892   : > { %v8627_v16 = vpop.eup %7062  ;;  %v3108_v12 = vmul.f32 1.442695, %v3061_v23 }
 0x893   : > { %v8629_v22 = vpop.eup %7064  ;;  %v3106_v14 = vmul.f32 1.442695, %v3060_v17  ;;  %v3229_v19 = vsel %vm1109_vm2, %v8627_v16, 0.0 }
 0x894   : > { %7074 = vpow2.f32 %v3108_v12  ;;  %3230 = vadd.xlane.f32.xlu1 %v3229_v19  ;;  %v3226_v2 = vsel %vm1109_vm2, %v8629_v22, 0.0 }
 0x895   : > { %7076 = vpow2.f32 %v3106_v14  ;;  %3227 = vadd.xlane.f32.xlu0 %v3226_v2 }
 0x896   : > { %v8635_v33 = vpop.eup %7066 }
 0x897   : > { %v8637_v59 = vpop.eup %7068  ;;  %v3181_v0 = vsel %vm1109_vm2, %v8635_v33, 0.0 }
 0x898   : > { %3182 = vadd.xlane.f32.xlu1 %v3181_v0  ;;  %v3178_v40 = vsel %vm1109_vm2, %v8637_v59, 0.0 }
 0x899   : > { %3179 = vadd.xlane.f32.xlu0 %v3178_v40 }
 0x89a   : > { %v8643_v4 = vpop.eup %7070 }
 0x89b   : > { %v8645_v62 = vpop.eup %7072  ;;  %v3235_v35 = vsel %vm1109_vm2, %v8643_v4, 0.0 }
 0x89c   : > { %3236 = vadd.xlane.f32.xlu1 %v3235_v35  ;;  %v3232_v8 = vsel %vm1109_vm2, %v8645_v62, 0.0 }
 0x89d   : > { %3233 = vadd.xlane.f32.xlu0 %v3232_v8 }
 0x89e   : > { %v8651_v11 = vpop.eup %7074 }
 0x89f   : > { %v8653_v7 = vpop.eup %7076  ;;  %v3187_v60 = vsel %vm1109_vm2, %v8651_v11, 0.0 }
 0x8a0   : > { %3188 = vadd.xlane.f32.xlu1 %v3187_v60  ;;  %v3184_v44 = vsel %vm1109_vm2, %v8653_v7, 0.0 }
 0x8a1   : > { %3185 = vadd.xlane.f32.xlu0 %v3184_v44 }
 0x8ce   : > { %3485 = vxpose.xlu0.b32.start [1/2] (short) %v7423_v47, 128 }
 0x8d2   : > { %3486 = vxpose.xlu0.b32.end [2/2] (short) %v7427_v49, 128 }
 0x8d3   : > { %3517 = vxpose.xlu1.b32.start [1/2] (short) %v7425_v48, 128 }
 0x8d7   : > { %3518 = vxpose.xlu1.b32.end [2/2] (short) %v7429_v50, 128 }
 0x8f1   : > { %v3195_v20 = vpop.xlane.xlu1 %3194 }
 0x8f2   : > { %7078 = vrcp.f32 %v3195_v20  ;;  %v3192_v23 = vpop.xlane.xlu0 %3191 }
 0x8f3   : > { %7080 = vrcp.f32 %v3192_v23 }
 0x8f5   : > { %v3147_v51 = vpop.xlane.xlu1 %3146 }
 0x8f6   : > { %7082 = vrcp.f32 %v3147_v51  ;;  %v3144_v45 = vpop.xlane.xlu0 %3143 }
 0x8f7   : > { %7084 = vrcp.f32 %v3144_v45 }
 0x8f9   : > { %v3201_v17 = vpop.xlane.xlu1 %3200 }
 0x8fa   : > { %7086 = vrcp.f32 %v3201_v17  ;;  %v3198_v12 = vpop.xlane.xlu0 %3197 }
 0x8fb   : > { %7088 = vrcp.f32 %v3198_v12 }
 0x8fc   : > { %v7079_v14 = vpop.eup %7078 }
 0x8fd   : > { %v7081_v47 = vpop.eup %7080  ;;  %v3153_v19 = vpop.xlane.xlu1 %3152  ;;  %v3287_v49 = vmul.f32 %v7079_v14, %v8507_v53 }
 0x8fe   : > { %7090 = vrcp.f32 %v3153_v19  ;;  %v3150_v48 = vpop.xlane.xlu0 %3149  ;;  %v3286_v50 = vmul.f32 %v7081_v47, %v8509_v56 }
 0x8ff   : > { %7092 = vrcp.f32 %v3150_v48 }
 0x900   : > { %v7083_v2 = vpop.eup %7082  ;;  %v6605_v0 = vpack.c.bf16 %v3287_v49, %v3286_v50 }
 0x901   : > { %v7085_v40 = vpop.eup %7084  ;;  %v3271_v35 = vmul.f32 %v7083_v2, %v8517_v26  ;;  %v3207_v8 = vpop.xlane.xlu1 %3206 }
 0x902   : > { %v3270_v60 = vmul.f32 %v7085_v40, %v8519_v57  ;;  %7094 = vrcp.f32 %v3207_v8  ;;  %6607 = vmatprep.subr.msk.bf16.mxu1 %vm7827_vm3, %v6605_v0  ;;  %v3204_v44 = vpop.xlane.xlu0 %3203 }
 0x903   : > { %7096 = vrcp.f32 %v3204_v44 }
 0x904   : > { %v7087_v53 = vpop.eup %7086  ;;  %v6608_v20 = vpack.c.bf16 %v3271_v35, %v3270_v60 }
 0x905   : > { %v7089_v23 = vpop.eup %7088  ;;  %v3159_v51 = vpop.xlane.xlu1 %3158  ;;  %v3289_v56 = vmul.f32 %v7087_v53, %v8527_v46 }
 0x906   : > { %7098 = vrcp.f32 %v3159_v51  ;;  %6610 = vmatpush3.bf16.xpose.msk.msra.mxu1 %vm7827_vm3, %v6608_v20  ;;  %v3156_v26 = vpop.xlane.xlu0 %3155  ;;  %v3288_v45 = vmul.f32 %v7089_v23, %v8529_v21 }
 0x907   : > { %7100 = vrcp.f32 %v3156_v26 }
 0x908   : > { %v7091_v57 = vpop.eup %7090  ;;  %v6611_v17 = vpack.c.bf16 %v3289_v56, %v3288_v45 }
 0x909   : > { %v7093_v12 = vpop.eup %7092  ;;  %v3273_v14 = vmul.f32 %v7091_v57, %v8537_v41  ;;  %v3213_v47 = vpop.xlane.xlu1 %3212 }
 0x90a   : > { %v3272_v19 = vmul.f32 %v7093_v12, %v8539_v24  ;;  %7102 = vrcp.f32 %v3213_v47  ;;  %6613 = vmatprep.subr.msk.bf16.mxu1 %vm7827_vm3, %v6611_v17  ;;  %v3210_v46 = vpop.xlane.xlu0 %3209 }
 0x90b   : > { %7104 = vrcp.f32 %v3210_v46 }
 0x90c   : > { %v7095_v49 = vpop.eup %7094  ;;  %v6614_v48 = vpack.c.bf16 %v3273_v14, %v3272_v19 }
 0x90d   : > { %v7097_v50 = vpop.eup %7096  ;;  %v3165_v2 = vpop.xlane.xlu1 %3164  ;;  %v3291_v21 = vmul.f32 %v7095_v49, %v8547_v3 }
 0x90e   : > { %7106 = vrcp.f32 %v3165_v2  ;;  %6616 = vmatpush3.bf16.xpose.msk.msra.mxu1 %vm7827_vm3, %v6614_v48  ;;  %v3162_v41 = vpop.xlane.xlu0 %3161  ;;  %v3290_v0 = vmul.f32 %v7097_v50, %v8549_v36 }
 0x90f   : > { %7108 = vrcp.f32 %v3162_v41 }
 0x910   : > { %v7099_v24 = vpop.eup %7098  ;;  %v6617_v40 = vpack.c.bf16 %v3291_v21, %v3290_v0 }
 0x911   : > { %v7101_v35 = vpop.eup %7100  ;;  %v3275_v8 = vmul.f32 %v7099_v24, %v8557_v15  ;;  %v3219_v60 = vpop.xlane.xlu1 %3218 }
 0x912   : > { %v3274_v44 = vmul.f32 %v7101_v35, %v8559_v32  ;;  %7110 = vrcp.f32 %v3219_v60  ;;  %6619 = vmatprep.subr.msk.bf16.mxu1 %vm7827_vm3, %v6617_v40  ;;  %v3216_v3 = vpop.xlane.xlu0 %3215 }
 0x913   : > { %7112 = vrcp.f32 %v3216_v3 }
 0x914   : > { %v7103_v53 = vpop.eup %7102  ;;  %v6620_v20 = vpack.c.bf16 %v3275_v8, %v3274_v44 }
 0x915   : > { %v7105_v23 = vpop.eup %7104  ;;  %v3171_v51 = vpop.xlane.xlu1 %3170  ;;  %v3293_v36 = vmul.f32 %v7103_v53, %v8567_v28 }
 0x916   : > { %7114 = vrcp.f32 %v3171_v51  ;;  %6622 = vmatpush3.bf16.xpose.msk.msra.mxu1 %vm7827_vm3, %v6620_v20  ;;  %v3168_v15 = vpop.xlane.xlu0 %3167  ;;  %v3292_v56 = vmul.f32 %v7105_v23, %v8569_v31 }
 0x917   : > { %7116 = vrcp.f32 %v3168_v15 }
 0x918   : > { %v7107_v32 = vpop.eup %7106  ;;  %v6623_v26 = vpack.c.bf16 %v3293_v36, %v3292_v56 }
 0x919   : > { %v7109_v45 = vpop.eup %7108  ;;  %v3277_v57 = vmul.f32 %v7107_v32, %v8577_v30  ;;  %v3225_v17 = vpop.xlane.xlu1 %3224 }
 0x91a   : > { %v3276_v12 = vmul.f32 %v7109_v45, %v8579_v13  ;;  %7118 = vrcp.f32 %v3225_v17  ;;  %6625 = vmatprep.subr.msk.bf16.mxu1 %vm7827_vm3, %v6623_v26  ;;  %v3222_v28 = vpop.xlane.xlu0 %3221 }
 0x91b   : > { %7120 = vrcp.f32 %v3222_v28 }
 0x91c   : > { %v7111_v14 = vpop.eup %7110  ;;  %v6626_v47 = vpack.c.bf16 %v3277_v57, %v3276_v12 }
 0x91d   : > { %v7113_v19 = vpop.eup %7112  ;;  %v3177_v46 = vpop.xlane.xlu1 %3176  ;;  %v3295_v31 = vmul.f32 %v7111_v14, %v8587_v1 }
 0x91e   : > { %7122 = vrcp.f32 %v3177_v46  ;;  %6628 = vmatpush3.bf16.xpose.msk.msra.mxu1 %vm7827_vm3, %v6626_v47  ;;  %v3174_v30 = vpop.xlane.xlu0 %3173  ;;  %v3294_v49 = vmul.f32 %v7113_v19, %v8589_v55 }
 0x91f   : > { %7124 = vrcp.f32 %v3174_v30 }
 0x920   : > { %v7115_v13 = vpop.eup %7114  ;;  %v6629_v48 = vpack.c.bf16 %v3295_v31, %v3294_v49  ;;  %v9333_v31 = vld [vmem:[#allocation5_spill] sm:$0xff] }
 0x921   : > { %v7117_v50 = vpop.eup %7116  ;;  %v3279_v2 = vmul.f32 %v7115_v13, %v8597_v37  ;;  %v3231_v21 = vpop.xlane.xlu1 %3230 }
 0x922   : > { %v3278_v41 = vmul.f32 %v7117_v50, %v8599_v34  ;;  %7126 = vrcp.f32 %v3231_v21  ;;  %6631 = vmatprep.subr.msk.bf16.mxu1 %vm7827_vm3, %v6629_v48  ;;  %v3228_v1 = vpop.xlane.xlu0 %3227 }
 0x923   : > { %7128 = vrcp.f32 %v3228_v1 }
 0x924   : > { %v7119_v0 = vpop.eup %7118  ;;  %v6632_v24 = vpack.c.bf16 %v3279_v2, %v3278_v41 }
 0x925   : > { %v7121_v40 = vpop.eup %7120  ;;  %v3183_v35 = vpop.xlane.xlu1 %3182  ;;  %v3297_v55 = vmul.f32 %v7119_v0, %v8607_v43 }
 0x926   : > { %7130 = vrcp.f32 %v3183_v35  ;;  %6634 = vmatpush3.bf16.xpose.msk.msra.mxu1 %vm7827_vm3, %v6632_v24  ;;  %v3180_v37 = vpop.xlane.xlu0 %3179  ;;  %v3296_v8 = vmul.f32 %v7121_v40, %v8609_v9 }
 0x927   : > { %7132 = vrcp.f32 %v3180_v37 }
 0x928   : > { %v7123_v34 = vpop.eup %7122  ;;  %v6635_v60 = vpack.c.bf16 %v3297_v55, %v3296_v8 }
 0x929   : > { %v7125_v44 = vpop.eup %7124  ;;  %v3281_v3 = vmul.f32 %v7123_v34, %v8617_v52  ;;  %v3237_v53 = vpop.xlane.xlu1 %3236 }
 0x92a   : > { %v3280_v20 = vmul.f32 %v7125_v44, %v8619_v61  ;;  %7134 = vrcp.f32 %v3237_v53  ;;  %6637 = vmatprep.subr.msk.bf16.mxu1 %vm7827_vm3, %v6635_v60  ;;  %v3234_v43 = vpop.xlane.xlu0 %3233  ;;  %v9335_v53 = vmov 0.0  }
 0x92b   : > { %7136 = vrcp.f32 %v3234_v43 }
 0x92c   : > { %v7127_v23 = vpop.eup %7126  ;;  %v6638_v51 = vpack.c.bf16 %v3281_v3, %v3280_v20 }
 0x92d   : > { %v7129_v36 = vpop.eup %7128  ;;  %v3189_v15 = vpop.xlane.xlu1 %3188  ;;  %v3299_v9 = vmul.f32 %v7127_v23, %v8627_v16 }
 0x92e   : > { %7138 = vrcp.f32 %v3189_v15  ;;  %6640 = vmatpush3.bf16.xpose.msk.msra.mxu1 %vm7827_vm3, %v6638_v51  ;;  %v3186_v52 = vpop.xlane.xlu0 %3185  ;;  %v3298_v56 = vmul.f32 %v7129_v36, %v8629_v22 }
 0x92f   : > { %7140 = vrcp.f32 %v3186_v52 }
 0x930   : > { %v7131_v61 = vpop.eup %7130  ;;  %v6641_v32 = vpack.c.bf16 %v3299_v9, %v3298_v56 }
 0x931   : > { %v7133_v26 = vpop.eup %7132  ;;  %v3283_v45 = vmul.f32 %v7131_v61, %v8635_v33 }
 0x932   : > { %v3282_v57 = vmul.f32 %v7133_v26, %v8637_v59  ;;  %6643 = vmatprep.subr.msk.bf16.mxu1 %vm7827_vm3, %v6641_v32 }
 0x934   : > { %v7135_v17 = vpop.eup %7134  ;;  %v6644_v16 = vpack.c.bf16 %v3283_v45, %v3282_v57 }
 0x935   : > { %v7137_v12 = vpop.eup %7136  ;;  %v3301_v28 = vmul.f32 %v7135_v17, %v8643_v4  ;;  %v9331_v4 = vpack.c.bf16 %v7957_v18, %v7951_v25 }
 0x936   : > { %6646 = vmatpush3.bf16.xpose.msk.msra.mxu1 %vm7827_vm3, %v6644_v16  ;;  %v3300_v22 = vmul.f32 %v7137_v12, %v8645_v62 }
 0x938   : > { %v7139_v14 = vpop.eup %7138  ;;  %v6647_v47 = vpack.c.bf16 %v3301_v28, %v3300_v22 }
 0x939   : > { %v7141_v19 = vpop.eup %7140  ;;  %v3285_v33 = vmul.f32 %v7139_v14, %v8651_v11 }
 0x93a   : > { %v3284_v59 = vmul.f32 %v7141_v19, %v8653_v7  ;;  %6649 = vmatprep.subr.msk.bf16.mxu1 %vm7827_vm3, %v6647_v47 }
 0x93c   : > { %v6650_v46 = vpack.c.bf16 %v3285_v33, %v3284_v59 }
 0x93e   : > { %6652 = vmatpush3.bf16.xpose.msk.msra.mxu1 %vm7827_vm3, %v6650_v46 }
 0x93f   : > { %6654 = vmatprep.subr.bf16.mxu1 %v7810_v58 }
 0x945   : > { %6166 = vmatmul.mubr.msk.f32.vlgmr.msra.gmra.mrb[52].mxu1 %vm1109_vm2, %v7930_v6  ;;  %v9332_v6 = vld [vmem:[#allocation6_spill] sm:$0xff] }
 0x946   : > { %6167 = vmatprep.mubr.msk.f32.mxu1 %vm1109_vm2, %v7928_v10  ;;  %6656 = vmatpush3.bf16.msra.mxu1 %v7810_v58  ;;  %v9334_v30 = vpack.c.bf16 %v9332_v6, %v9333_v31 }
 0x947   : > { %6706 = vmatprep.subr.bf16.mxu1 %v9331_v4 }
 0x949   : > { %6168 = vmatmul.mubr.msk.f32.gmra.mrb[54].mxu1 %vm1109_vm2, %v7928_v10 }
 0x94e   : > { %v3501_v62 = vpop.trf.xlu0 }
 0x94f   : > { %6433 = vmatprep.mubr.msk.f32.mxu1 %vm787_vm1, %v3501_v62 }
 0x952   : > { %v3502_v11 = vpop.trf.xlu0 }
 0x953   : > { %6434 = vmatmul.mubr.msk.f32.vlgmr.msra.gmra.mrb[56].mxu1 %vm787_vm1, %v3502_v11  ;;  %v3533_v7 = vpop.trf.xlu1 }
 0x954   : > { %6708 = vmatpush1.bf16.msra.mxu1 %v9334_v30 }
 0x955   : > { %6710 = vmatprep.subr.bf16.mxu1 %v6709_v29 }
 0x956   : > { %v3503_v58 = vpop.trf.xlu0 }
 0x957   : > { %6436 = vmatprep.mubr.msk.f32.mxu1 %vm787_vm1, %v3503_v58  ;;  %v3534_v25 = vpop.trf.xlu1 }
 0x958   : > { %6712 = vmatpush1.bf16.msra.mxu1 %v6711_v5 }
 0x95a   : > { %v3504_v10 = vpop.trf.xlu0 }
 0x95b   : > { %6437 = vmatmul.mubr.msk.f32.gmra.mrb[58].mxu1 %vm787_vm1, %v3504_v10  ;;  %v3535_v18 = vpop.trf.xlu1 }
 0x95e   : > { %v3505_v49 = vpop.trf.xlu0 }
 0x95f   : > { %6439 = vmatprep.mubr.msk.f32.mxu1 %vm787_vm1, %v3505_v49  ;;  %v3536_v13 = vpop.trf.xlu1 }
 0x962   : > { %v3506_v48 = vpop.trf.xlu0 }
 0x963   : > { %6440 = vmatmul.mubr.msk.f32.gmra.mrb[60].mxu1 %vm787_vm1, %v3506_v48  ;;  %v3537_v39 = vpop.trf.xlu1 }
 0x966   : > { %v3507_v38 = vpop.trf.xlu0 }
 0x967   : > { %6442 = vmatprep.mubr.msk.f32.mxu1 %vm787_vm1, %v3507_v38  ;;  %v3538_v27 = vpop.trf.xlu1 }
 0x96a   : > { %v3508_v29 = vpop.trf.xlu0 }
 0x96b   : > { %6443 = vmatmul.mubr.msk.f32.gmra.mrb[62].mxu1 %vm787_vm1, %v3508_v29  ;;  %v3539_v50 = vpop.trf.xlu1 }
 0x96e   : > { %v3509_v54 = vpop.trf.xlu0 }
 0x96f   : > { %6445 = vmatprep.mubr.msk.f32.mxu1 %vm787_vm1, %v3509_v54  ;;  %v3540_v21 = vpop.trf.xlu1 }
 0x972   : > { %v3510_v5 = vpop.trf.xlu0 }
 0x973   : > { %6446 = vmatmul.mubr.msk.f32.gmra.mrb[64].mxu1 %vm787_vm1, %v3510_v5  ;;  %v3541_v0 = vpop.trf.xlu1 }
 0x976   : > { %v3511_v2 = vpop.trf.xlu0 }
 0x977   : > { %6448 = vmatprep.mubr.msk.f32.mxu1 %vm787_vm1, %v3511_v2  ;;  %v3542_v40 = vpop.trf.xlu1 }
 0x97a   : > { %v3512_v41 = vpop.trf.xlu0 }
 0x97b   : > { %6449 = vmatmul.mubr.msk.f32.gmra.mrb[66].mxu1 %vm787_vm1, %v3512_v41  ;;  %v3543_v37 = vpop.trf.xlu1 }
 0x97e   : > { %v3513_v1 = vpop.trf.xlu0 }
 0x97f   : > { %6451 = vmatprep.mubr.msk.f32.mxu1 %vm787_vm1, %v3513_v1  ;;  %v3544_v8 = vpop.trf.xlu1 }
 0x982   : > { %v3514_v24 = vpop.trf.xlu0 }
 0x983   : > { %6452 = vmatmul.mubr.msk.f32.gmra.mrb[68].mxu1 %vm787_vm1, %v3514_v24  ;;  %v3545_v34 = vpop.trf.xlu1 }
 0x986   : > { %v3515_v35 = vpop.trf.xlu0 }
 0x987   : > { %6454 = vmatprep.mubr.msk.f32.mxu1 %vm787_vm1, %v3515_v35  ;;  %v3546_v60 = vpop.trf.xlu1 }
 0x98a   : > { %v3516_v55 = vpop.trf.xlu0 }
 0x98b   : > { %6455 = vmatmul.mubr.msk.f32.gmra.mrb[70].mxu1 %vm787_vm1, %v3516_v55  ;;  %v3547_v44 = vpop.trf.xlu1 }
 0x98c   : > { %6457 = vmatprep.mubr.msk.f32.mxu1 %vm787_vm1, %v3533_v7 }
 0x98f   : > { %6458 = vmatmul.mubr.msk.f32.gmra.mrb[72].mxu1 %vm787_vm1, %v3534_v25  ;;  %v3548_v3 = vpop.trf.xlu1 }
 0x990   : > { %6460 = vmatprep.mubr.msk.f32.mxu1 %vm787_vm1, %v3535_v18 }
 0x993   : > { %6461 = vmatmul.mubr.msk.f32.gmra.mrb[74].mxu1 %vm787_vm1, %v3536_v13 }
 0x994   : > { %6463 = vmatprep.mubr.msk.f32.mxu1 %vm787_vm1, %v3537_v39 }
 0x997   : > { %6464 = vmatmul.mubr.msk.f32.gmra.mrb[76].mxu1 %vm787_vm1, %v3538_v27 }
 0x998   : > { %6466 = vmatprep.mubr.msk.f32.mxu1 %vm787_vm1, %v3539_v50 }
 0x99b   : > { %6467 = vmatmul.mubr.msk.f32.gmra.mrb[78].mxu1 %vm787_vm1, %v3540_v21 }
 0x99c   : > { %6469 = vmatprep.mubr.msk.f32.mxu1 %vm787_vm1, %v3541_v0 }
 0x99f   : > { %6470 = vmatmul.mubr.msk.f32.gmra.mrb[80].mxu1 %vm787_vm1, %v3542_v40 }
 0x9a0   : > { %6472 = vmatprep.mubr.msk.f32.mxu1 %vm787_vm1, %v3543_v37 }
 0x9a3   : > { %6473 = vmatmul.mubr.msk.f32.gmra.mrb[82].mxu1 %vm787_vm1, %v3544_v8 }
 0x9a4   : > { %6475 = vmatprep.mubr.msk.f32.mxu1 %vm787_vm1, %v3545_v34 }
 0x9a7   : > { %6476 = vmatmul.mubr.msk.f32.gmra.mrb[84].mxu1 %vm787_vm1, %v3546_v60 }
 0x9a8   : > { %6478 = vmatprep.mubr.msk.f32.mxu1 %vm787_vm1, %v3547_v44 }
 0x9ab   : > { %6479 = vmatmul.mubr.msk.f32.gmra.mrb[86].mxu1 %vm787_vm1, %v3548_v3 }
 0x9ac   : > { %4495 = vmatprep.mubr.f32.mxu1 %v9335_v53 }
 0xa18   : > { %v3470_v20 = vpop.f32.mrb[52].mxu1 }
 0xa19   : > { %v3472_v43 = vpop.f32.mrb[53].mxu1 }
 0xa1c   : > { %v3476_v23 = vpop.f32.mrb[54].mxu1 }
 0xa1d   : > { %v6715_v51 = vpack.c.bf16 %v3476_v23, %v3470_v20  ;;  %v3478_v36 = vpop.f32.mrb[55].mxu1 }
 0xa1e   : > { %v6713_v15 = vpack.c.bf16 %v3478_v36, %v3472_v43 }
 0xa20   : > { %6714 = vmatprep.subr.bf16.mxu1 %v6713_v15 }
 0xa21   : > { %6716 = vmatpush1.bf16.msra.mxu1 %v6715_v51 }
 0xa26   : > { %v8780_v9 = vpop.f32.mrb[56].mxu1 }
 0xa27   : > { %v8782_v52 = vpop.f32.mrb[57].mxu1  ;;  %v3873_v11 = vsel %vm1109_vm2, %v8780_v9, -inf }
 0xa28   : > { %v3870_v6 = vsel %vm1109_vm2, %v8782_v52, -inf }
 0xa2e   : > { %v8784_v56 = vpop.f32.mrb[58].mxu1 }
 0xa2f   : > { %v8786_v61 = vpop.f32.mrb[59].mxu1  ;;  %v3879_v18 = vsel %vm1109_vm2, %v8784_v56, -inf }
 0xa30   : > { %v3876_v13 = vsel %vm1109_vm2, %v8786_v61, -inf }
 0xa36   : > { %v8788_v32 = vpop.f32.mrb[60].mxu1 }
 0xa37   : > { %v8790_v26 = vpop.f32.mrb[61].mxu1  ;;  %v3885_v54 = vsel %vm1109_vm2, %v8788_v32, -inf }
 0xa38   : > { %v3882_v50 = vsel %vm1109_vm2, %v8790_v26, -inf }
 0xa3e   : > { %v8792_v45 = vpop.f32.mrb[62].mxu1 }
 0xa3f   : > { %v8794_v57 = vpop.f32.mrb[63].mxu1  ;;  %v3891_v24 = vsel %vm1109_vm2, %v8792_v45, -inf }
 0xa40   : > { %v3888_v35 = vsel %vm1109_vm2, %v8794_v57, -inf }
 0xa46   : > { %v8796_v17 = vpop.f32.mrb[64].mxu1 }
 0xa47   : > { %v8798_v16 = vpop.f32.mrb[65].mxu1  ;;  %v3897_v8 = vsel %vm1109_vm2, %v8796_v17, -inf }
 0xa48   : > { %v3894_v34 = vsel %vm1109_vm2, %v8798_v16, -inf }
 0xa4e   : > { %v8800_v12 = vpop.f32.mrb[66].mxu1 }
 0xa4f   : > { %v8802_v28 = vpop.f32.mrb[67].mxu1  ;;  %v3903_v3 = vsel %vm1109_vm2, %v8800_v12, -inf }
 0xa50   : > { %v3900_v20 = vsel %vm1109_vm2, %v8802_v28, -inf }
 0xa56   : > { %v8804_v22 = vpop.f32.mrb[68].mxu1 }
 0xa57   : > { %v8806_v14 = vpop.f32.mrb[69].mxu1  ;;  %v3909_v51 = vsel %vm1109_vm2, %v8804_v22, -inf }
 0xa58   : > { %v3906_v36 = vsel %vm1109_vm2, %v8806_v14, -inf }
 0xa5e   : > { %v8808_v47 = vpop.f32.mrb[70].mxu1 }
 0xa5f   : > { %v8810_v19 = vpop.f32.mrb[71].mxu1 }
 0xa62   : > { %v8812_v33 = vpop.f32.mrb[72].mxu1 }
 0xa63   : > { %v8814_v59 = vpop.f32.mrb[73].mxu1  ;;  %v3921_v46 = vsel %vm1109_vm2, %v8812_v33, -inf }
 0xa64   : > { %3922 = vmax.xlane.f32.xlu1 %v3921_v46  ;;  %v3918_v4 = vsel %vm1109_vm2, %v8814_v59, -inf }
 0xa65   : > { %3919 = vmax.xlane.f32.xlu0 %v3918_v4  ;;  %v3915_v4 = vsel %vm1109_vm2, %v8808_v47, -inf }
 0xa66   : > { %v8820_v62 = vpop.f32.mrb[74].mxu1 }
 0xa67   : > { %v8824_v7 = vpop.f32.mrb[75].mxu1  ;;  %v3927_v31 = vsel %vm1109_vm2, %v8820_v62, -inf }
 0xa68   : > { %3874 = vmax.xlane.f32.xlu1 %v3873_v11  ;;  %v3924_v30 = vsel %vm1109_vm2, %v8824_v7, -inf  ;;  %v3912_v11 = vsel %vm1109_vm2, %v8810_v19, -inf }
 0xa69   : > { %3871 = vmax.xlane.f32.xlu0 %v3870_v6 }
 0xa6a   : > { %v8832_v58 = vpop.f32.mrb[76].mxu1 }
 0xa6b   : > { %v8834_v25 = vpop.f32.mrb[77].mxu1  ;;  %v3933_v48 = vsel %vm1109_vm2, %v8832_v58, -inf }
 0xa6c   : > { %3928 = vmax.xlane.f32.xlu1 %v3927_v31  ;;  %v3930_v38 = vsel %vm1109_vm2, %v8834_v25, -inf }
 0xa6d   : > { %3925 = vmax.xlane.f32.xlu0 %v3924_v30 }
 0xa6e   : > { %v8836_v10 = vpop.f32.mrb[78].mxu1 }
 0xa6f   : > { %v8840_v49 = vpop.f32.mrb[79].mxu1  ;;  %v3939_v2 = vsel %vm1109_vm2, %v8836_v10, -inf }
 0xa70   : > { %3880 = vmax.xlane.f32.xlu1 %v3879_v18  ;;  %v3936_v21 = vsel %vm1109_vm2, %v8840_v49, -inf }
 0xa71   : > { %3877 = vmax.xlane.f32.xlu0 %v3876_v13 }
 0xa72   : > { %v8848_v39 = vpop.f32.mrb[80].mxu1 }
 0xa73   : > { %v8850_v29 = vpop.f32.mrb[81].mxu1  ;;  %v3945_v55 = vsel %vm1109_vm2, %v8848_v39, -inf }
 0xa74   : > { %3934 = vmax.xlane.f32.xlu1 %v3933_v48  ;;  %v3942_v37 = vsel %vm1109_vm2, %v8850_v29, -inf }
 0xa75   : > { %3931 = vmax.xlane.f32.xlu0 %v3930_v38 }
 0xa76   : > { %v8852_v27 = vpop.f32.mrb[82].mxu1 }
 0xa77   : > { %v8856_v5 = vpop.f32.mrb[83].mxu1  ;;  %v3951_v60 = vsel %vm1109_vm2, %v8852_v27, -inf }
 0xa78   : > { %3886 = vmax.xlane.f32.xlu1 %v3885_v54  ;;  %v3948_v44 = vsel %vm1109_vm2, %v8856_v5, -inf }
 0xa79   : > { %3883 = vmax.xlane.f32.xlu0 %v3882_v50 }
 0xa7a   : > { %v8864_v41 = vpop.f32.mrb[84].mxu1 }
 0xa7b   : > { %v8866_v1 = vpop.f32.mrb[85].mxu1  ;;  %v3957_v43 = vsel %vm1109_vm2, %v8864_v41, -inf }
 0xa7c   : > { %3940 = vmax.xlane.f32.xlu1 %v3939_v2  ;;  %v3954_v23 = vsel %vm1109_vm2, %v8866_v1, -inf }
 0xa7d   : > { %3937 = vmax.xlane.f32.xlu0 %v3936_v21 }
 0xa7e   : > { %v8868_v0 = vpop.f32.mrb[86].mxu1 }
 0xa7f   : > { %v8872_v40 = vpop.f32.mrb[87].mxu1  ;;  %v3963_v15 = vsel %vm1109_vm2, %v8868_v0, -inf }
 0xa80   : > { %3892 = vmax.xlane.f32.xlu1 %v3891_v24  ;;  %v3960_v46 = vsel %vm1109_vm2, %v8872_v40, -inf }
 0xa81   : > { %3889 = vmax.xlane.f32.xlu0 %v3888_v35 }
 0xa84   : > { %3946 = vmax.xlane.f32.xlu1 %v3945_v55 }
 0xa85   : > { %3943 = vmax.xlane.f32.xlu0 %v3942_v37 }
 0xa88   : > { %3898 = vmax.xlane.f32.xlu1 %v3897_v8 }
 0xa89   : > { %3895 = vmax.xlane.f32.xlu0 %v3894_v34 }
 0xa8c   : > { %3952 = vmax.xlane.f32.xlu1 %v3951_v60 }
 0xa8d   : > { %3949 = vmax.xlane.f32.xlu0 %v3948_v44 }
 0xa90   : > { %3904 = vmax.xlane.f32.xlu1 %v3903_v3 }
 0xa91   : > { %3901 = vmax.xlane.f32.xlu0 %v3900_v20 }
 0xa94   : > { %3958 = vmax.xlane.f32.xlu1 %v3957_v43 }
 0xa95   : > { %3955 = vmax.xlane.f32.xlu0 %v3954_v23 }
 0xa98   : > { %3910 = vmax.xlane.f32.xlu1 %v3909_v51 }
 0xa99   : > { %3907 = vmax.xlane.f32.xlu0 %v3906_v36 }
 0xa9c   : > { %3964 = vmax.xlane.f32.xlu1 %v3963_v15 }
 0xa9d   : > { %3961 = vmax.xlane.f32.xlu0 %v3960_v46 }
 0xaa0   : > { %3916 = vmax.xlane.f32.xlu1 %v3915_v4 }
 0xaa1   : > { %3913 = vmax.xlane.f32.xlu0 %v3912_v11 }
 0xaf1   : > { %v3923_v6 = vpop.xlane.xlu1 %3922 }
 0xaf2   : > { %v3983_v31 = vsub.f32 %v8812_v33, %v3923_v6  ;;  %v3920_v30 = vpop.xlane.xlu0 %3919 }
 0xaf3   : > { %v3982_v18 = vsub.f32 %v8814_v59, %v3920_v30 }
 0xaf4   : > { %v4032_v13 = vmul.f32 1.442695, %v3983_v31 }
 0xaf5   : > { %v4030_v48 = vmul.f32 1.442695, %v3982_v18  ;;  %v3875_v38 = vpop.xlane.xlu1 %3874 }
 0xaf6   : > { %7142 = vpow2.f32 %v4032_v13  ;;  %v3967_v54 = vsub.f32 %v8780_v9, %v3875_v38  ;;  %v3872_v50 = vpop.xlane.xlu0 %3871 }
 0xaf7   : > { %7144 = vpow2.f32 %v4030_v48  ;;  %v3966_v2 = vsub.f32 %v8782_v52, %v3872_v50 }
 0xaf8   : > { %v4000_v21 = vmul.f32 1.442695, %v3967_v54 }
 0xaf9   : > { %v3998_v24 = vmul.f32 1.442695, %v3966_v2  ;;  %v3929_v35 = vpop.xlane.xlu1 %3928 }
 0xafa   : > { %7146 = vpow2.f32 %v4000_v21  ;;  %v3985_v55 = vsub.f32 %v8820_v62, %v3929_v35  ;;  %v3926_v33 = vpop.xlane.xlu0 %3925 }
 0xafb   : > { %7148 = vpow2.f32 %v3998_v24  ;;  %v3984_v59 = vsub.f32 %v8824_v7, %v3926_v33 }
 0xafc   : > { %v4036_v37 = vmul.f32 1.442695, %v3985_v55 }
 0xafd   : > { %v4034_v8 = vmul.f32 1.442695, %v3984_v59  ;;  %v3881_v34 = vpop.xlane.xlu1 %3880 }
 0xafe   : > { %7150 = vpow2.f32 %v4036_v37  ;;  %v3969_v9 = vsub.f32 %v8784_v56, %v3881_v34  ;;  %v3878_v60 = vpop.xlane.xlu0 %3877 }
 0xaff   : > { %7152 = vpow2.f32 %v4034_v8  ;;  %v3968_v52 = vsub.f32 %v8786_v61, %v3878_v60 }
 0xb00   : > { %v8916_v44 = vpop.eup %7142  ;;  %v4004_v3 = vmul.f32 1.442695, %v3969_v9 }
 0xb01   : > { %v8918_v20 = vpop.eup %7144  ;;  %v4002_v62 = vmul.f32 1.442695, %v3968_v52  ;;  %v3935_v43 = vpop.xlane.xlu1 %3934  ;;  %v4113_v7 = vsel %vm1109_vm2, %v8916_v44, 0.0 }
 0xb02   : > { %7154 = vpow2.f32 %v4004_v3  ;;  %v3987_v23 = vsub.f32 %v8832_v58, %v3935_v43  ;;  %v3932_v51 = vpop.xlane.xlu0 %3931  ;;  %4114 = vadd.xlane.f32.xlu1 %v4113_v7  ;;  %v4110_v56 = vsel %vm1109_vm2, %v8918_v20, 0.0 }
 0xb03   : > { %7156 = vpow2.f32 %v4002_v62  ;;  %v3986_v61 = vsub.f32 %v8834_v25, %v3932_v51  ;;  %4111 = vadd.xlane.f32.xlu0 %v4110_v56 }
 0xb04   : > { %v8926_v36 = vpop.eup %7146  ;;  %v4040_v15 = vmul.f32 1.442695, %v3987_v23 }
 0xb05   : > { %v8928_v46 = vpop.eup %7148  ;;  %v4038_v4 = vmul.f32 1.442695, %v3986_v61  ;;  %v3887_v11 = vpop.xlane.xlu1 %3886  ;;  %v4065_v6 = vsel %vm1109_vm2, %v8926_v36, 0.0 }
 0xb06   : > { %7158 = vpow2.f32 %v4040_v15  ;;  %v3971_v58 = vsub.f32 %v8788_v32, %v3887_v11  ;;  %v3884_v31 = vpop.xlane.xlu0 %3883  ;;  %4066 = vadd.xlane.f32.xlu1 %v4065_v6  ;;  %v4062_v30 = vsel %vm1109_vm2, %v8928_v46, 0.0 }
 0xb07   : > { %7160 = vpow2.f32 %v4038_v4  ;;  %v3970_v25 = vsub.f32 %v8790_v26, %v3884_v31  ;;  %4063 = vadd.xlane.f32.xlu0 %v4062_v30 }
 0xb08   : > { %v8936_v18 = vpop.eup %7150  ;;  %v4008_v13 = vmul.f32 1.442695, %v3971_v58 }
 0xb09   : > { %v8938_v48 = vpop.eup %7152  ;;  %v4006_v38 = vmul.f32 1.442695, %v3970_v25  ;;  %v3941_v54 = vpop.xlane.xlu1 %3940  ;;  %v4119_v50 = vsel %vm1109_vm2, %v8936_v18, 0.0 }
 0xb0a   : > { %7162 = vpow2.f32 %v4008_v13  ;;  %v3989_v32 = vsub.f32 %v8836_v10, %v3941_v54  ;;  %v3938_v2 = vpop.xlane.xlu0 %3937  ;;  %4120 = vadd.xlane.f32.xlu1 %v4119_v50  ;;  %v4116_v21 = vsel %vm1109_vm2, %v8938_v48, 0.0 }
 0xb0b   : > { %7164 = vpow2.f32 %v4006_v38  ;;  %v3988_v26 = vsub.f32 %v8840_v49, %v3938_v2  ;;  %4117 = vadd.xlane.f32.xlu0 %v4116_v21 }
 0xb0c   : > { %v8946_v24 = vpop.eup %7154  ;;  %v4044_v35 = vmul.f32 1.442695, %v3989_v32 }
 0xb0d   : > { %v8948_v55 = vpop.eup %7156  ;;  %v4042_v33 = vmul.f32 1.442695, %v3988_v26  ;;  %v3893_v59 = vpop.xlane.xlu1 %3892  ;;  %v4071_v37 = vsel %vm1109_vm2, %v8946_v24, 0.0 }
 0xb0e   : > { %7166 = vpow2.f32 %v4044_v35  ;;  %v3973_v10 = vsub.f32 %v8792_v45, %v3893_v59  ;;  %v3890_v8 = vpop.xlane.xlu0 %3889  ;;  %4072 = vadd.xlane.f32.xlu1 %v4071_v37  ;;  %v4068_v34 = vsel %vm1109_vm2, %v8948_v55, 0.0 }
 0xb0f   : > { %7168 = vpow2.f32 %v4042_v33  ;;  %v3972_v49 = vsub.f32 %v8794_v57, %v3890_v8  ;;  %4069 = vadd.xlane.f32.xlu0 %v4068_v34 }
 0xb10   : > { %v8956_v9 = vpop.eup %7158  ;;  %v4012_v60 = vmul.f32 1.442695, %v3973_v10 }
 0xb11   : > { %v8958_v52 = vpop.eup %7160  ;;  %v4010_v3 = vmul.f32 1.442695, %v3972_v49  ;;  %v3947_v62 = vpop.xlane.xlu1 %3946  ;;  %v4125_v43 = vsel %vm1109_vm2, %v8956_v9, 0.0 }
 0xb12   : > { %7170 = vpow2.f32 %v4012_v60  ;;  %v3991_v45 = vsub.f32 %v8848_v39, %v3947_v62  ;;  %v3944_v7 = vpop.xlane.xlu0 %3943  ;;  %4126 = vadd.xlane.f32.xlu1 %v4125_v43  ;;  %v4122_v23 = vsel %vm1109_vm2, %v8958_v52, 0.0 }
 0xb13   : > { %7172 = vpow2.f32 %v4010_v3  ;;  %v3990_v57 = vsub.f32 %v8850_v29, %v3944_v7  ;;  %4123 = vadd.xlane.f32.xlu0 %v4122_v23 }
 0xb14   : > { %v8966_v51 = vpop.eup %7162  ;;  %v4048_v56 = vmul.f32 1.442695, %v3991_v45 }
 0xb15   : > { %v8968_v61 = vpop.eup %7164  ;;  %v4046_v15 = vmul.f32 1.442695, %v3990_v57  ;;  %v3899_v4 = vpop.xlane.xlu1 %3898  ;;  %v4077_v11 = vsel %vm1109_vm2, %v8966_v51, 0.0 }
 0xb16   : > { %7174 = vpow2.f32 %v4048_v56  ;;  %v3975_v39 = vsub.f32 %v8796_v17, %v3899_v4  ;;  %v3896_v6 = vpop.xlane.xlu0 %3895  ;;  %4078 = vadd.xlane.f32.xlu1 %v4077_v11  ;;  %v4074_v58 = vsel %vm1109_vm2, %v8968_v61, 0.0 }
 0xb17   : > { %7176 = vpow2.f32 %v4046_v15  ;;  %v3974_v29 = vsub.f32 %v8798_v16, %v3896_v6  ;;  %4075 = vadd.xlane.f32.xlu0 %v4074_v58 }
 0xb18   : > { %v8976_v31 = vpop.eup %7166  ;;  %v4016_v30 = vmul.f32 1.442695, %v3975_v39 }
 0xb19   : > { %v8978_v25 = vpop.eup %7168  ;;  %v4014_v13 = vmul.f32 1.442695, %v3974_v29  ;;  %v3953_v38 = vpop.xlane.xlu1 %3952  ;;  %v4131_v54 = vsel %vm1109_vm2, %v8976_v31, 0.0 }
 0xb1a   : > { %7178 = vpow2.f32 %v4016_v30  ;;  %v3993_v17 = vsub.f32 %v8852_v27, %v3953_v38  ;;  %v3950_v50 = vpop.xlane.xlu0 %3949  ;;  %4132 = vadd.xlane.f32.xlu1 %v4131_v54  ;;  %v4128_v32 = vsel %vm1109_vm2, %v8978_v25, 0.0 }
 0xb1b   : > { %7180 = vpow2.f32 %v4014_v13  ;;  %v3992_v16 = vsub.f32 %v8856_v5, %v3950_v50  ;;  %4129 = vadd.xlane.f32.xlu0 %v4128_v32 }
 0xb1c   : > { %v8986_v2 = vpop.eup %7170  ;;  %v4052_v21 = vmul.f32 1.442695, %v3993_v17 }
 0xb1d   : > { %v8988_v26 = vpop.eup %7172  ;;  %v4050_v35 = vmul.f32 1.442695, %v3992_v16  ;;  %v3905_v33 = vpop.xlane.xlu1 %3904  ;;  %v4083_v59 = vsel %vm1109_vm2, %v8986_v2, 0.0 }
 0xb1e   : > { %7182 = vpow2.f32 %v4052_v21  ;;  %v3977_v27 = vsub.f32 %v8800_v12, %v3905_v33  ;;  %v3902_v37 = vpop.xlane.xlu0 %3901  ;;  %4084 = vadd.xlane.f32.xlu1 %v4083_v59  ;;  %v4080_v10 = vsel %vm1109_vm2, %v8988_v26, 0.0 }
 0xb1f   : > { %7184 = vpow2.f32 %v4050_v35  ;;  %v3976_v5 = vsub.f32 %v8802_v28, %v3902_v37  ;;  %4081 = vadd.xlane.f32.xlu0 %v4080_v10 }
 0xb20   : > { %v8996_v8 = vpop.eup %7174  ;;  %v4020_v34 = vmul.f32 1.442695, %v3977_v27 }
 0xb21   : > { %v8998_v49 = vpop.eup %7176  ;;  %v4018_v60 = vmul.f32 1.442695, %v3976_v5  ;;  %v3959_v3 = vpop.xlane.xlu1 %3958  ;;  %v4137_v62 = vsel %vm1109_vm2, %v8996_v8, 0.0 }
 0xb22   : > { %7186 = vpow2.f32 %v4020_v34  ;;  %v3995_v12 = vsub.f32 %v8864_v41, %v3959_v3  ;;  %v3956_v43 = vpop.xlane.xlu0 %3955  ;;  %4138 = vadd.xlane.f32.xlu1 %v4137_v62  ;;  %v4134_v45 = vsel %vm1109_vm2, %v8998_v49, 0.0 }
 0xb23   : > { %7188 = vpow2.f32 %v4018_v60  ;;  %v3994_v28 = vsub.f32 %v8866_v1, %v3956_v43  ;;  %4135 = vadd.xlane.f32.xlu0 %v4134_v45 }
 0xb24   : > { %v9006_v7 = vpop.eup %7178  ;;  %v4056_v23 = vmul.f32 1.442695, %v3995_v12 }
 0xb25   : > { %v9008_v57 = vpop.eup %7180  ;;  %v4054_v56 = vmul.f32 1.442695, %v3994_v28  ;;  %v3911_v15 = vpop.xlane.xlu1 %3910  ;;  %v4089_v4 = vsel %vm1109_vm2, %v9006_v7, 0.0 }
 0xb26   : > { %7190 = vpow2.f32 %v4056_v23  ;;  %v3979_v41 = vsub.f32 %v8804_v22, %v3911_v15  ;;  %v3908_v11 = vpop.xlane.xlu0 %3907  ;;  %4090 = vadd.xlane.f32.xlu1 %v4089_v4  ;;  %v4086_v39 = vsel %vm1109_vm2, %v9008_v57, 0.0 }
 0xb27   : > { %7192 = vpow2.f32 %v4054_v56  ;;  %v3978_v1 = vsub.f32 %v8806_v14, %v3908_v11  ;;  %4087 = vadd.xlane.f32.xlu0 %v4086_v39 }
 0xb28   : > { %v9016_v6 = vpop.eup %7182  ;;  %v4024_v58 = vmul.f32 1.442695, %v3979_v41 }
 0xb29   : > { %v9018_v29 = vpop.eup %7184  ;;  %v4022_v30 = vmul.f32 1.442695, %v3978_v1  ;;  %v3965_v13 = vpop.xlane.xlu1 %3964  ;;  %v4143_v38 = vsel %vm1109_vm2, %v9016_v6, 0.0 }
 0xb2a   : > { %7194 = vpow2.f32 %v4024_v58  ;;  %v3997_v22 = vsub.f32 %v8868_v0, %v3965_v13  ;;  %4144 = vadd.xlane.f32.xlu1 %v4143_v38  ;;  %v3962_v54 = vpop.xlane.xlu0 %3961  ;;  %v4140_v17 = vsel %vm1109_vm2, %v9018_v29, 0.0 }
 0xb2b   : > { %7196 = vpow2.f32 %v4022_v30  ;;  %v3996_v14 = vsub.f32 %v8872_v40, %v3962_v54  ;;  %4141 = vadd.xlane.f32.xlu0 %v4140_v17 }
 0xb2c   : > { %v9026_v50 = vpop.eup %7186  ;;  %v4060_v32 = vmul.f32 1.442695, %v3997_v22 }
 0xb2d   : > { %v9028_v16 = vpop.eup %7188  ;;  %v4058_v21 = vmul.f32 1.442695, %v3996_v14  ;;  %v3917_v35 = vpop.xlane.xlu1 %3916  ;;  %v4095_v33 = vsel %vm1109_vm2, %v9026_v50, 0.0 }
 0xb2e   : > { %7198 = vpow2.f32 %v4060_v32  ;;  %v3981_v0 = vsub.f32 %v8808_v47, %v3917_v35  ;;  %4096 = vadd.xlane.f32.xlu1 %v4095_v33  ;;  %v3914_v59 = vpop.xlane.xlu0 %3913  ;;  %v4092_v27 = vsel %vm1109_vm2, %v9028_v16, 0.0 }
 0xb2f   : > { %7200 = vpow2.f32 %v4058_v21  ;;  %v3980_v40 = vsub.f32 %v8810_v19, %v3914_v59  ;;  %4093 = vadd.xlane.f32.xlu0 %v4092_v27 }
 0xb30   : > { %v9036_v37 = vpop.eup %7190  ;;  %v4028_v10 = vmul.f32 1.442695, %v3981_v0 }
 0xb31   : > { %v9038_v5 = vpop.eup %7192  ;;  %v4026_v34 = vmul.f32 1.442695, %v3980_v40  ;;  %v4149_v60 = vsel %vm1109_vm2, %v9036_v37, 0.0 }
 0xb32   : > { %7202 = vpow2.f32 %v4028_v10  ;;  %4150 = vadd.xlane.f32.xlu1 %v4149_v60  ;;  %v4146_v47 = vsel %vm1109_vm2, %v9038_v5, 0.0 }
 0xb33   : > { %7204 = vpow2.f32 %v4026_v34  ;;  %4147 = vadd.xlane.f32.xlu0 %v4146_v47 }
 0xb34   : > { %v9044_v3 = vpop.eup %7194 }
 0xb35   : > { %v9046_v19 = vpop.eup %7196  ;;  %v4101_v62 = vsel %vm1109_vm2, %v9044_v3, 0.0 }
 0xb36   : > { %4102 = vadd.xlane.f32.xlu1 %v4101_v62  ;;  %v4098_v12 = vsel %vm1109_vm2, %v9046_v19, 0.0 }
 0xb37   : > { %4099 = vadd.xlane.f32.xlu0 %v4098_v12 }
 0xb38   : > { %v9052_v43 = vpop.eup %7198 }
 0xb39   : > { %v9054_v45 = vpop.eup %7200  ;;  %v4155_v28 = vsel %vm1109_vm2, %v9052_v43, 0.0 }
 0xb3a   : > { %4156 = vadd.xlane.f32.xlu1 %v4155_v28  ;;  %v4152_v23 = vsel %vm1109_vm2, %v9054_v45, 0.0 }
 0xb3b   : > { %4153 = vadd.xlane.f32.xlu0 %v4152_v23 }
 0xb3c   : > { %v9060_v56 = vpop.eup %7202 }
 0xb3d   : > { %v9062_v15 = vpop.eup %7204  ;;  %v4107_v4 = vsel %vm1109_vm2, %v9060_v56, 0.0 }
 0xb3e   : > { %4108 = vadd.xlane.f32.xlu1 %v4107_v4  ;;  %v4104_v41 = vsel %vm1109_vm2, %v9062_v15, 0.0 }
 0xb3f   : > { %4105 = vadd.xlane.f32.xlu0 %v4104_v41 }
 0xb8f   : > { %v4115_v11 = vpop.xlane.xlu1 %4114 }
 0xb90   : > { %7206 = vrcp.f32 %v4115_v11  ;;  %v4112_v39 = vpop.xlane.xlu0 %4111 }
 0xb91   : > { %7208 = vrcp.f32 %v4112_v39 }
 0xb93   : > { %v4067_v1 = vpop.xlane.xlu1 %4066 }
 0xb94   : > { %7210 = vrcp.f32 %v4067_v1  ;;  %v4064_v58 = vpop.xlane.xlu0 %4063 }
 0xb95   : > { %7212 = vrcp.f32 %v4064_v58 }
 0xb97   : > { %v4121_v30 = vpop.xlane.xlu1 %4120 }
 0xb98   : > { %7214 = vrcp.f32 %v4121_v30  ;;  %v4118_v13 = vpop.xlane.xlu0 %4117 }
 0xb99   : > { %7216 = vrcp.f32 %v4118_v13 }
 0xb9a   : > { %v7207_v38 = vpop.eup %7206 }
 0xb9b   : > { %v7209_v22 = vpop.eup %7208  ;;  %v4073_v54 = vpop.xlane.xlu1 %4072  ;;  %v4207_v17 = vmul.f32 %v7207_v38, %v8916_v44 }
 0xb9c   : > { %7218 = vrcp.f32 %v4073_v54  ;;  %v4070_v14 = vpop.xlane.xlu0 %4069  ;;  %v4206_v32 = vmul.f32 %v7209_v22, %v8918_v20 }
 0xb9d   : > { %7220 = vrcp.f32 %v4070_v14 }
 0xb9e   : > { %v7211_v21 = vpop.eup %7210  ;;  %v6657_v35 = vpack.c.bf16 %v4207_v17, %v4206_v32 }
 0xb9f   : > { %v7213_v33 = vpop.eup %7212  ;;  %v4191_v0 = vmul.f32 %v7211_v21, %v8926_v36  ;;  %v4127_v59 = vpop.xlane.xlu1 %4126 }
 0xba0   : > { %v4190_v27 = vmul.f32 %v7213_v33, %v8928_v46  ;;  %7222 = vrcp.f32 %v4127_v59  ;;  %6659 = vmatprep.subr.msk.bf16.mxu0 %vm7827_vm3, %v6657_v35  ;;  %v4124_v40 = vpop.xlane.xlu0 %4123 }
 0xba1   : > { %7224 = vrcp.f32 %v4124_v40 }
 0xba2   : > { %v7215_v44 = vpop.eup %7214  ;;  %v6660_v10 = vpack.c.bf16 %v4191_v0, %v4190_v27 }
 0xba3   : > { %v7217_v34 = vpop.eup %7216  ;;  %v4079_v60 = vpop.xlane.xlu1 %4078  ;;  %v4209_v20 = vmul.f32 %v7215_v44, %v8936_v18 }
 0xba4   : > { %7226 = vrcp.f32 %v4079_v60  ;;  %6662 = vmatpush3.bf16.xpose.msk.msra.mxu0 %vm7827_vm3, %v6660_v10  ;;  %v4076_v36 = vpop.xlane.xlu0 %4075  ;;  %v4208_v47 = vmul.f32 %v7217_v34, %v8938_v48 }
 0xba5   : > { %7228 = vrcp.f32 %v4076_v36 }
 0xba6   : > { %v7219_v46 = vpop.eup %7218  ;;  %v6663_v62 = vpack.c.bf16 %v4209_v20, %v4208_v47 }
 0xba7   : > { %v7221_v12 = vpop.eup %7220  ;;  %v4193_v28 = vmul.f32 %v7219_v46, %v8946_v24  ;;  %v4133_v23 = vpop.xlane.xlu1 %4132 }
 0xba8   : > { %v4192_v4 = vmul.f32 %v7221_v12, %v8948_v55  ;;  %7230 = vrcp.f32 %v4133_v23  ;;  %6665 = vmatprep.subr.msk.bf16.mxu0 %vm7827_vm3, %v6663_v62  ;;  %v4130_v18 = vpop.xlane.xlu0 %4129 }
 0xba9   : > { %7232 = vrcp.f32 %v4130_v18 }
 0xbaa   : > { %v7223_v41 = vpop.eup %7222  ;;  %v6666_v11 = vpack.c.bf16 %v4193_v28, %v4192_v4 }
 0xbab   : > { %v7225_v39 = vpop.eup %7224  ;;  %v4085_v1 = vpop.xlane.xlu1 %4084  ;;  %v4211_v48 = vmul.f32 %v7223_v41, %v8956_v9 }
 0xbac   : > { %7234 = vrcp.f32 %v4085_v1  ;;  %6668 = vmatpush3.bf16.xpose.msk.msra.mxu0 %vm7827_vm3, %v6666_v11  ;;  %v4082_v24 = vpop.xlane.xlu0 %4081  ;;  %v4210_v58 = vmul.f32 %v7225_v39, %v8958_v52 }
 0xbad   : > { %7236 = vrcp.f32 %v4082_v24 }
 0xbae   : > { %v7227_v55 = vpop.eup %7226  ;;  %v6669_v30 = vpack.c.bf16 %v4211_v48, %v4210_v58 }
 0xbaf   : > { %v7229_v13 = vpop.eup %7228  ;;  %v4195_v38 = vmul.f32 %v7227_v55, %v8966_v51  ;;  %v4139_v22 = vpop.xlane.xlu1 %4138 }
 0xbb0   : > { %v4194_v54 = vmul.f32 %v7229_v13, %v8968_v61  ;;  %7238 = vrcp.f32 %v4139_v22  ;;  %6671 = vmatprep.subr.msk.bf16.mxu0 %vm7827_vm3, %v6669_v30  ;;  %v4136_v9 = vpop.xlane.xlu0 %4135 }
 0xbb1   : > { %7240 = vrcp.f32 %v4136_v9 }
 0xbb2   : > { %v7231_v17 = vpop.eup %7230  ;;  %v6672_v14 = vpack.c.bf16 %v4195_v38, %v4194_v54 }
 0xbb3   : > { %v7233_v32 = vpop.eup %7232  ;;  %v4091_v21 = vpop.xlane.xlu1 %4090  ;;  %v4213_v52 = vmul.f32 %v7231_v17, %v8976_v31 }
 0xbb4   : > { %7242 = vrcp.f32 %v4091_v21  ;;  %6674 = vmatpush3.bf16.xpose.msk.msra.mxu0 %vm7827_vm3, %v6672_v14  ;;  %v4088_v51 = vpop.xlane.xlu0 %4087  ;;  %v4212_v35 = vmul.f32 %v7233_v32, %v8978_v25 }
 0xbb5   : > { %7244 = vrcp.f32 %v4088_v51 }
 0xbb6   : > { %v7235_v61 = vpop.eup %7234  ;;  %v6675_v33 = vpack.c.bf16 %v4213_v52, %v4212_v35 }
 0xbb7   : > { %v7237_v0 = vpop.eup %7236  ;;  %v4197_v59 = vmul.f32 %v7235_v61, %v8986_v2  ;;  %v4145_v27 = vpop.xlane.xlu1 %4144 }
 0xbb8   : > { %v4196_v40 = vmul.f32 %v7237_v0, %v8988_v26  ;;  %7246 = vrcp.f32 %v4145_v27  ;;  %6677 = vmatprep.subr.msk.bf16.mxu0 %vm7827_vm3, %v6675_v33  ;;  %v4142_v31 = vpop.xlane.xlu0 %4141  ;;  %v4511_v33 = vld [vmem:[%s9319_s8] sm:$0x3] }
 0xbb9   : > { %7248 = vrcp.f32 %v4142_v31 }
 0xbba   : > { %v7239_v44 = vpop.eup %7238  ;;  %v6678_v10 = vpack.c.bf16 %v4197_v59, %v4196_v40 }
 0xbbb   : > { %v7241_v34 = vpop.eup %7240  ;;  %v4097_v60 = vpop.xlane.xlu1 %4096  ;;  %v4215_v25 = vmul.f32 %v7239_v44, %v8996_v8 }
 0xbbc   : > { %7250 = vrcp.f32 %v4097_v60  ;;  %6680 = vmatpush3.bf16.xpose.msk.msra.mxu0 %vm7827_vm3, %v6678_v10  ;;  %v4094_v2 = vpop.xlane.xlu0 %4093  ;;  %v4214_v20 = vmul.f32 %v7241_v34, %v8998_v49  ;;  %v5901_v10 = vld [vmem:[%s9319_s8 + $0x4] sm:$0x3] }
 0xbbd   : > { %7252 = vrcp.f32 %v4094_v2 }
 0xbbe   : > { %v7243_v26 = vpop.eup %7242  ;;  %v6681_v36 = vpack.c.bf16 %v4215_v25, %v4214_v20  ;;  %v5906_v20 = vld [vmem:[%s9319_s8 + $0x6] sm:$0x3] }
 0xbbf   : > { %v7245_v47 = vpop.eup %7244  ;;  %v4199_v46 = vmul.f32 %v7243_v26, %v9006_v7  ;;  %v4151_v62 = vpop.xlane.xlu1 %4150 }
 0xbc0   : > { %v4198_v12 = vmul.f32 %v7245_v47, %v9008_v57  ;;  %7254 = vrcp.f32 %v4151_v62  ;;  %6683 = vmatprep.subr.msk.bf16.mxu0 %vm7827_vm3, %v6681_v36  ;;  %v4148_v8 = vpop.xlane.xlu0 %4147 }
 0xbc1   : > { %7256 = vrcp.f32 %v4148_v8 }
 0xbc2   : > { %v7247_v28 = vpop.eup %7246  ;;  %v6684_v23 = vpack.c.bf16 %v4199_v46, %v4198_v12  ;;  %v5915_v46 = vld [vmem:[%s9319_s8 + $0xa] sm:$0x3] }
 0xbc3   : > { %v7249_v4 = vpop.eup %7248  ;;  %v4103_v18 = vpop.xlane.xlu1 %4102  ;;  %v4217_v49 = vmul.f32 %v7247_v28, %v9016_v6  ;;  %v5920_v28 = vld [vmem:[%s9319_s8 + $0xc] sm:$0x3] }
 0xbc4   : > { %7258 = vrcp.f32 %v4103_v18  ;;  %6686 = vmatpush3.bf16.xpose.msk.msra.mxu0 %vm7827_vm3, %v6684_v23  ;;  %v4100_v7 = vpop.xlane.xlu0 %4099  ;;  %v4216_v41 = vmul.f32 %v7249_v4, %v9018_v29 }
 0xbc5   : > { %7260 = vrcp.f32 %v4100_v7 }
 0xbc6   : > { %v7251_v57 = vpop.eup %7250  ;;  %v6687_v11 = vpack.c.bf16 %v4217_v49, %v4216_v41  ;;  %v5925_v49 = vld [vmem:[%s9319_s8 + $0xe] sm:$0x3] }
 0xbc7   : > { %v7253_v39 = vpop.eup %7252  ;;  %v4201_v1 = vmul.f32 %v7251_v57, %v9026_v50  ;;  %v4157_v48 = vpop.xlane.xlu1 %4156 }
 0xbc8   : > { %v4200_v24 = vmul.f32 %v7253_v39, %v9028_v16  ;;  %7262 = vrcp.f32 %v4157_v48  ;;  %6689 = vmatprep.subr.msk.bf16.mxu0 %vm7827_vm3, %v6687_v11  ;;  %v4154_v6 = vpop.xlane.xlu0 %4153  ;;  %v5930_v11 = vld [vmem:[%s9319_s8 + $0x10] sm:$0x3] }
 0xbc9   : > { %7264 = vrcp.f32 %v4154_v6 }
 0xbca   : > { %v7255_v58 = vpop.eup %7254  ;;  %v6690_v55 = vpack.c.bf16 %v4201_v1, %v4200_v24 }
 0xbcb   : > { %v7257_v30 = vpop.eup %7256  ;;  %v4109_v13 = vpop.xlane.xlu1 %4108  ;;  %v4219_v29 = vmul.f32 %v7255_v58, %v9036_v37 }
 0xbcc   : > { %7266 = vrcp.f32 %v4109_v13  ;;  %6692 = vmatpush3.bf16.xpose.msk.msra.mxu0 %vm7827_vm3, %v6690_v55  ;;  %v4106_v50 = vpop.xlane.xlu0 %4105  ;;  %v4218_v38 = vmul.f32 %v7257_v30, %v9038_v5 }
 0xbcd   : > { %7268 = vrcp.f32 %v4106_v50  ;;  %v4405_v50 = vld [vmem:[%s9315_s4] sm:$0xf] }
 0xbce   : > { %v7259_v16 = vpop.eup %7258  ;;  %v6693_v22 = vpack.c.bf16 %v4219_v29, %v4218_v38 }
 0xbcf   : > { %v7261_v54 = vpop.eup %7260  ;;  %v4203_v9 = vmul.f32 %v7259_v16, %v9044_v3 }
 0xbd0   : > { %v4202_v17 = vmul.f32 %v7261_v54, %v9046_v19  ;;  %6695 = vmatprep.subr.msk.bf16.mxu0 %vm7827_vm3, %v6693_v22 }
 0xbd2   : > { %v7263_v14 = vpop.eup %7262  ;;  %v6696_v37 = vpack.c.bf16 %v4203_v9, %v4202_v17 }
 0xbd3   : > { %v7265_v32 = vpop.eup %7264  ;;  %v4221_v21 = vmul.f32 %v7263_v14, %v9052_v43  ;;  %v9336_v43 = vld [vmem:[#allocation4_spill] sm:$0xff] }
 0xbd4   : > { %6698 = vmatpush3.bf16.xpose.msk.msra.mxu0 %vm7827_vm3, %v6696_v37  ;;  %v4220_v5 = vmul.f32 %v7265_v32, %v9054_v45  ;;  %v4513_v45 = vlaneseq }
 0xbd6   : > { %v7267_v52 = vpop.eup %7266  ;;  %v6699_v51 = vpack.c.bf16 %v4221_v21, %v4220_v5  ;;  %v4514_v42 = vshrl.u32 %v4513_v45, 7 }
 0xbd7   : > { %v7269_v35 = vpop.eup %7268  ;;  %v4205_v3 = vmul.f32 %v7267_v52, %v9060_v56  ;;  %v4422_v56 = vld [vmem:[%s9316_s5] sm:$0xf] }
 0xbd8   : > { %v4204_v19 = vmul.f32 %v7269_v35, %v9062_v15  ;;  %6701 = vmatprep.subr.msk.bf16.mxu0 %vm7827_vm3, %v6699_v51  ;;  %v7280_v15 = vmov 0   ;;  %v4515_v0 = vsub.s32 0, %v4514_v42  ;;  %v4519_v59 = vsub.s32 1, %v4514_v42 }
 0xbd9   : > { %6757 = vset.pattern.permute.xlu0 %v7280_v15 }
 0xbda   : > { %v6702_v61 = vpack.c.bf16 %v4205_v3, %v4204_v19  ;;  %4425 = vperm.xlu0 %6757, %v4422_v56   ;;  %v4516_v31 = vrot.slane %v4511_v33, %v4515_v0  ;;  %v4520_v44 = vrot.slane %v4511_v33, %v4519_v59  ;;  %v4744_v25 = vrot.slane %v5901_v10, %v4515_v0 }
 0xbdb   : > { %v4748_v2 = vrot.slane %v5901_v10, %v4519_v59  ;;  %v4861_v36 = vrot.slane %v5906_v20, %v4515_v0  ;;  %v4865_v47 = vrot.slane %v5906_v20, %v4519_v59  ;;  %v5063_v12 = vrot.slane %v5915_v46, %v4515_v0 }
 0xbdc   : > { %6704 = vmatpush3.bf16.xpose.msk.msra.mxu0 %vm7827_vm3, %v6702_v61  ;;  %v4521_v60 = vcombine.low %v4516_v31, %v4520_v44  ;;  %v5067_v8 = vrot.slane %v5915_v46, %v4519_v59  ;;  %v5178_v4 = vrot.slane %v5920_v28, %v4515_v0  ;;  %v5182_v18 = vrot.slane %v5920_v28, %v4519_v59 }
 0xbdd   : > { %v4749_v26 = vcombine.low %v4744_v25, %v4748_v2  ;;  %v4866_v62 = vcombine.low %v4861_v36, %v4865_v47  ;;  %v5293_v41 = vrot.slane %v5925_v49, %v4515_v0  ;;  %v5297_v57 = vrot.slane %v5925_v49, %v4519_v59 }
 0xbde   : > { %v5068_v23 = vcombine.low %v5063_v12, %v5067_v8  ;;  %v5183_v7 = vcombine.low %v5178_v4, %v5182_v18  ;;  %v5408_v1 = vrot.slane %v5930_v11, %v4515_v0  ;;  %v5412_v48 = vrot.slane %v5930_v11, %v4519_v59  ;;  %v5286_v11 = vld [vmem:[#allocation3 + $0xc] sm:$0xf] }
 0xbdf   : > { %v5298_v39 = vcombine.low %v5293_v41, %v5297_v57  ;;  %v5171_v41 = vld [vmem:[#allocation3 + $0xc] sm:$0xf] }
 0xbe0   : > { %v5413_v24 = vcombine.low %v5408_v1, %v5412_v48 }
 0xbe3   : > { %6236 = vmatmul.mubr.msk.f32.vlgmr.msra.gmra.mrb[84].mxu0 %vm1109_vm2, %v7936_v63  ;;  %v5893_v63 = vld [vmem:[%s9319_s8 + $0x2] sm:$0x3] }
 0xbe4   : > { %6237 = vmatprep.mubr.msk.f32.mxu0 %vm1109_vm2, %v9336_v43  ;;  %v4538_v27 = vrot.slane %v5893_v63, %v4515_v0  ;;  %v4542_v40 = vrot.slane %v5893_v63, %v4519_v59 }
 0xbe6   : > { %v4543_v34 = vcombine.low %v4538_v27, %v4542_v40 }
 0xbe7   : > { %6238 = vmatmul.mubr.msk.f32.gmra.mrb[86].mxu0 %vm1109_vm2, %v9336_v43 }
 0xbe8   : > { %4639 = vmatprep.mubr.f32.mxu0 %v9335_v53  ;;  %4544 = vrot.lane.b32.xlu1 %v4543_v34, %s7281_s18 }
 0xbec   : > { %4522 = vrot.lane.b32.xlu1 %v4521_v60, %s7282_s21 }
 0xbf0   : > { %4750 = vrot.lane.b32.xlu1 %v4749_v26, %s7283_s24  ;;  %v5056_v26 = vld [vmem:[#allocation3 + $0xc] sm:$0xf] }
 0xbf4   : > { %4867 = vrot.lane.b32.xlu1 %v4866_v62, %s7284_s27 }
 0xbf8   : > { %5069 = vrot.lane.b32.xlu1 %v5068_v23, %s7285_s11 }
 0xbfc   : > { %5184 = vrot.lane.b32.xlu1 %v5183_v7, %s7286_s14 }
 0xc00   : > { %5299 = vrot.lane.b32.xlu1 %v5298_v39, %s7287_s15 }
 0xc04   : > { %5414 = vrot.lane.b32.xlu1 %v5413_v24, %s7288_s16 }
 0xc59   : > { %v4426_v16 = vpop.permute.xlu0 %4425 }
 0xc5a   : > { %v4545_v38 = vpop.permute.xlu1 %4544 }
 0xc5b   : > { %v4546_v21 = vrot.slane %v4545_v38, 4 }
 0xc5d   : > { %v4548_v51 = vsel %vm4547_vm5, %v4546_v21, %v4545_v38 }
 0xc5e   : > { %v4523_v14 = vpop.permute.xlu1 %4522 }
 0xc5f   : > { %v4524_v32 = vrot.slane %v4523_v14, 4 }
 0xc61   : > { %v4526_v52 = vsel %vm4525_vm4, %v4524_v32, %v4523_v14  ;;  %v5894_v14 = vld [vmem:[%s9317_s6 + $0x4] sm:$0xf] }
 0xc62   : > { %v4751_v5 = vpop.permute.xlu1 %4750 }
 0xc63   : > { %v4752_v15 = vrot.slane %v4751_v5, 4 }
 0xc65   : > { %v4754_v33 = vsel %vm4753_vm6, %v4752_v15, %v4751_v5 }
 0xc66   : > { %v4868_v45 = vpop.permute.xlu1 %4867 }
 0xc67   : > { %v4869_v63 = vrot.slane %v4868_v45, 4 }
 0xc69   : > { %v4871_v59 = vsel %vm4870_vm7, %v4869_v63, %v4868_v45 }
 0xc6a   : > { %v5070_v0 = vpop.permute.xlu1 %5069 }
 0xc6b   : > { %v5071_v25 = vrot.slane %v5070_v0, 4 }
 0xc6d   : > { %v5072_v36 = vsel %vm4887_vm8, %v5071_v25, %v5070_v0  ;;  %v5076_v8 = vmul.f32 %v5071_v25, %v5056_v26  ;;  %v5916_v26 = vld [vmem:[%s9317_s6 + $0x14] sm:$0xf] }
 0xc6e   : > { %v5185_v34 = vpop.permute.xlu1 %5184 }
 0xc6f   : > { %v5186_v20 = vrot.slane %v5185_v34, 4 }
 0xc71   : > { %v5187_v62 = vsel %vm4770_vm9, %v5186_v20, %v5185_v34  ;;  %v5191_v1 = vmul.f32 %v5186_v20, %v5171_v41  ;;  %v5931_v41 = vld [vmem:[%s9317_s6 + $0x20] sm:$0xf] }
 0xc72   : > { %v5300_v46 = vpop.permute.xlu1 %5299 }
 0xc73   : > { %v5301_v49 = vrot.slane %v5300_v46, 4 }
 0xc75   : > { %v5302_v39 = vsel %vm787_vm1, %v5301_v49, %v5300_v46 }
 0xc76   : > { %v5415_v18 = vpop.permute.xlu1 %5414 }
 0xc77   : > { %v5416_v57 = vrot.slane %v5415_v18, 4 }
 0xc79   : > { %v5417_v48 = vsel %vm4655_vm10, %v5416_v57, %v5415_v18 }
 0xcb6   : > { %v4390_v6 = vpop.f32.mrb[84].mxu0 }
 0xcb7   : > { %v4392_v58 = vpop.f32.mrb[85].mxu0 }
 0xcba   : > { %v4396_v55 = vpop.f32.mrb[86].mxu0 }
 0xcbb   : > { %v6719_v30 = vpack.c.bf16 %v4396_v55, %v4390_v6  ;;  %v4398_v13 = vpop.f32.mrb[87].mxu0  ;;  %v5306_v6 = vmul.f32 %v5301_v49, %v5286_v11  ;;  %v5926_v49 = vld [vmem:[%s9317_s6 + $0x1c] sm:$0xf] }
 0xcbc   : > { %v6717_v29 = vpack.c.bf16 %v4398_v13, %v4392_v58  ;;  %v5401_v13 = vld [vmem:[#allocation3 + $0xc] sm:$0xf] }
 0xcbe   : > { %6718 = vmatprep.subr.bf16.mxu1 %v6717_v29  ;;  %v5421_v29 = vmul.f32 %v5416_v57, %v5401_v13 }
 0xcbf   : > { %6720 = vmatpush1.bf16.msra.mxu1 %v6719_v30 }
 0xcc2   : > { %5892 = vmatmul.mubr.msk.f32.vlgmr.msra.gmra.mrb[88].mxu1 %vm1109_vm2, %v4405_v50  ;;  %v5515_v50 = vld [vmem:[%s9318_s7] sm:$0xf] }
 0xd95   : > { %v4497_v22 = vpop.f32.mrb[88].mxu1 }
 0xd96   : > { %v4499_v54 = vpop.f32.mrb[89].mxu1  ;;  %v4498_v9 = vadd.f32 %v4497_v22, %v4426_v16 }
 0xd97   : > { %v9178_v17 = vadd.f32 %v4499_v54, %v4426_v16 }
 0xd99   : > { %v9181_v37 = vcombine.low %v4498_v9, %v9178_v17 }
 0xd9b   : > { %4508 = vst [vmem:[#allocation3 + $0x4] sm:$0xff] %v9181_v37  ;;  %v5075_v12 = vmul.f32 %v5072_v36, %v9181_v37  ;;  %v5190_v23 = vmul.f32 %v5187_v62, %v9181_v37  ;;  %v5305_v24 = vmul.f32 %v5302_v39, %v9181_v37  ;;  %v5420_v58 = vmul.f32 %v5417_v48, %v9181_v37 }
 0xd9d   : > { %v5081_v4 = vcombine.high %v5075_v12, %v5075_v12  ;;  %v5196_v7 = vcombine.high %v5190_v23, %v5190_v23  ;;  %v5311_v55 = vcombine.high %v5305_v24, %v5305_v24  ;;  %v5426_v30 = vcombine.high %v5420_v58, %v5420_v58 }
 0xda2   : > { %v4510_v35 = vld [vmem:[#allocation3 + $0x8] sm:$0xf]  ;;  %v4509_v3 = vld [vmem:[#allocation3] sm:$0xff] }
 0xda3   : > { %v4552_v19 = vmul.f32 %v4546_v21, %v4510_v35  ;;  %v4551_v61 = vmul.f32 %v4548_v51, %v4509_v3  ;;  %v4529_v43 = vmul.f32 %v4526_v52, %v4509_v3  ;;  %v4737_v27 = vld [vmem:[#allocation3 + $0x8] sm:$0xf]  ;;  %v4530_v40 = vmul.f32 %v4524_v32, %v4510_v35 }
 0xda4   : > { %v4757_v31 = vmul.f32 %v4754_v33, %v4509_v3  ;;  %v4758_v44 = vmul.f32 %v4752_v15, %v4737_v27  ;;  %v4874_v10 = vmul.f32 %v4871_v59, %v4509_v3  ;;  %v4854_v47 = vld [vmem:[#allocation3 + $0x8] sm:$0xf]  ;;  %v7270_v59 = vcombine.low %v9178_v17, %v9178_v17 }
 0xda5   : > { %4562 = vrot.lane.b32.xlu1 %v4552_v19, %s7287_s15  ;;  %v4557_v56 = vcombine.high %v4551_v61, %v4551_v61  ;;  %v4648_v42 = vcombine.high %v4529_v43, %v4529_v43  ;;  %v4875_v28 = vmul.f32 %v4869_v63, %v4854_v47  ;;  %v4531_v19 = vld [vmem:[%s9317_s6] sm:$0xf]  ;;  %v5902_v63 = vld [vmem:[%s9317_s6 + $0x8] sm:$0xf] }
 0xda6   : > { %v4763_v60 = vcombine.high %v4757_v31, %v4757_v31  ;;  %v4880_v2 = vcombine.high %v4874_v10, %v4874_v10 }
 0xda7   : > { %4560 = vrot.lane.b32.xlu0 %v4557_v56, %s7287_s15 }
 0xda9   : > { %4651 = vrot.lane.b32.xlu1 %v4648_v42, %s7288_s16 }
 0xdab   : > { %4558 = vrot.lane.b32.xlu0 %v4551_v61, %s7287_s15 }
 0xdad   : > { %4649 = vrot.lane.b32.xlu1 %v4529_v43, %s7288_s16 }
 0xdaf   : > { %4653 = vrot.lane.b32.xlu0 %v4530_v40, %s7288_s16  ;;  %v5907_v40 = vld [vmem:[%s9317_s6 + $0xc] sm:$0xf] }
 0xdb1   : > { %4768 = vrot.lane.b32.xlu1 %v4758_v44, %s7286_s14 }
 0xdb3   : > { %4766 = vrot.lane.b32.xlu0 %v4763_v60, %s7286_s14  ;;  %v5911_v60 = vld [vmem:[%s9317_s6 + $0x10] sm:$0xf] }
 0xdb5   : > { %4883 = vrot.lane.b32.xlu1 %v4880_v2, %s7285_s11 }
 0xdb7   : > { %4764 = vrot.lane.b32.xlu0 %v4757_v31, %s7286_s14 }
 0xdb9   : > { %4881 = vrot.lane.b32.xlu1 %v4874_v10, %s7285_s11 }
 0xdbb   : > { %4885 = vrot.lane.b32.xlu0 %v4875_v28, %s7285_s11 }
 0xdbd   : > { %5086 = vrot.lane.b32.xlu1 %v5076_v8, %s7284_s27 }
 0xdbf   : > { %5084 = vrot.lane.b32.xlu0 %v5081_v4, %s7284_s27 }
 0xdc1   : > { %5199 = vrot.lane.b32.xlu1 %v5196_v7, %s7283_s24 }
 0xdc3   : > { %5082 = vrot.lane.b32.xlu0 %v5075_v12, %s7284_s27  ;;  %v5921_v12 = vld [vmem:[%s9317_s6 + $0x18] sm:$0xf] }
 0xdc5   : > { %5197 = vrot.lane.b32.xlu1 %v5190_v23, %s7283_s24 }
 0xdc7   : > { %5201 = vrot.lane.b32.xlu0 %v5191_v1, %s7283_s24 }
 0xdc9   : > { %5316 = vrot.lane.b32.xlu1 %v5306_v6, %s7281_s18 }
 0xdcb   : > { %5314 = vrot.lane.b32.xlu0 %v5311_v55, %s7281_s18 }
 0xdcd   : > { %5429 = vrot.lane.b32.xlu1 %v5426_v30, %s7282_s21 }
 0xdcf   : > { %5312 = vrot.lane.b32.xlu0 %v5305_v24, %s7281_s18 }
 0xdd1   : > { %5427 = vrot.lane.b32.xlu1 %v5420_v58, %s7282_s21 }
 0xdd3   : > { %5431 = vrot.lane.b32.xlu0 %v5421_v29, %s7282_s21  ;;  %s352_s21 = scalar_lea.vmem %s9320_s9, %s5937_s22 }
 0xdd7   : > { %5518 = vperm.xlu0 %6757, %v5515_v50  }
 0xe17   : > { %v4563_v38 = vpop.permute.xlu1 %4562 }
 0xe19   : > { %v4561_v16 = vpop.permute.xlu0 %4560 }
 0xe1a   : > { %v4565_v22 = vsel %vm787_vm1, %v4561_v16, %v4563_v38 }
 0xe1b   : > { %v4652_v54 = vpop.permute.xlu1 %4651  ;;  %5895 = vmatprep.subr.msk.mxu0 %vm4570_vm11, %v4565_v22 }
 0xe1d   : > { %v4559_v9 = vpop.permute.xlu0 %4558 }
 0xe1e   : > { %v4564_v32 = vsel %vm787_vm1, %v4559_v9, %v4561_v16 }
 0xe1f   : > { %5896 = vmatpush1.msk.msra.mxu0 %vm4570_vm11, %v4564_v32  ;;  %v4650_v21 = vpop.permute.xlu1 %4649 }
 0xe20   : > { %5897 = vmatmul.mubr.msk.f32.vlgmr.msra.gmra.mrb[88].mxu0 %vm4566_vm12, %v5894_v14  ;;  %v4656_v51 = vsel %vm4655_vm10, %v4650_v21, %v4652_v54 }
 0xe21   : > { %v4654_v5 = vpop.permute.xlu0 %4653  ;;  %4729 = vmatprep.mubr.f32.mxu0 %v9335_v53 }
 0xe22   : > { %v4657_v52 = vsel %vm4655_vm10, %v4652_v54, %v4654_v5 }
 0xe23   : > { %5898 = vmatprep.subr.msk.mxu0 %vm4570_vm11, %v4657_v52  ;;  %v4769_v35 = vpop.permute.xlu1 %4768 }
 0xe24   : > { %5899 = vmatpush1.msk.msra.mxu0 %vm4570_vm11, %v4656_v51 }
 0xe25   : > { %v4767_v3 = vpop.permute.xlu0 %4766 }
 0xe26   : > { %v4772_v61 = vsel %vm4770_vm9, %v4767_v3, %v4769_v35 }
 0xe27   : > { %5903 = vmatprep.subr.msk.mxu0 %vm4570_vm11, %v4772_v61  ;;  %v4884_v43 = vpop.permute.xlu1 %4883 }
 0xe28   : > { %5900 = vmatmul.mubr.msk.f32.vlgmr.msra.gmra.mrb[88].mxu0 %vm4566_vm12, %v4531_v19 }
 0xe29   : > { %v4765_v45 = vpop.permute.xlu0 %4764  ;;  %4844 = vmatprep.mubr.f32.mxu0 %v9335_v53 }
 0xe2a   : > { %v4771_v56 = vsel %vm4770_vm9, %v4765_v45, %v4767_v3 }
 0xe2b   : > { %5904 = vmatpush1.msk.msra.mxu0 %vm4570_vm11, %v4771_v56  ;;  %v4882_v15 = vpop.permute.xlu1 %4881 }
 0xe2c   : > { %v4888_v0 = vsel %vm4887_vm8, %v4882_v15, %v4884_v43 }
 0xe2d   : > { %v4886_v42 = vpop.permute.xlu0 %4885 }
 0xe2e   : > { %v4889_v33 = vsel %vm4887_vm8, %v4884_v43, %v4886_v42 }
 0xe2f   : > { %5908 = vmatprep.subr.msk.mxu0 %vm4570_vm11, %v4889_v33  ;;  %v5087_v31 = vpop.permute.xlu1 %5086 }
 0xe30   : > { %5905 = vmatmul.mubr.msk.f32.vlgmr.msra.gmra.mrb[88].mxu0 %vm4566_vm12, %v5902_v63 }
 0xe31   : > { %5909 = vmatpush1.msk.msra.mxu0 %vm4570_vm11, %v4888_v0  ;;  %v5085_v27 = vpop.permute.xlu0 %5084  ;;  %4961 = vmatprep.mubr.f32.mxu0 %v9335_v53 }
 0xe32   : > { %5912 = vmatprep.subr.msk.mxu0 %vm4570_vm11, %v7270_v59  ;;  %v5089_v10 = vsel %vm4870_vm7, %v5085_v27, %v5087_v31 }
 0xe33   : > { %v5200_v17 = vpop.permute.xlu1 %5199 }
 0xe35   : > { %v5083_v44 = vpop.permute.xlu0 %5082 }
 0xe36   : > { %v5088_v25 = vsel %vm4870_vm7, %v5083_v44, %v5085_v27 }
 0xe38   : > { %5910 = vmatmul.mubr.msk.f32.vlgmr.msra.gmra.mrb[88].mxu0 %vm4566_vm12, %v5907_v40 }
 0xe39   : > { %5913 = vmatpush1.msk.msra.mxu0 %vm4570_vm11, %v9181_v37  ;;  %5046 = vmatprep.mubr.f32.mxu0 %v9335_v53  ;;  %v5202_v34 = vpop.permute.xlu0 %5201  ;;  %v5198_v37 = vpop.permute.xlu1 %5197 }
 0xe3a   : > { %5917 = vmatprep.subr.msk.mxu0 %vm4570_vm11, %v5089_v10  ;;  %v5204_v2 = vsel %vm4753_vm6, %v5200_v17, %v5202_v34  ;;  %v5203_v36 = vsel %vm4753_vm6, %v5198_v37, %v5200_v17 }
 0xe3d   : > { %v5315_v20 = vpop.permute.xlu0 %5314  ;;  %v5317_v47 = vpop.permute.xlu1 %5316 }
 0xe3e   : > { %v5319_v62 = vsel %vm4547_vm5, %v5315_v20, %v5317_v47 }
 0xe40   : > { %5914 = vmatmul.mubr.msk.f32.vlgmr.msra.gmra.mrb[88].mxu0 %vm4566_vm12, %v5911_v60 }
 0xe41   : > { %5918 = vmatpush1.msk.msra.mxu0 %vm4570_vm11, %v5088_v25  ;;  %5161 = vmatprep.mubr.f32.mxu0 %v9335_v53  ;;  %v5313_v46 = vpop.permute.xlu0 %5312  ;;  %v5430_v28 = vpop.permute.xlu1 %5429 }
 0xe42   : > { %5922 = vmatprep.subr.msk.mxu0 %vm4570_vm11, %v5204_v2  ;;  %v5318_v23 = vsel %vm4547_vm5, %v5313_v46, %v5315_v20 }
 0xe45   : > { %v5432_v8 = vpop.permute.xlu0 %5431  ;;  %v5428_v18 = vpop.permute.xlu1 %5427 }
 0xe46   : > { %v5434_v4 = vsel %vm4525_vm4, %v5430_v28, %v5432_v8  ;;  %v5433_v7 = vsel %vm4525_vm4, %v5428_v18, %v5430_v28 }
 0xe48   : > { %5919 = vmatmul.mubr.msk.f32.vlgmr.msra.gmra.mrb[88].mxu0 %vm4566_vm12, %v5916_v26 }
 0xe49   : > { %5923 = vmatpush1.msk.msra.mxu0 %vm4570_vm11, %v5203_v36  ;;  %5276 = vmatprep.mubr.f32.mxu0 %v9335_v53 }
 0xe4a   : > { %5927 = vmatprep.subr.msk.mxu0 %vm4570_vm11, %v5319_v62 }
 0xe50   : > { %5924 = vmatmul.mubr.msk.f32.vlgmr.msra.gmra.mrb[88].mxu0 %vm4566_vm12, %v5921_v12 }
 0xe51   : > { %5928 = vmatpush1.msk.msra.mxu0 %vm4570_vm11, %v5318_v23  ;;  %5391 = vmatprep.mubr.f32.mxu0 %v9335_v53 }
 0xe52   : > { %5932 = vmatprep.subr.msk.mxu0 %vm4570_vm11, %v5434_v4 }
 0xe56   : > { %v5519_v57 = vpop.permute.xlu0 %5518 }
 0xe58   : > { %5929 = vmatmul.mubr.msk.f32.vlgmr.msra.gmra.mrb[88].mxu0 %vm4566_vm12, %v5926_v49 }
 0xe59   : > { %5933 = vmatpush1.msk.msra.mxu0 %vm4570_vm11, %v5433_v7  ;;  %5506 = vmatprep.mubr.f32.mxu0 %v9335_v53 }
 0xe60   : > { %5934 = vmatmul.mubr.msk.f32.vlgmr.msra.gmra.mrb[88].mxu0 %vm4566_vm12, %v5931_v41 }
 0xf33   : > { %v5508_v11 = vpop.f32.mrb[88].mxu0 }
 0xf34   : > { %v5521_v39 = vadd.f32 %v5519_v57, %v5508_v11  ;;  %v5510_v1 = vpop.f32.mrb[89].mxu0 }
 0xf35   : > { %v5522_v48 = vadd.f32 %v5519_v57, %v5510_v1 }
 0xf37   : > { %v5525_v24 = vcombine.low %v5521_v39, %v5522_v48 }
 0xf39   : > { %5527 = vst [vmem:[%s352_s21] sm:$0xff] %v5525_v24 }
 0xf3a PF: > { %s19_s30 = sadd.s32 1, %s7277_s30  }
 0xf3b   : > { %p16_p4 = scmp.ge.s32.totalorder %s19_s30, 4  }
 0xf3d   :  { %18 = sbr.rel (!%p16_p4) target bundleno = 1 (0x1), region = 104 }

</bundles_post_ra>
